<compile_context>
chip_gen: v7x
topology: tpu7x:2x2x1
jax: 0.10.0
libtpu: 0.0.40
codegen_flags: <defaults>
</compile_context>

<pallas_src>
import functools

import jax
import jax.numpy as jnp
from jax.experimental import pallas as pl
from jax.experimental.pallas import tpu as pltpu


# --------------------------------------------------------------------------
# Generation-aware tuning (robust fallback if the query is unavailable)
# --------------------------------------------------------------------------
def _detect_vmem_capacity():
    try:
        if jax.devices()[0].platform != "tpu":
            return 64 * 1024 * 1024
        return int(pltpu.get_tpu_info().vmem_capacity_bytes)
    except Exception:
        return 64 * 1024 * 1024          # conservative (v7x-sized) fallback


_VMEM_CAP = _detect_vmem_capacity()
_VMEM_LIMIT = min(_VMEM_CAP * 3 // 4, 112 * 1024 * 1024)   # ~48 MiB v7x, ~96 MiB v5e/v6e
_SINGLE_TC = _VMEM_CAP >= 100 * 1024 * 1024                # v5e/v6e: 128 MiB VMEM, 1 TensorCore


def _round_up(x, m):
    return -(-x // m) * m


def _choose_tm(M):
    """M-tile choice: big tiles on single-TC chips; >=2 grid steps on v7x."""
    if _SINGLE_TC:
        for tm in (1024, 512, 256, 128, 64, 32, 16, 8):
            if M >= tm:
                return tm
        return 8
    for tm in (512, 256, 128, 64, 32, 16, 8):
        if M >= 2 * tm:
            return tm
    return max(8, _round_up(M, 8))


def _choose_tk(k128, max_tk=512):
    """K-tile: a 128-multiple chunk so the padded K has few / no wasted tiles."""
    if k128 <= max_tk:
        return k128
    nk = -(-k128 // max_tk)
    return _round_up(-(-k128 // nk), 128)


def _choose_tn(cp):
    if cp <= 512:
        return cp
    return 256 if cp % 256 == 0 else 128


# --------------------------------------------------------------------------
# Pallas kernels
# --------------------------------------------------------------------------
def _mm_ktiled_kernel(a_ref, b_ref, bias_ref, *rest, act, n_res):
    """(M,N,K)-tiled: out = act(A @ B + bias) (+ residuals) with f32 acc scratch."""
    res_refs = rest[:n_res]
    o_ref = rest[n_res]
    acc_ref = rest[n_res + 1]
    k = pl.program_id(2)

    @pl.when(k == 0)
    def _():
        acc_ref[...] = jnp.zeros_like(acc_ref)

    acc_ref[...] += jnp.dot(a_ref[...], b_ref[...],
                            preferred_element_type=jnp.float32)

    @pl.when(k == pl.num_programs(2) - 1)
    def _():
        acc = acc_ref[...] + bias_ref[...]
        if act == "relu":
            acc = jnp.maximum(acc, 0.0)
        elif act == "tanh":
            acc = jnp.tanh(acc)
        for r_ref in res_refs:                 # only used with act == "none"
            acc = acc + r_ref[...].astype(jnp.float32)
        o_ref[...] = acc.astype(o_ref.dtype)


def _mm_multi_kernel(*refs, act, n_pairs, n_res):
    """out = act(sum_i A_i @ B_i + bias) (+ residuals).  Used for the up-path
    'concat' convs: the concatenated-channel conv becomes two fused dots."""
    a_refs = refs[:n_pairs]
    b_refs = refs[n_pairs:2 * n_pairs]
    bias_ref = refs[2 * n_pairs]
    res_refs = refs[2 * n_pairs + 1:2 * n_pairs + 1 + n_res]
    o_ref = refs[2 * n_pairs + 1 + n_res]

    acc = jnp.dot(a_refs[0][...], b_refs[0][...], preferred_element_type=jnp.float32)
    for a_ref, b_ref in zip(a_refs[1:], b_refs[1:]):
        acc = acc + jnp.dot(a_ref[...], b_ref[...], preferred_element_type=jnp.float32)
    acc = acc + bias_ref[...]
    if act == "relu":
        acc = jnp.maximum(acc, 0.0)
    elif act == "tanh":
        acc = jnp.tanh(acc)
    for r_ref in res_refs:
        acc = acc + r_ref[...].astype(jnp.float32)
    o_ref[...] = acc.astype(o_ref.dtype)


def _add_kernel(a_ref, b_ref, o_ref):
    o_ref[...] = a_ref[...] + b_ref[...]


# --------------------------------------------------------------------------
# Fused matmul wrapper
# --------------------------------------------------------------------------
def matmul_fused(pairs, bias, act="none", residuals=(), out_dtype=jnp.bfloat16):
    """pairs: [(A_i (M,K_i), B_i (K_i,Cout)), ...].  Computes
    act(sum_i A_i @ B_i + bias) (+ residuals) in one Pallas kernel."""
    # Residuals ride in the epilogue after the (identity) activation — matches the
    # PyTorch residual blocks; guard against silent misuse with other activations.
    assert act == "none" or not residuals, "residuals only supported with act='none'"

    M = pairs[0][0].shape[0]
    Cout = pairs[0][1].shape[1]
    Cp = _round_up(Cout, 128)
    TM = _choose_tm(M)
    Mp = _round_up(M, TM)

    def pad2(x, rows, cols, dtype):
        x = x.astype(dtype)
        pr, pc = rows - x.shape[0], cols - x.shape[1]
        if pr or pc:
            x = jnp.pad(x, ((0, pr), (0, pc)))
        return x

    bias_p = pad2(bias.reshape(1, -1), 1, Cp, jnp.float32)
    res_p = [pad2(r, Mp, Cp, jnp.bfloat16) for r in residuals]

    if len(pairs) == 1:
        A, B = pairs[0]
        K = A.shape[1]
        K128 = _round_up(K, 128)
        TK = _choose_tk(K128)
        Kp = _round_up(K128, TK)
        TN = _choose_tn(Cp)
        A = pad2(A, Mp, Kp, jnp.bfloat16)
        B = pad2(B, Kp, Cp, jnp.bfloat16)
        out = pl.pallas_call(
            functools.partial(_mm_ktiled_kernel, act=act, n_res=len(res_p)),
            out_shape=jax.ShapeDtypeStruct((Mp, Cp), out_dtype),
            grid=(Mp // TM, Cp // TN, Kp // TK),
            in_specs=[
                pl.BlockSpec((TM, TK), lambda i, j, k: (i, k)),
                pl.BlockSpec((TK, TN), lambda i, j, k: (k, j)),
                pl.BlockSpec((1, TN), lambda i, j, k: (0, j)),
            ] + [pl.BlockSpec((TM, TN), lambda i, j, k: (i, j)) for _ in res_p],
            out_specs=pl.BlockSpec((TM, TN), lambda i, j, k: (i, j)),
            scratch_shapes=[pltpu.VMEM((TM, TN), jnp.float32)],
            compiler_params=pltpu.CompilerParams(
                dimension_semantics=("parallel", "parallel", "arbitrary"),
                vmem_limit_bytes=_VMEM_LIMIT),
        )(A, B, bias_p, *res_p)
    else:
        # TODO(synk): the multi-operand (concat-elimination) path keeps each full-K
        # B resident; for very large channel counts it should get the same K tiling.
        As = [pad2(A, Mp, _round_up(A.shape[1], 128), jnp.bfloat16) for A, _ in pairs]
        Bs = [pad2(B, _round_up(B.shape[0], 128), Cp, jnp.bfloat16) for _, B in pairs]
        out = pl.pallas_call(
            functools.partial(_mm_multi_kernel, act=act,
                              n_pairs=len(pairs), n_res=len(res_p)),
            out_shape=jax.ShapeDtypeStruct((Mp, Cp), out_dtype),
            grid=(Mp // TM,),
            in_specs=[pl.BlockSpec((TM, Ai.shape[1]), lambda i: (i, 0)) for Ai in As]
                   + [pl.BlockSpec(Bi.shape, lambda i: (0, 0)) for Bi in Bs]
                   + [pl.BlockSpec((1, Cp), lambda i: (0, 0))]
                   + [pl.BlockSpec((TM, Cp), lambda i: (i, 0)) for _ in res_p],
            out_specs=pl.BlockSpec((TM, Cp), lambda i: (i, 0)),
            compiler_params=pltpu.CompilerParams(
                dimension_semantics=("parallel",),
                vmem_limit_bytes=_VMEM_LIMIT),
        )(*As, *Bs, bias_p, *res_p)

    if Mp != M or Cp != Cout:          # skip the slice pass when already aligned
        out = out[:M, :Cout]
    return out


def pallas_add(a, b):
    """Lane-dense elementwise add (only used when num_residuals == 0)."""
    shape = a.shape
    C = shape[-1]
    a2, b2 = a.reshape(-1, C), b.reshape(-1, C)
    M = a2.shape[0]
    TM = _choose_tm(M)
    Mp = _round_up(M, TM)
    if Mp != M:
        a2 = jnp.pad(a2, ((0, Mp - M), (0, 0)))
        b2 = jnp.pad(b2, ((0, Mp - M), (0, 0)))
    out = pl.pallas_call(
        _add_kernel,
        out_shape=jax.ShapeDtypeStruct((Mp, C), a.dtype),
        grid=(Mp // TM,),
        in_specs=[pl.BlockSpec((TM, C), lambda i: (i, 0)),
                  pl.BlockSpec((TM, C), lambda i: (i, 0))],
        out_specs=pl.BlockSpec((TM, C), lambda i: (i, 0)),
        compiler_params=pltpu.CompilerParams(dimension_semantics=("parallel",)),
    )(a2, b2)
    return out[:M].reshape(shape)


# --------------------------------------------------------------------------
# Conv helpers (im2col / padding are glue; the matmul hot path is Pallas)
# --------------------------------------------------------------------------
def _im2col(x_pad, K, stride):
    N, Hp, Wp, C = x_pad.shape
    Ho = (Hp - K) // stride + 1
    Wo = (Wp - K) // stride + 1
    cols = []
    for kh in range(K):
        for kw in range(K):
            cols.append(
                x_pad[:, kh:kh + (Ho - 1) * stride + 1:stride,
                         kw:kw + (Wo - 1) * stride + 1:stride, :])
    patches = jnp.stack(cols, axis=3)            # (N, Ho, Wo, K*K, C)
    return patches.reshape(N * Ho * Wo, K * K * C), (N, Ho, Wo)


def _pad_spatial(x, pad, pad_mode):
    if isinstance(pad, int):
        pad = ((pad, pad), (pad, pad))
    if any(p for side in pad for p in side):
        x = jnp.pad(x, ((0, 0), pad[0], pad[1], (0, 0)), mode=pad_mode)
    return x


def conv2d(x, W, bias, *, stride=1, pad=0, pad_mode="constant", act="none",
           residuals=(), out_dtype=jnp.bfloat16):
    """NHWC conv via bf16 im2col + fused Pallas matmul.  `residuals` are NHWC
    tensors (same N/H/W/C as the conv output) added inside the matmul epilogue.

    # TODO(synk): the im2col patch matrix is still materialized in HBM (bf16);
    # a fully in-kernel halo im2col (K*K shifted dots from an NHWC VMEM tile)
    # would cut activation DMA ~K^2 but needs reflect-pad halos / sublane-crossing
    # reshapes that do not lower robustly at these tiny spatial sizes.
    """
    K = W.shape[0]
    Cout = W.shape[-1]
    x = _pad_spatial(x.astype(jnp.bfloat16), pad, pad_mode)
    A, (N, Ho, Wo) = _im2col(x, K, stride)
    res_flat = [r.reshape(-1, r.shape[-1]) for r in residuals]
    out = matmul_fused([(A, W.reshape(-1, Cout))], bias, act=act,
                       residuals=res_flat, out_dtype=out_dtype)
    return out.reshape(N, Ho, Wo, Cout)


def conv2d_dual(x1, x2, W, bias, *, stride=1, pad=0, pad_mode="constant",
                act="none", out_dtype=jnp.bfloat16):
    """Conv over channel-concat([x1, x2]) WITHOUT materializing the concat:
    the weight is split along Cin and the two dots are fused in one kernel."""
    K = W.shape[0]
    Cout = W.shape[-1]
    C1 = x1.shape[-1]

    def prep(x):
        return _im2col(_pad_spatial(x.astype(jnp.bfloat16), pad, pad_mode), K, stride)

    A1, shp = prep(x1)
    A2, _ = prep(x2)
    W1 = W[:, :, :C1, :].reshape(-1, Cout)
    W2 = W[:, :, C1:, :].reshape(-1, Cout)
    out = matmul_fused([(A1, W1), (A2, W2)], bias, act=act, out_dtype=out_dtype)
    N, Ho, Wo = shp
    return out.reshape(N, Ho, Wo, Cout)


def _convT_phase_weight(Wt):
    """Build the (3,3,Cin,4*Cout) weight whose four Cout-groups are the sub-pixel
    phase tap-subsets of a ConvTranspose2d(k=4, s=2, p=1) weight (kH,kW,Cin,Cout)."""
    _, _, Cin, Cout = Wt.shape
    zeros = jnp.zeros((Cin, Cout), Wt.dtype)
    # output phase 0 (even rows): window rows {i-1,i} use kh {3,1}
    # output phase 1 (odd rows):  window rows {i,i+1} use kh {2,0}
    taps = {0: {0: 3, 1: 1}, 1: {1: 2, 2: 0}}
    phases = []
    for a in (0, 1):
        for b in (0, 1):
            rows = []
            for wr in range(3):
                cols = []
                for wc in range(3):
                    kh = taps[a].get(wr)
                    kw = taps[b].get(wc)
                    cols.append(zeros if kh is None or kw is None else Wt[kh, kw])
                rows.append(jnp.stack(cols, axis=0))
            phases.append(jnp.stack(rows, axis=0))      # (3, 3, Cin, Cout)
    return jnp.concatenate(phases, axis=-1)             # (3, 3, Cin, 4*Cout)


def conv_transpose2d(x, Wt):
    """ConvTranspose2d(kernel=4, stride=2, padding=1, bias=False) as ONE fused
    kernel: 3x3 zero-pad=1 im2col -> matmul against the 4 phase tap-subsets
    stacked along Cout -> depth-to-space.  `Wt` is (kH,kW,Cin,Cout); a torch
    weight (Cin,Cout,kH,kW) maps to this layout via transpose(2,3,0,1)."""
    N, H, W, _ = x.shape
    Cout = Wt.shape[-1]
    Wbig = _convT_phase_weight(Wt)                       # (3,3,Cin,4*Cout)
    zero_b = jnp.zeros((4 * Cout,), jnp.float32)
    y = conv2d(x, Wbig, zero_b, stride=1, pad=1, pad_mode="constant", act="none")
    y = y.reshape(N, H, W, 2, 2, Cout)
    y = jnp.transpose(y, (0, 1, 3, 2, 4, 5)).reshape(N, 2 * H, 2 * W, Cout)
    return y


def upsample2_nearest(x):
    return jnp.repeat(jnp.repeat(x, 2, axis=1), 2, axis=2)


# --------------------------------------------------------------------------
# Deterministic parameter construction (synthetic init, eval-mode BN folded)
# --------------------------------------------------------------------------
def build_params(key, in_channels, features, num_residuals):
    f = features
    keys = iter(jax.random.split(key, 64 + 8 * num_residuals))

    def conv(K, cin, cout, *, bias=False, bn=False):
        W = jax.random.normal(next(keys), (K, K, cin, cout), jnp.float32)
        W = W / jnp.sqrt(float(K * K * cin))
        if bn:
            gamma = jax.random.uniform(next(keys), (cout,), jnp.float32, 0.5, 1.5)
            beta = 0.1 * jax.random.normal(next(keys), (cout,), jnp.float32)
            # eval-mode BatchNorm (running_mean=0, running_var=1) folded into W/bias
            W = W * (gamma / jnp.sqrt(1.0 + 1e-5))
            b = beta
        else:
            b = (0.1 * jax.random.normal(next(keys), (cout,), jnp.float32)
                 if bias else jnp.zeros((cout,), jnp.float32))
        return {"W": W, "bias": b}

    return {
        "initial": conv(7, in_channels, f, bias=True),
        "down1": conv(3, f, f * 2, bn=True),
        "down2": conv(3, f * 2, f * 4, bn=True),
        "down3": conv(3, f * 4, f * 8, bn=True),
        "down4": conv(3, f * 8, f * 16, bn=True),
        "res": [(conv(3, f * 16, f * 16, bn=True), conv(3, f * 16, f * 16, bn=True))
                for _ in range(num_residuals)],
        "up1": conv(3, f * 16, f * 8, bn=True),
        "up2": conv(3, f * 8 * 2, f * 4, bn=True),
        "up3": conv(3, f * 4 * 2, f * 2, bn=True),
        "up4": conv(3, f * 2 * 2, f, bn=True),
        "final_block": conv(3, f * 2, f, bn=True),
        "convT": conv(4, f, f // 2),               # ConvTranspose weight (kH,kW,Cin,Cout)
        "final_conv": conv(7, f // 2, in_channels, bias=True),
    }


# --------------------------------------------------------------------------
# Generator forward (mirrors the PyTorch module, eval semantics)
# --------------------------------------------------------------------------
def _block(x, prm, *, stride=2, act="relu"):
    # Block: Conv2d(k=3, pad=1, reflect, no bias) + eval-BN (folded) + ReLU
    return conv2d(x, prm["W"], prm["bias"], stride=stride, pad=1,
                  pad_mode="reflect", act=act)


def _block_dual(x1, x2, prm, *, stride=2, act="relu"):
    # Same Block applied to channel-concat([x1, x2]) without materializing it.
    return conv2d_dual(x1, x2, prm["W"], prm["bias"], stride=stride, pad=1,
                       pad_mode="reflect", act=act)


def generator_forward(params, x_nchw):
    x = jnp.transpose(x_nchw, (0, 2, 3, 1))               # NCHW -> NHWC
    pi = params["initial"]
    d1 = conv2d(x, pi["W"], pi["bias"], stride=1, pad=3,
                pad_mode="reflect", act="relu")
    d2 = _block(d1, params["down1"])
    d3 = _block(d2, params["down2"])
    d4 = _block(d3, params["down3"])
    d5 = _block(d4, params["down4"])

    # Residual chain: the per-block skip (+ r) and the final (+ d5) ride in the
    # second conv's matmul epilogue -- no standalone add kernels.
    r = d5
    n_res = len(params["res"])
    for idx, (p1, p2) in enumerate(params["res"]):
        h = conv2d(r, p1["W"], p1["bias"], stride=1, pad=1,
                   pad_mode="reflect", act="relu")
        # TODO(synk): training-mode stochastic depth (random per-sample drop) is not
        # implemented; eval-mode (identity) semantics are used.
        extra = (d5,) if idx == n_res - 1 else ()
        r = conv2d(h, p2["W"], p2["bias"], stride=1, pad=1,
                   pad_mode="reflect", act="none", residuals=(r,) + extra)
    residuals = r if n_res > 0 else pallas_add(d5, d5)

    # Up path: skip-concats are never materialized (dual-operand fused convs).
    up1 = _block(upsample2_nearest(residuals), params["up1"])
    s4 = d4[:, :up1.shape[1], :up1.shape[2], :]
    up2 = _block_dual(upsample2_nearest(up1), upsample2_nearest(s4), params["up2"])
    s3 = d3[:, :up2.shape[1], :up2.shape[2], :]
    up3 = _block_dual(upsample2_nearest(up2), upsample2_nearest(s3), params["up3"])
    s2 = d2[:, :up3.shape[1], :up3.shape[2], :]
    up4 = _block_dual(upsample2_nearest(up3), upsample2_nearest(s2), params["up4"])
    s1 = d1[:, :up4.shape[1], :up4.shape[2], :]

    y = _block_dual(up4, s1, params["final_block"], stride=1)
    y = conv_transpose2d(y, params["convT"]["W"])
    pf = params["final_conv"]
    y = conv2d(y, pf["W"], pf["bias"], stride=1, pad=3,
               pad_mode="reflect", act="tanh", out_dtype=jnp.float32)
    return jnp.transpose(y, (0, 3, 1, 2))                  # back to NCHW


# --------------------------------------------------------------------------
if __name__ == "__main__":
    in_channels, features, num_residuals = 3, 8, 2
    key = jax.random.PRNGKey(0)
    pkey, xkey = jax.random.split(key)
    params = build_params(pkey, in_channels, features, num_residuals)
    # 32x32 input keeps the 2x2 bottleneck valid for reflect padding (pad < size).
    x = jax.random.normal(xkey, (2, in_channels, 32, 32), jnp.float32)

    fwd = jax.jit(generator_forward)
    out = jax.block_until_ready(fwd(params, x))

    # Input 32x32 -> bottleneck 2x2; up path (nearest x2, stride-2 conv) keeps 2x2;
    # ConvTranspose2d doubles to 4x4; final 7x7 conv + tanh keeps 4x4.
    assert out.shape == (2, in_channels, 4, 4), out.shape
    assert bool(jnp.all(jnp.isfinite(out)))
    assert bool(jnp.all(jnp.abs(out) <= 1.0 + 1e-6))       # tanh range
    print("KERNEL_OK")
</pallas_src>

<mosaic_0001>
module attributes {stable_mosaic.version = 11 : i64} {
  func.func @_mm_ktiled_kernel(%arg0: i32, %arg1: i32, %arg2: i32, %arg3: memref<512x256xbf16, #tpu.memory_space<vmem>>, %arg4: memref<256x128xbf16, #tpu.memory_space<vmem>>, %arg5: memref<1x128xf32, #tpu.memory_space<vmem>>, %arg6: memref<512x128xbf16, #tpu.memory_space<vmem>>, %arg7: memref<512x128xf32, #tpu.memory_space<vmem>>) attributes {dimension_semantics = [#tpu.dimension_semantics<parallel>, #tpu.dimension_semantics<parallel>, #tpu.dimension_semantics<arbitrary>], iteration_bounds = array<i64: 4, 1, 1>, scalar_prefetch = 0 : i64, scratch_operands = 1 : i64, tpu.core_type = #tpu.core_type<tc>, window_params = [{transform_indices = @transform_0, window_bounds = array<i64: 512, 256>}, {transform_indices = @transform_1, window_bounds = array<i64: 256, 128>}, {transform_indices = @transform_2, window_bounds = array<i64: 1, 128>}, {transform_indices = @transform_3, window_bounds = array<i64: 512, 128>}]} {
    %c0_i32 = arith.constant 0 : i32
    %0 = arith.cmpi eq, %arg2, %c0_i32 : i32
    %1 = arith.extui %0 : i1 to i32
    %c0_i32_0 = arith.constant 0 : i32
    %2 = arith.cmpi ne, %1, %c0_i32_0 : i32
    scf.if %2 {
      %cst_10 = arith.constant 0.000000e+00 : f32
      %12 = vector.broadcast %cst_10 : f32 to vector<512x128xf32>
      %c0_11 = arith.constant 0 : index
      %c0_12 = arith.constant 0 : index
      %13 = vector.load %arg7[%c0_11, %c0_12] : memref<512x128xf32, #tpu.memory_space<vmem>>, vector<512x128xf32>
      tpu.vector_store %arg7[%c0_11, %c0_12], %12 {strides = array<i32>} : memref<512x128xf32, #tpu.memory_space<vmem>>, vector<512x128xf32>,
    } else {
    }
    %c0 = arith.constant 0 : index
    %c0_1 = arith.constant 0 : index
    %3 = vector.load %arg7[%c0, %c0_1] : memref<512x128xf32, #tpu.memory_space<vmem>>, vector<512x128xf32>
    %c0_2 = arith.constant 0 : index
    %c0_3 = arith.constant 0 : index
    %4 = vector.load %arg3[%c0_2, %c0_3] : memref<512x256xbf16, #tpu.memory_space<vmem>>, vector<512x256xbf16>
    %c0_4 = arith.constant 0 : index
    %c0_5 = arith.constant 0 : index
    %5 = vector.load %arg4[%c0_4, %c0_5] : memref<256x128xbf16, #tpu.memory_space<vmem>>, vector<256x128xbf16>
    %cst = arith.constant dense<0.000000e+00> : vector<512x128xf32>
    %6 = tpu.matmul %4, %5, %cst {dimension_numbers = #tpu.dot_dimension_numbers<[1], [0], [0], [1], [0, 0, 1, 1], [], []>} : vector<512x256xbf16>, vector<256x128xbf16>, vector<512x128xf32> -> vector<512x128xf32>
    %7 = arith.addf %3, %6 : vector<512x128xf32>
    %c0_6 = arith.constant 0 : index
    %c0_7 = arith.constant 0 : index
    %8 = vector.load %arg7[%c0_6, %c0_7] : memref<512x128xf32, #tpu.memory_space<vmem>>, vector<512x128xf32>
    tpu.vector_store %arg7[%c0_6, %c0_7], %7 {strides = array<i32>} : memref<512x128xf32, #tpu.memory_space<vmem>>, vector<512x128xf32>,
    %c0_i32_8 = arith.constant 0 : i32
    %9 = arith.cmpi eq, %arg2, %c0_i32_8 : i32
    %10 = arith.extui %9 : i1 to i32
    %c0_i32_9 = arith.constant 0 : i32
    %11 = arith.cmpi ne, %10, %c0_i32_9 : i32
    scf.if %11 {
      %c0_10 = arith.constant 0 : index
      %c0_11 = arith.constant 0 : index
      %12 = vector.load %arg7[%c0_10, %c0_11] : memref<512x128xf32, #tpu.memory_space<vmem>>, vector<512x128xf32>
      %c0_12 = arith.constant 0 : index
      %c0_13 = arith.constant 0 : index
      %13 = vector.load %arg5[%c0_12, %c0_13] : memref<1x128xf32, #tpu.memory_space<vmem>>, vector<1x128xf32>
      %14 = vector.broadcast %13 : vector<1x128xf32> to vector<512x128xf32>
      %15 = arith.addf %12, %14 : vector<512x128xf32>
      %cst_14 = arith.constant 0.000000e+00 : f32
      %16 = vector.broadcast %cst_14 : f32 to vector<512x128xf32>
      %17 = arith.maximumf %15, %16 : vector<512x128xf32>
      %18 = arith.truncf %17 : vector<512x128xf32> to vector<512x128xbf16>
      %c0_15 = arith.constant 0 : index
      %c0_16 = arith.constant 0 : index
      %19 = vector.load %arg6[%c0_15, %c0_16] : memref<512x128xbf16, #tpu.memory_space<vmem>>, vector<512x128xbf16>
      tpu.vector_store %arg6[%c0_15, %c0_16], %18 {strides = array<i32>} : memref<512x128xbf16, #tpu.memory_space<vmem>>, vector<512x128xbf16>,
    } else {
    }
    return
  }
  func.func @transform_0(%arg0: i32, %arg1: i32, %arg2: i32) -> (i32, i32) {
    %c0_i32 = arith.constant 0 : i32
    return %arg0, %arg2 : i32, i32
  }
  func.func @transform_1(%arg0: i32, %arg1: i32, %arg2: i32) -> (i32, i32) {
    %c0_i32 = arith.constant 0 : i32
    return %arg2, %arg1 : i32, i32
  }
  func.func @transform_2(%arg0: i32, %arg1: i32, %arg2: i32) -> (i32, i32) {
    %c0_i32 = arith.constant 0 : i32
    %c0_i32_0 = arith.constant 0 : i32
    return %c0_i32, %arg1 : i32, i32
  }
  func.func @transform_3(%arg0: i32, %arg1: i32, %arg2: i32) -> (i32, i32) {
    %c0_i32 = arith.constant 0 : i32
    return %arg0, %arg1 : i32, i32
  }
}

module attributes {stable_mosaic.version = 11 : i64} {
  func.func @_mm_ktiled_kernel(%arg0: i32, %arg1: i32, %arg2: i32, %arg3: memref<256x128xbf16, #tpu.memory_space<vmem>>, %arg4: memref<128x128xbf16, #tpu.memory_space<vmem>>, %arg5: memref<1x128xf32, #tpu.memory_space<vmem>>, %arg6: memref<256x128xbf16, #tpu.memory_space<vmem>>, %arg7: memref<256x128xf32, #tpu.memory_space<vmem>>) attributes {dimension_semantics = [#tpu.dimension_semantics<parallel>, #tpu.dimension_semantics<parallel>, #tpu.dimension_semantics<arbitrary>], iteration_bounds = array<i64: 2, 1, 1>, scalar_prefetch = 0 : i64, scratch_operands = 1 : i64, tpu.core_type = #tpu.core_type<tc>, window_params = [{transform_indices = @transform_0, window_bounds = array<i64: 256, 128>}, {transform_indices = @transform_1, window_bounds = array<i64: 128, 128>}, {transform_indices = @transform_2, window_bounds = array<i64: 1, 128>}, {transform_indices = @transform_3, window_bounds = array<i64: 256, 128>}]} {
    %c0_i32 = arith.constant 0 : i32
    %0 = arith.cmpi eq, %arg2, %c0_i32 : i32
    %1 = arith.extui %0 : i1 to i32
    %c0_i32_0 = arith.constant 0 : i32
    %2 = arith.cmpi ne, %1, %c0_i32_0 : i32
    scf.if %2 {
      %cst_10 = arith.constant 0.000000e+00 : f32
      %12 = vector.broadcast %cst_10 : f32 to vector<256x128xf32>
      %c0_11 = arith.constant 0 : index
      %c0_12 = arith.constant 0 : index
      %13 = vector.load %arg7[%c0_11, %c0_12] : memref<256x128xf32, #tpu.memory_space<vmem>>, vector<256x128xf32>
      tpu.vector_store %arg7[%c0_11, %c0_12], %12 {strides = array<i32>} : memref<256x128xf32, #tpu.memory_space<vmem>>, vector<256x128xf32>,
    } else {
    }
    %c0 = arith.constant 0 : index
    %c0_1 = arith.constant 0 : index
    %3 = vector.load %arg7[%c0, %c0_1] : memref<256x128xf32, #tpu.memory_space<vmem>>, vector<256x128xf32>
    %c0_2 = arith.constant 0 : index
    %c0_3 = arith.constant 0 : index
    %4 = vector.load %arg3[%c0_2, %c0_3] : memref<256x128xbf16, #tpu.memory_space<vmem>>, vector<256x128xbf16>
    %c0_4 = arith.constant 0 : index
    %c0_5 = arith.constant 0 : index
    %5 = vector.load %arg4[%c0_4, %c0_5] : memref<128x128xbf16, #tpu.memory_space<vmem>>, vector<128x128xbf16>
    %cst = arith.constant dense<0.000000e+00> : vector<256x128xf32>
    %6 = tpu.matmul %4, %5, %cst {dimension_numbers = #tpu.dot_dimension_numbers<[1], [0], [0], [1], [0, 0, 1, 1], [], []>} : vector<256x128xbf16>, vector<128x128xbf16>, vector<256x128xf32> -> vector<256x128xf32>
    %7 = arith.addf %3, %6 : vector<256x128xf32>
    %c0_6 = arith.constant 0 : index
    %c0_7 = arith.constant 0 : index
    %8 = vector.load %arg7[%c0_6, %c0_7] : memref<256x128xf32, #tpu.memory_space<vmem>>, vector<256x128xf32>
    tpu.vector_store %arg7[%c0_6, %c0_7], %7 {strides = array<i32>} : memref<256x128xf32, #tpu.memory_space<vmem>>, vector<256x128xf32>,
    %c0_i32_8 = arith.constant 0 : i32
    %9 = arith.cmpi eq, %arg2, %c0_i32_8 : i32
    %10 = arith.extui %9 : i1 to i32
    %c0_i32_9 = arith.constant 0 : i32
    %11 = arith.cmpi ne, %10, %c0_i32_9 : i32
    scf.if %11 {
      %c0_10 = arith.constant 0 : index
      %c0_11 = arith.constant 0 : index
      %12 = vector.load %arg7[%c0_10, %c0_11] : memref<256x128xf32, #tpu.memory_space<vmem>>, vector<256x128xf32>
      %c0_12 = arith.constant 0 : index
      %c0_13 = arith.constant 0 : index
      %13 = vector.load %arg5[%c0_12, %c0_13] : memref<1x128xf32, #tpu.memory_space<vmem>>, vector<1x128xf32>
      %14 = vector.broadcast %13 : vector<1x128xf32> to vector<256x128xf32>
      %15 = arith.addf %12, %14 : vector<256x128xf32>
      %cst_14 = arith.constant 0.000000e+00 : f32
      %16 = vector.broadcast %cst_14 : f32 to vector<256x128xf32>
      %17 = arith.maximumf %15, %16 : vector<256x128xf32>
      %18 = arith.truncf %17 : vector<256x128xf32> to vector<256x128xbf16>
      %c0_15 = arith.constant 0 : index
      %c0_16 = arith.constant 0 : index
      %19 = vector.load %arg6[%c0_15, %c0_16] : memref<256x128xbf16, #tpu.memory_space<vmem>>, vector<256x128xbf16>
      tpu.vector_store %arg6[%c0_15, %c0_16], %18 {strides = array<i32>} : memref<256x128xbf16, #tpu.memory_space<vmem>>, vector<256x128xbf16>,
    } else {
    }
    return
  }
  func.func @transform_0(%arg0: i32, %arg1: i32, %arg2: i32) -> (i32, i32) {
    %c0_i32 = arith.constant 0 : i32
    return %arg0, %arg2 : i32, i32
  }
  func.func @transform_1(%arg0: i32, %arg1: i32, %arg2: i32) -> (i32, i32) {
    %c0_i32 = arith.constant 0 : i32
    return %arg2, %arg1 : i32, i32
  }
  func.func @transform_2(%arg0: i32, %arg1: i32, %arg2: i32) -> (i32, i32) {
    %c0_i32 = arith.constant 0 : i32
    %c0_i32_0 = arith.constant 0 : i32
    return %c0_i32, %arg1 : i32, i32
  }
  func.func @transform_3(%arg0: i32, %arg1: i32, %arg2: i32) -> (i32, i32) {
    %c0_i32 = arith.constant 0 : i32
    return %arg0, %arg1 : i32, i32
  }
}

module attributes {stable_mosaic.version = 11 : i64} {
  func.func @_mm_ktiled_kernel(%arg0: i32, %arg1: i32, %arg2: i32, %arg3: memref<64x256xbf16, #tpu.memory_space<vmem>>, %arg4: memref<256x128xbf16, #tpu.memory_space<vmem>>, %arg5: memref<1x128xf32, #tpu.memory_space<vmem>>, %arg6: memref<64x128xbf16, #tpu.memory_space<vmem>>, %arg7: memref<64x128xf32, #tpu.memory_space<vmem>>) attributes {dimension_semantics = [#tpu.dimension_semantics<parallel>, #tpu.dimension_semantics<parallel>, #tpu.dimension_semantics<arbitrary>], iteration_bounds = array<i64: 2, 1, 1>, scalar_prefetch = 0 : i64, scratch_operands = 1 : i64, tpu.core_type = #tpu.core_type<tc>, window_params = [{transform_indices = @transform_0, window_bounds = array<i64: 64, 256>}, {transform_indices = @transform_1, window_bounds = array<i64: 256, 128>}, {transform_indices = @transform_2, window_bounds = array<i64: 1, 128>}, {transform_indices = @transform_3, window_bounds = array<i64: 64, 128>}]} {
    %c0_i32 = arith.constant 0 : i32
    %0 = arith.cmpi eq, %arg2, %c0_i32 : i32
    %1 = arith.extui %0 : i1 to i32
    %c0_i32_0 = arith.constant 0 : i32
    %2 = arith.cmpi ne, %1, %c0_i32_0 : i32
    scf.if %2 {
      %cst_10 = arith.constant 0.000000e+00 : f32
      %12 = vector.broadcast %cst_10 : f32 to vector<64x128xf32>
      %c0_11 = arith.constant 0 : index
      %c0_12 = arith.constant 0 : index
      %13 = vector.load %arg7[%c0_11, %c0_12] : memref<64x128xf32, #tpu.memory_space<vmem>>, vector<64x128xf32>
      tpu.vector_store %arg7[%c0_11, %c0_12], %12 {strides = array<i32>} : memref<64x128xf32, #tpu.memory_space<vmem>>, vector<64x128xf32>,
    } else {
    }
    %c0 = arith.constant 0 : index
    %c0_1 = arith.constant 0 : index
    %3 = vector.load %arg7[%c0, %c0_1] : memref<64x128xf32, #tpu.memory_space<vmem>>, vector<64x128xf32>
    %c0_2 = arith.constant 0 : index
    %c0_3 = arith.constant 0 : index
    %4 = vector.load %arg3[%c0_2, %c0_3] : memref<64x256xbf16, #tpu.memory_space<vmem>>, vector<64x256xbf16>
    %c0_4 = arith.constant 0 : index
    %c0_5 = arith.constant 0 : index
    %5 = vector.load %arg4[%c0_4, %c0_5] : memref<256x128xbf16, #tpu.memory_space<vmem>>, vector<256x128xbf16>
    %cst = arith.constant dense<0.000000e+00> : vector<64x128xf32>
    %6 = tpu.matmul %4, %5, %cst {dimension_numbers = #tpu.dot_dimension_numbers<[1], [0], [0], [1], [0, 0, 1, 1], [], []>} : vector<64x256xbf16>, vector<256x128xbf16>, vector<64x128xf32> -> vector<64x128xf32>
    %7 = arith.addf %3, %6 : vector<64x128xf32>
    %c0_6 = arith.constant 0 : index
    %c0_7 = arith.constant 0 : index
    %8 = vector.load %arg7[%c0_6, %c0_7] : memref<64x128xf32, #tpu.memory_space<vmem>>, vector<64x128xf32>
    tpu.vector_store %arg7[%c0_6, %c0_7], %7 {strides = array<i32>} : memref<64x128xf32, #tpu.memory_space<vmem>>, vector<64x128xf32>,
    %c0_i32_8 = arith.constant 0 : i32
    %9 = arith.cmpi eq, %arg2, %c0_i32_8 : i32
    %10 = arith.extui %9 : i1 to i32
    %c0_i32_9 = arith.constant 0 : i32
    %11 = arith.cmpi ne, %10, %c0_i32_9 : i32
    scf.if %11 {
      %c0_10 = arith.constant 0 : index
      %c0_11 = arith.constant 0 : index
      %12 = vector.load %arg7[%c0_10, %c0_11] : memref<64x128xf32, #tpu.memory_space<vmem>>, vector<64x128xf32>
      %c0_12 = arith.constant 0 : index
      %c0_13 = arith.constant 0 : index
      %13 = vector.load %arg5[%c0_12, %c0_13] : memref<1x128xf32, #tpu.memory_space<vmem>>, vector<1x128xf32>
      %14 = vector.broadcast %13 : vector<1x128xf32> to vector<64x128xf32>
      %15 = arith.addf %12, %14 : vector<64x128xf32>
      %cst_14 = arith.constant 0.000000e+00 : f32
      %16 = vector.broadcast %cst_14 : f32 to vector<64x128xf32>
      %17 = arith.maximumf %15, %16 : vector<64x128xf32>
      %18 = arith.truncf %17 : vector<64x128xf32> to vector<64x128xbf16>
      %c0_15 = arith.constant 0 : index
      %c0_16 = arith.constant 0 : index
      %19 = vector.load %arg6[%c0_15, %c0_16] : memref<64x128xbf16, #tpu.memory_space<vmem>>, vector<64x128xbf16>
      tpu.vector_store %arg6[%c0_15, %c0_16], %18 {strides = array<i32>} : memref<64x128xbf16, #tpu.memory_space<vmem>>, vector<64x128xbf16>,
    } else {
    }
    return
  }
  func.func @transform_0(%arg0: i32, %arg1: i32, %arg2: i32) -> (i32, i32) {
    %c0_i32 = arith.constant 0 : i32
    return %arg0, %arg2 : i32, i32
  }
  func.func @transform_1(%arg0: i32, %arg1: i32, %arg2: i32) -> (i32, i32) {
    %c0_i32 = arith.constant 0 : i32
    return %arg2, %arg1 : i32, i32
  }
  func.func @transform_2(%arg0: i32, %arg1: i32, %arg2: i32) -> (i32, i32) {
    %c0_i32 = arith.constant 0 : i32
    %c0_i32_0 = arith.constant 0 : i32
    return %c0_i32, %arg1 : i32, i32
  }
  func.func @transform_3(%arg0: i32, %arg1: i32, %arg2: i32) -> (i32, i32) {
    %c0_i32 = arith.constant 0 : i32
    return %arg0, %arg1 : i32, i32
  }
}

module attributes {stable_mosaic.version = 11 : i64} {
  func.func @_mm_ktiled_kernel(%arg0: i32, %arg1: i32, %arg2: i32, %arg3: memref<16x384xbf16, #tpu.memory_space<vmem>>, %arg4: memref<384x128xbf16, #tpu.memory_space<vmem>>, %arg5: memref<1x128xf32, #tpu.memory_space<vmem>>, %arg6: memref<16x128xbf16, #tpu.memory_space<vmem>>, %arg7: memref<16x128xf32, #tpu.memory_space<vmem>>) attributes {dimension_semantics = [#tpu.dimension_semantics<parallel>, #tpu.dimension_semantics<parallel>, #tpu.dimension_semantics<arbitrary>], iteration_bounds = array<i64: 2, 1, 1>, scalar_prefetch = 0 : i64, scratch_operands = 1 : i64, tpu.core_type = #tpu.core_type<tc>, window_params = [{transform_indices = @transform_0, window_bounds = array<i64: 16, 384>}, {transform_indices = @transform_1, window_bounds = array<i64: 384, 128>}, {transform_indices = @transform_2, window_bounds = array<i64: 1, 128>}, {transform_indices = @transform_3, window_bounds = array<i64: 16, 128>}]} {
    %c0_i32 = arith.constant 0 : i32
    %0 = arith.cmpi eq, %arg2, %c0_i32 : i32
    %1 = arith.extui %0 : i1 to i32
    %c0_i32_0 = arith.constant 0 : i32
    %2 = arith.cmpi ne, %1, %c0_i32_0 : i32
    scf.if %2 {
      %cst_10 = arith.constant 0.000000e+00 : f32
      %12 = vector.broadcast %cst_10 : f32 to vector<16x128xf32>
      %c0_11 = arith.constant 0 : index
      %c0_12 = arith.constant 0 : index
      %13 = vector.load %arg7[%c0_11, %c0_12] : memref<16x128xf32, #tpu.memory_space<vmem>>, vector<16x128xf32>
      tpu.vector_store %arg7[%c0_11, %c0_12], %12 {strides = array<i32>} : memref<16x128xf32, #tpu.memory_space<vmem>>, vector<16x128xf32>,
    } else {
    }
    %c0 = arith.constant 0 : index
    %c0_1 = arith.constant 0 : index
    %3 = vector.load %arg7[%c0, %c0_1] : memref<16x128xf32, #tpu.memory_space<vmem>>, vector<16x128xf32>
    %c0_2 = arith.constant 0 : index
    %c0_3 = arith.constant 0 : index
    %4 = vector.load %arg3[%c0_2, %c0_3] : memref<16x384xbf16, #tpu.memory_space<vmem>>, vector<16x384xbf16>
    %c0_4 = arith.constant 0 : index
    %c0_5 = arith.constant 0 : index
    %5 = vector.load %arg4[%c0_4, %c0_5] : memref<384x128xbf16, #tpu.memory_space<vmem>>, vector<384x128xbf16>
    %cst = arith.constant dense<0.000000e+00> : vector<16x128xf32>
    %6 = tpu.matmul %4, %5, %cst {dimension_numbers = #tpu.dot_dimension_numbers<[1], [0], [0], [1], [0, 0, 1, 1], [], []>} : vector<16x384xbf16>, vector<384x128xbf16>, vector<16x128xf32> -> vector<16x128xf32>
    %7 = arith.addf %3, %6 : vector<16x128xf32>
    %c0_6 = arith.constant 0 : index
    %c0_7 = arith.constant 0 : index
    %8 = vector.load %arg7[%c0_6, %c0_7] : memref<16x128xf32, #tpu.memory_space<vmem>>, vector<16x128xf32>
    tpu.vector_store %arg7[%c0_6, %c0_7], %7 {strides = array<i32>} : memref<16x128xf32, #tpu.memory_space<vmem>>, vector<16x128xf32>,
    %c0_i32_8 = arith.constant 0 : i32
    %9 = arith.cmpi eq, %arg2, %c0_i32_8 : i32
    %10 = arith.extui %9 : i1 to i32
    %c0_i32_9 = arith.constant 0 : i32
    %11 = arith.cmpi ne, %10, %c0_i32_9 : i32
    scf.if %11 {
      %c0_10 = arith.constant 0 : index
      %c0_11 = arith.constant 0 : index
      %12 = vector.load %arg7[%c0_10, %c0_11] : memref<16x128xf32, #tpu.memory_space<vmem>>, vector<16x128xf32>
      %c0_12 = arith.constant 0 : index
      %c0_13 = arith.constant 0 : index
      %13 = vector.load %arg5[%c0_12, %c0_13] : memref<1x128xf32, #tpu.memory_space<vmem>>, vector<1x128xf32>
      %14 = vector.broadcast %13 : vector<1x128xf32> to vector<16x128xf32>
      %15 = arith.addf %12, %14 : vector<16x128xf32>
      %cst_14 = arith.constant 0.000000e+00 : f32
      %16 = vector.broadcast %cst_14 : f32 to vector<16x128xf32>
      %17 = arith.maximumf %15, %16 : vector<16x128xf32>
      %18 = arith.truncf %17 : vector<16x128xf32> to vector<16x128xbf16>
      %c0_15 = arith.constant 0 : index
      %c0_16 = arith.constant 0 : index
      %19 = vector.load %arg6[%c0_15, %c0_16] : memref<16x128xbf16, #tpu.memory_space<vmem>>, vector<16x128xbf16>
      tpu.vector_store %arg6[%c0_15, %c0_16], %18 {strides = array<i32>} : memref<16x128xbf16, #tpu.memory_space<vmem>>, vector<16x128xbf16>,
    } else {
    }
    return
  }
  func.func @transform_0(%arg0: i32, %arg1: i32, %arg2: i32) -> (i32, i32) {
    %c0_i32 = arith.constant 0 : i32
    return %arg0, %arg2 : i32, i32
  }
  func.func @transform_1(%arg0: i32, %arg1: i32, %arg2: i32) -> (i32, i32) {
    %c0_i32 = arith.constant 0 : i32
    return %arg2, %arg1 : i32, i32
  }
  func.func @transform_2(%arg0: i32, %arg1: i32, %arg2: i32) -> (i32, i32) {
    %c0_i32 = arith.constant 0 : i32
    %c0_i32_0 = arith.constant 0 : i32
    return %c0_i32, %arg1 : i32, i32
  }
  func.func @transform_3(%arg0: i32, %arg1: i32, %arg2: i32) -> (i32, i32) {
    %c0_i32 = arith.constant 0 : i32
    return %arg0, %arg1 : i32, i32
  }
}

module attributes {stable_mosaic.version = 11 : i64} {
  func.func @_mm_ktiled_kernel(%arg0: i32, %arg1: i32, %arg2: i32, %arg3: memref<8x384xbf16, #tpu.memory_space<vmem>>, %arg4: memref<384x128xbf16, #tpu.memory_space<vmem>>, %arg5: memref<1x128xf32, #tpu.memory_space<vmem>>, %arg6: memref<8x128xbf16, #tpu.memory_space<vmem>>, %arg7: memref<8x128xf32, #tpu.memory_space<vmem>>) attributes {dimension_semantics = [#tpu.dimension_semantics<parallel>, #tpu.dimension_semantics<parallel>, #tpu.dimension_semantics<arbitrary>], iteration_bounds = array<i64: 1, 1, 2>, scalar_prefetch = 0 : i64, scratch_operands = 1 : i64, tpu.core_type = #tpu.core_type<tc>, window_params = [{transform_indices = @transform_0, window_bounds = array<i64: 8, 384>}, {transform_indices = @transform_1, window_bounds = array<i64: 384, 128>}, {transform_indices = @transform_2, window_bounds = array<i64: 1, 128>}, {transform_indices = @transform_3, window_bounds = array<i64: 8, 128>}]} {
    %c0_i32 = arith.constant 0 : i32
    %0 = arith.cmpi eq, %arg2, %c0_i32 : i32
    %1 = arith.extui %0 : i1 to i32
    %c0_i32_0 = arith.constant 0 : i32
    %2 = arith.cmpi ne, %1, %c0_i32_0 : i32
    scf.if %2 {
      %cst_9 = arith.constant 0.000000e+00 : f32
      %12 = vector.broadcast %cst_9 : f32 to vector<8x128xf32>
      %c0_10 = arith.constant 0 : index
      %c0_11 = arith.constant 0 : index
      %13 = vector.load %arg7[%c0_10, %c0_11] : memref<8x128xf32, #tpu.memory_space<vmem>>, vector<8x128xf32>
      tpu.vector_store %arg7[%c0_10, %c0_11], %12 {strides = array<i32>} : memref<8x128xf32, #tpu.memory_space<vmem>>, vector<8x128xf32>,
    } else {
    }
    %c0 = arith.constant 0 : index
    %c0_1 = arith.constant 0 : index
    %3 = vector.load %arg7[%c0, %c0_1] : memref<8x128xf32, #tpu.memory_space<vmem>>, vector<8x128xf32>
    %c0_2 = arith.constant 0 : index
    %c0_3 = arith.constant 0 : index
    %4 = vector.load %arg3[%c0_2, %c0_3] : memref<8x384xbf16, #tpu.memory_space<vmem>>, vector<8x384xbf16>
    %c0_4 = arith.constant 0 : index
    %c0_5 = arith.constant 0 : index
    %5 = vector.load %arg4[%c0_4, %c0_5] : memref<384x128xbf16, #tpu.memory_space<vmem>>, vector<384x128xbf16>
    %cst = arith.constant dense<0.000000e+00> : vector<8x128xf32>
    %6 = tpu.matmul %4, %5, %cst {dimension_numbers = #tpu.dot_dimension_numbers<[1], [0], [0], [1], [0, 0, 1, 1], [], []>} : vector<8x384xbf16>, vector<384x128xbf16>, vector<8x128xf32> -> vector<8x128xf32>
    %7 = arith.addf %3, %6 : vector<8x128xf32>
    %c0_6 = arith.constant 0 : index
    %c0_7 = arith.constant 0 : index
    %8 = vector.load %arg7[%c0_6, %c0_7] : memref<8x128xf32, #tpu.memory_space<vmem>>, vector<8x128xf32>
    tpu.vector_store %arg7[%c0_6, %c0_7], %7 {strides = array<i32>} : memref<8x128xf32, #tpu.memory_space<vmem>>, vector<8x128xf32>,
    %c1_i32 = arith.constant 1 : i32
    %9 = arith.cmpi eq, %arg2, %c1_i32 : i32
    %10 = arith.extui %9 : i1 to i32
    %c0_i32_8 = arith.constant 0 : i32
    %11 = arith.cmpi ne, %10, %c0_i32_8 : i32
    scf.if %11 {
      %c0_9 = arith.constant 0 : index
      %c0_10 = arith.constant 0 : index
      %12 = vector.load %arg7[%c0_9, %c0_10] : memref<8x128xf32, #tpu.memory_space<vmem>>, vector<8x128xf32>
      %c0_11 = arith.constant 0 : index
      %c0_12 = arith.constant 0 : index
      %13 = vector.load %arg5[%c0_11, %c0_12] : memref<1x128xf32, #tpu.memory_space<vmem>>, vector<1x128xf32>
      %14 = vector.broadcast %13 : vector<1x128xf32> to vector<8x128xf32>
      %15 = arith.addf %12, %14 : vector<8x128xf32>
      %cst_13 = arith.constant 0.000000e+00 : f32
      %16 = vector.broadcast %cst_13 : f32 to vector<8x128xf32>
      %17 = arith.maximumf %15, %16 : vector<8x128xf32>
      %18 = arith.truncf %17 : vector<8x128xf32> to vector<8x128xbf16>
      %c0_14 = arith.constant 0 : index
      %c0_15 = arith.constant 0 : index
      %19 = vector.load %arg6[%c0_14, %c0_15] : memref<8x128xbf16, #tpu.memory_space<vmem>>, vector<8x128xbf16>
      tpu.vector_store %arg6[%c0_14, %c0_15], %18 {strides = array<i32>} : memref<8x128xbf16, #tpu.memory_space<vmem>>, vector<8x128xbf16>,
    } else {
    }
    return
  }
  func.func @transform_0(%arg0: i32, %arg1: i32, %arg2: i32) -> (i32, i32) {
    %c0_i32 = arith.constant 0 : i32
    return %arg0, %arg2 : i32, i32
  }
  func.func @transform_1(%arg0: i32, %arg1: i32, %arg2: i32) -> (i32, i32) {
    %c0_i32 = arith.constant 0 : i32
    return %arg2, %arg1 : i32, i32
  }
  func.func @transform_2(%arg0: i32, %arg1: i32, %arg2: i32) -> (i32, i32) {
    %c0_i32 = arith.constant 0 : i32
    %c0_i32_0 = arith.constant 0 : i32
    return %c0_i32, %arg1 : i32, i32
  }
  func.func @transform_3(%arg0: i32, %arg1: i32, %arg2: i32) -> (i32, i32) {
    %c0_i32 = arith.constant 0 : i32
    return %arg0, %arg1 : i32, i32
  }
}

module attributes {stable_mosaic.version = 11 : i64} {
  func.func @_mm_ktiled_kernel(%arg0: i32, %arg1: i32, %arg2: i32, %arg3: memref<8x384xbf16, #tpu.memory_space<vmem>>, %arg4: memref<384x128xbf16, #tpu.memory_space<vmem>>, %arg5: memref<1x128xf32, #tpu.memory_space<vmem>>, %arg6: memref<8x128xbf16, #tpu.memory_space<vmem>>, %arg7: memref<8x128xf32, #tpu.memory_space<vmem>>) attributes {dimension_semantics = [#tpu.dimension_semantics<parallel>, #tpu.dimension_semantics<parallel>, #tpu.dimension_semantics<arbitrary>], iteration_bounds = array<i64: 1, 1, 3>, scalar_prefetch = 0 : i64, scratch_operands = 1 : i64, tpu.core_type = #tpu.core_type<tc>, window_params = [{transform_indices = @transform_0, window_bounds = array<i64: 8, 384>}, {transform_indices = @transform_1, window_bounds = array<i64: 384, 128>}, {transform_indices = @transform_2, window_bounds = array<i64: 1, 128>}, {transform_indices = @transform_3, window_bounds = array<i64: 8, 128>}]} {
    %c0_i32 = arith.constant 0 : i32
    %0 = arith.cmpi eq, %arg2, %c0_i32 : i32
    %1 = arith.extui %0 : i1 to i32
    %c0_i32_0 = arith.constant 0 : i32
    %2 = arith.cmpi ne, %1, %c0_i32_0 : i32
    scf.if %2 {
      %cst_9 = arith.constant 0.000000e+00 : f32
      %12 = vector.broadcast %cst_9 : f32 to vector<8x128xf32>
      %c0_10 = arith.constant 0 : index
      %c0_11 = arith.constant 0 : index
      %13 = vector.load %arg7[%c0_10, %c0_11] : memref<8x128xf32, #tpu.memory_space<vmem>>, vector<8x128xf32>
      tpu.vector_store %arg7[%c0_10, %c0_11], %12 {strides = array<i32>} : memref<8x128xf32, #tpu.memory_space<vmem>>, vector<8x128xf32>,
    } else {
    }
    %c0 = arith.constant 0 : index
    %c0_1 = arith.constant 0 : index
    %3 = vector.load %arg7[%c0, %c0_1] : memref<8x128xf32, #tpu.memory_space<vmem>>, vector<8x128xf32>
    %c0_2 = arith.constant 0 : index
    %c0_3 = arith.constant 0 : index
    %4 = vector.load %arg3[%c0_2, %c0_3] : memref<8x384xbf16, #tpu.memory_space<vmem>>, vector<8x384xbf16>
    %c0_4 = arith.constant 0 : index
    %c0_5 = arith.constant 0 : index
    %5 = vector.load %arg4[%c0_4, %c0_5] : memref<384x128xbf16, #tpu.memory_space<vmem>>, vector<384x128xbf16>
    %cst = arith.constant dense<0.000000e+00> : vector<8x128xf32>
    %6 = tpu.matmul %4, %5, %cst {dimension_numbers = #tpu.dot_dimension_numbers<[1], [0], [0], [1], [0, 0, 1, 1], [], []>} : vector<8x384xbf16>, vector<384x128xbf16>, vector<8x128xf32> -> vector<8x128xf32>
    %7 = arith.addf %3, %6 : vector<8x128xf32>
    %c0_6 = arith.constant 0 : index
    %c0_7 = arith.constant 0 : index
    %8 = vector.load %arg7[%c0_6, %c0_7] : memref<8x128xf32, #tpu.memory_space<vmem>>, vector<8x128xf32>
    tpu.vector_store %arg7[%c0_6, %c0_7], %7 {strides = array<i32>} : memref<8x128xf32, #tpu.memory_space<vmem>>, vector<8x128xf32>,
    %c2_i32 = arith.constant 2 : i32
    %9 = arith.cmpi eq, %arg2, %c2_i32 : i32
    %10 = arith.extui %9 : i1 to i32
    %c0_i32_8 = arith.constant 0 : i32
    %11 = arith.cmpi ne, %10, %c0_i32_8 : i32
    scf.if %11 {
      %c0_9 = arith.constant 0 : index
      %c0_10 = arith.constant 0 : index
      %12 = vector.load %arg7[%c0_9, %c0_10] : memref<8x128xf32, #tpu.memory_space<vmem>>, vector<8x128xf32>
      %c0_11 = arith.constant 0 : index
      %c0_12 = arith.constant 0 : index
      %13 = vector.load %arg5[%c0_11, %c0_12] : memref<1x128xf32, #tpu.memory_space<vmem>>, vector<1x128xf32>
      %14 = vector.broadcast %13 : vector<1x128xf32> to vector<8x128xf32>
      %15 = arith.addf %12, %14 : vector<8x128xf32>
      %cst_13 = arith.constant 0.000000e+00 : f32
      %16 = vector.broadcast %cst_13 : f32 to vector<8x128xf32>
      %17 = arith.maximumf %15, %16 : vector<8x128xf32>
      %18 = arith.truncf %17 : vector<8x128xf32> to vector<8x128xbf16>
      %c0_14 = arith.constant 0 : index
      %c0_15 = arith.constant 0 : index
      %19 = vector.load %arg6[%c0_14, %c0_15] : memref<8x128xbf16, #tpu.memory_space<vmem>>, vector<8x128xbf16>
      tpu.vector_store %arg6[%c0_14, %c0_15], %18 {strides = array<i32>} : memref<8x128xbf16, #tpu.memory_space<vmem>>, vector<8x128xbf16>,
    } else {
    }
    return
  }
  func.func @transform_0(%arg0: i32, %arg1: i32, %arg2: i32) -> (i32, i32) {
    %c0_i32 = arith.constant 0 : i32
    return %arg0, %arg2 : i32, i32
  }
  func.func @transform_1(%arg0: i32, %arg1: i32, %arg2: i32) -> (i32, i32) {
    %c0_i32 = arith.constant 0 : i32
    return %arg2, %arg1 : i32, i32
  }
  func.func @transform_2(%arg0: i32, %arg1: i32, %arg2: i32) -> (i32, i32) {
    %c0_i32 = arith.constant 0 : i32
    %c0_i32_0 = arith.constant 0 : i32
    return %c0_i32, %arg1 : i32, i32
  }
  func.func @transform_3(%arg0: i32, %arg1: i32, %arg2: i32) -> (i32, i32) {
    %c0_i32 = arith.constant 0 : i32
    return %arg0, %arg1 : i32, i32
  }
}

module attributes {stable_mosaic.version = 11 : i64} {
  func.func @_mm_ktiled_kernel(%arg0: i32, %arg1: i32, %arg2: i32, %arg3: memref<8x384xbf16, #tpu.memory_space<vmem>>, %arg4: memref<384x128xbf16, #tpu.memory_space<vmem>>, %arg5: memref<1x128xf32, #tpu.memory_space<vmem>>, %arg6: memref<8x128xbf16, #tpu.memory_space<vmem>>, %arg7: memref<8x128xbf16, #tpu.memory_space<vmem>>, %arg8: memref<8x128xbf16, #tpu.memory_space<vmem>>, %arg9: memref<8x128xf32, #tpu.memory_space<vmem>>) attributes {dimension_semantics = [#tpu.dimension_semantics<parallel>, #tpu.dimension_semantics<parallel>, #tpu.dimension_semantics<arbitrary>], iteration_bounds = array<i64: 1, 1, 3>, scalar_prefetch = 0 : i64, scratch_operands = 1 : i64, tpu.core_type = #tpu.core_type<tc>, window_params = [{transform_indices = @transform_0, window_bounds = array<i64: 8, 384>}, {transform_indices = @transform_1, window_bounds = array<i64: 384, 128>}, {transform_indices = @transform_2, window_bounds = array<i64: 1, 128>}, {transform_indices = @transform_3, window_bounds = array<i64: 8, 128>}, {transform_indices = @transform_4, window_bounds = array<i64: 8, 128>}, {transform_indices = @transform_5, window_bounds = array<i64: 8, 128>}]} {
    %c0_i32 = arith.constant 0 : i32
    %0 = arith.cmpi eq, %arg2, %c0_i32 : i32
    %1 = arith.extui %0 : i1 to i32
    %c0_i32_0 = arith.constant 0 : i32
    %2 = arith.cmpi ne, %1, %c0_i32_0 : i32
    scf.if %2 {
      %cst_9 = arith.constant 0.000000e+00 : f32
      %12 = vector.broadcast %cst_9 : f32 to vector<8x128xf32>
      %c0_10 = arith.constant 0 : index
      %c0_11 = arith.constant 0 : index
      %13 = vector.load %arg9[%c0_10, %c0_11] : memref<8x128xf32, #tpu.memory_space<vmem>>, vector<8x128xf32>
      tpu.vector_store %arg9[%c0_10, %c0_11], %12 {strides = array<i32>} : memref<8x128xf32, #tpu.memory_space<vmem>>, vector<8x128xf32>,
    } else {
    }
    %c0 = arith.constant 0 : index
    %c0_1 = arith.constant 0 : index
    %3 = vector.load %arg9[%c0, %c0_1] : memref<8x128xf32, #tpu.memory_space<vmem>>, vector<8x128xf32>
    %c0_2 = arith.constant 0 : index
    %c0_3 = arith.constant 0 : index
    %4 = vector.load %arg3[%c0_2, %c0_3] : memref<8x384xbf16, #tpu.memory_space<vmem>>, vector<8x384xbf16>
    %c0_4 = arith.constant 0 : index
    %c0_5 = arith.constant 0 : index
    %5 = vector.load %arg4[%c0_4, %c0_5] : memref<384x128xbf16, #tpu.memory_space<vmem>>, vector<384x128xbf16>
    %cst = arith.constant dense<0.000000e+00> : vector<8x128xf32>
    %6 = tpu.matmul %4, %5, %cst {dimension_numbers = #tpu.dot_dimension_numbers<[1], [0], [0], [1], [0, 0, 1, 1], [], []>} : vector<8x384xbf16>, vector<384x128xbf16>, vector<8x128xf32> -> vector<8x128xf32>
    %7 = arith.addf %3, %6 : vector<8x128xf32>
    %c0_6 = arith.constant 0 : index
    %c0_7 = arith.constant 0 : index
    %8 = vector.load %arg9[%c0_6, %c0_7] : memref<8x128xf32, #tpu.memory_space<vmem>>, vector<8x128xf32>
    tpu.vector_store %arg9[%c0_6, %c0_7], %7 {strides = array<i32>} : memref<8x128xf32, #tpu.memory_space<vmem>>, vector<8x128xf32>,
    %c2_i32 = arith.constant 2 : i32
    %9 = arith.cmpi eq, %arg2, %c2_i32 : i32
    %10 = arith.extui %9 : i1 to i32
    %c0_i32_8 = arith.constant 0 : i32
    %11 = arith.cmpi ne, %10, %c0_i32_8 : i32
    scf.if %11 {
      %c0_9 = arith.constant 0 : index
      %c0_10 = arith.constant 0 : index
      %12 = vector.load %arg9[%c0_9, %c0_10] : memref<8x128xf32, #tpu.memory_space<vmem>>, vector<8x128xf32>
      %c0_11 = arith.constant 0 : index
      %c0_12 = arith.constant 0 : index
      %13 = vector.load %arg5[%c0_11, %c0_12] : memref<1x128xf32, #tpu.memory_space<vmem>>, vector<1x128xf32>
      %14 = vector.broadcast %13 : vector<1x128xf32> to vector<8x128xf32>
      %15 = arith.addf %12, %14 : vector<8x128xf32>
      %c0_13 = arith.constant 0 : index
      %c0_14 = arith.constant 0 : index
      %16 = vector.load %arg6[%c0_13, %c0_14] : memref<8x128xbf16, #tpu.memory_space<vmem>>, vector<8x128xbf16>
      %17 = arith.extf %16 : vector<8x128xbf16> to vector<8x128xf32>
      %18 = arith.addf %15, %17 : vector<8x128xf32>
      %c0_15 = arith.constant 0 : index
      %c0_16 = arith.constant 0 : index
      %19 = vector.load %arg7[%c0_15, %c0_16] : memref<8x128xbf16, #tpu.memory_space<vmem>>, vector<8x128xbf16>
      %20 = arith.extf %19 : vector<8x128xbf16> to vector<8x128xf32>
      %21 = arith.addf %18, %20 : vector<8x128xf32>
      %22 = arith.truncf %21 : vector<8x128xf32> to vector<8x128xbf16>
      %c0_17 = arith.constant 0 : index
      %c0_18 = arith.constant 0 : index
      %23 = vector.load %arg8[%c0_17, %c0_18] : memref<8x128xbf16, #tpu.memory_space<vmem>>, vector<8x128xbf16>
      tpu.vector_store %arg8[%c0_17, %c0_18], %22 {strides = array<i32>} : memref<8x128xbf16, #tpu.memory_space<vmem>>, vector<8x128xbf16>,
    } else {
    }
    return
  }
  func.func @transform_0(%arg0: i32, %arg1: i32, %arg2: i32) -> (i32, i32) {
    %c0_i32 = arith.constant 0 : i32
    return %arg0, %arg2 : i32, i32
  }
  func.func @transform_1(%arg0: i32, %arg1: i32, %arg2: i32) -> (i32, i32) {
    %c0_i32 = arith.constant 0 : i32
    return %arg2, %arg1 : i32, i32
  }
  func.func @transform_2(%arg0: i32, %arg1: i32, %arg2: i32) -> (i32, i32) {
    %c0_i32 = arith.constant 0 : i32
    %c0_i32_0 = arith.constant 0 : i32
    return %c0_i32, %arg1 : i32, i32
  }
  func.func @transform_3(%arg0: i32, %arg1: i32, %arg2: i32) -> (i32, i32) {
    %c0_i32 = arith.constant 0 : i32
    return %arg0, %arg1 : i32, i32
  }
  func.func @transform_4(%arg0: i32, %arg1: i32, %arg2: i32) -> (i32, i32) {
    %c0_i32 = arith.constant 0 : i32
    return %arg0, %arg1 : i32, i32
  }
  func.func @transform_5(%arg0: i32, %arg1: i32, %arg2: i32) -> (i32, i32) {
    %c0_i32 = arith.constant 0 : i32
    return %arg0, %arg1 : i32, i32
  }
}

module attributes {stable_mosaic.version = 11 : i64} {
  func.func @_mm_ktiled_kernel(%arg0: i32, %arg1: i32, %arg2: i32, %arg3: memref<8x384xbf16, #tpu.memory_space<vmem>>, %arg4: memref<384x128xbf16, #tpu.memory_space<vmem>>, %arg5: memref<1x128xf32, #tpu.memory_space<vmem>>, %arg6: memref<8x128xbf16, #tpu.memory_space<vmem>>, %arg7: memref<8x128xbf16, #tpu.memory_space<vmem>>, %arg8: memref<8x128xf32, #tpu.memory_space<vmem>>) attributes {dimension_semantics = [#tpu.dimension_semantics<parallel>, #tpu.dimension_semantics<parallel>, #tpu.dimension_semantics<arbitrary>], iteration_bounds = array<i64: 1, 1, 3>, scalar_prefetch = 0 : i64, scratch_operands = 1 : i64, tpu.core_type = #tpu.core_type<tc>, window_params = [{transform_indices = @transform_0, window_bounds = array<i64: 8, 384>}, {transform_indices = @transform_1, window_bounds = array<i64: 384, 128>}, {transform_indices = @transform_2, window_bounds = array<i64: 1, 128>}, {transform_indices = @transform_3, window_bounds = array<i64: 8, 128>}, {transform_indices = @transform_4, window_bounds = array<i64: 8, 128>}]} {
    %c0_i32 = arith.constant 0 : i32
    %0 = arith.cmpi eq, %arg2, %c0_i32 : i32
    %1 = arith.extui %0 : i1 to i32
    %c0_i32_0 = arith.constant 0 : i32
    %2 = arith.cmpi ne, %1, %c0_i32_0 : i32
    scf.if %2 {
      %cst_9 = arith.constant 0.000000e+00 : f32
      %12 = vector.broadcast %cst_9 : f32 to vector<8x128xf32>
      %c0_10 = arith.constant 0 : index
      %c0_11 = arith.constant 0 : index
      %13 = vector.load %arg8[%c0_10, %c0_11] : memref<8x128xf32, #tpu.memory_space<vmem>>, vector<8x128xf32>
      tpu.vector_store %arg8[%c0_10, %c0_11], %12 {strides = array<i32>} : memref<8x128xf32, #tpu.memory_space<vmem>>, vector<8x128xf32>,
    } else {
    }
    %c0 = arith.constant 0 : index
    %c0_1 = arith.constant 0 : index
    %3 = vector.load %arg8[%c0, %c0_1] : memref<8x128xf32, #tpu.memory_space<vmem>>, vector<8x128xf32>
    %c0_2 = arith.constant 0 : index
    %c0_3 = arith.constant 0 : index
    %4 = vector.load %arg3[%c0_2, %c0_3] : memref<8x384xbf16, #tpu.memory_space<vmem>>, vector<8x384xbf16>
    %c0_4 = arith.constant 0 : index
    %c0_5 = arith.constant 0 : index
    %5 = vector.load %arg4[%c0_4, %c0_5] : memref<384x128xbf16, #tpu.memory_space<vmem>>, vector<384x128xbf16>
    %cst = arith.constant dense<0.000000e+00> : vector<8x128xf32>
    %6 = tpu.matmul %4, %5, %cst {dimension_numbers = #tpu.dot_dimension_numbers<[1], [0], [0], [1], [0, 0, 1, 1], [], []>} : vector<8x384xbf16>, vector<384x128xbf16>, vector<8x128xf32> -> vector<8x128xf32>
    %7 = arith.addf %3, %6 : vector<8x128xf32>
    %c0_6 = arith.constant 0 : index
    %c0_7 = arith.constant 0 : index
    %8 = vector.load %arg8[%c0_6, %c0_7] : memref<8x128xf32, #tpu.memory_space<vmem>>, vector<8x128xf32>
    tpu.vector_store %arg8[%c0_6, %c0_7], %7 {strides = array<i32>} : memref<8x128xf32, #tpu.memory_space<vmem>>, vector<8x128xf32>,
    %c2_i32 = arith.constant 2 : i32
    %9 = arith.cmpi eq, %arg2, %c2_i32 : i32
    %10 = arith.extui %9 : i1 to i32
    %c0_i32_8 = arith.constant 0 : i32
    %11 = arith.cmpi ne, %10, %c0_i32_8 : i32
    scf.if %11 {
      %c0_9 = arith.constant 0 : index
      %c0_10 = arith.constant 0 : index
      %12 = vector.load %arg8[%c0_9, %c0_10] : memref<8x128xf32, #tpu.memory_space<vmem>>, vector<8x128xf32>
      %c0_11 = arith.constant 0 : index
      %c0_12 = arith.constant 0 : index
      %13 = vector.load %arg5[%c0_11, %c0_12] : memref<1x128xf32, #tpu.memory_space<vmem>>, vector<1x128xf32>
      %14 = vector.broadcast %13 : vector<1x128xf32> to vector<8x128xf32>
      %15 = arith.addf %12, %14 : vector<8x128xf32>
      %c0_13 = arith.constant 0 : index
      %c0_14 = arith.constant 0 : index
      %16 = vector.load %arg6[%c0_13, %c0_14] : memref<8x128xbf16, #tpu.memory_space<vmem>>, vector<8x128xbf16>
      %17 = arith.extf %16 : vector<8x128xbf16> to vector<8x128xf32>
      %18 = arith.addf %15, %17 : vector<8x128xf32>
      %19 = arith.truncf %18 : vector<8x128xf32> to vector<8x128xbf16>
      %c0_15 = arith.constant 0 : index
      %c0_16 = arith.constant 0 : index
      %20 = vector.load %arg7[%c0_15, %c0_16] : memref<8x128xbf16, #tpu.memory_space<vmem>>, vector<8x128xbf16>
      tpu.vector_store %arg7[%c0_15, %c0_16], %19 {strides = array<i32>} : memref<8x128xbf16, #tpu.memory_space<vmem>>, vector<8x128xbf16>,
    } else {
    }
    return
  }
  func.func @transform_0(%arg0: i32, %arg1: i32, %arg2: i32) -> (i32, i32) {
    %c0_i32 = arith.constant 0 : i32
    return %arg0, %arg2 : i32, i32
  }
  func.func @transform_1(%arg0: i32, %arg1: i32, %arg2: i32) -> (i32, i32) {
    %c0_i32 = arith.constant 0 : i32
    return %arg2, %arg1 : i32, i32
  }
  func.func @transform_2(%arg0: i32, %arg1: i32, %arg2: i32) -> (i32, i32) {
    %c0_i32 = arith.constant 0 : i32
    %c0_i32_0 = arith.constant 0 : i32
    return %c0_i32, %arg1 : i32, i32
  }
  func.func @transform_3(%arg0: i32, %arg1: i32, %arg2: i32) -> (i32, i32) {
    %c0_i32 = arith.constant 0 : i32
    return %arg0, %arg1 : i32, i32
  }
  func.func @transform_4(%arg0: i32, %arg1: i32, %arg2: i32) -> (i32, i32) {
    %c0_i32 = arith.constant 0 : i32
    return %arg0, %arg1 : i32, i32
  }
}

module attributes {stable_mosaic.version = 11 : i64} {
  func.func @_mm_multi_kernel(%arg0: i32, %arg1: memref<8x640xbf16, #tpu.memory_space<vmem>>, %arg2: memref<8x640xbf16, #tpu.memory_space<vmem>>, %arg3: memref<640x128xbf16, #tpu.memory_space<vmem>>, %arg4: memref<640x128xbf16, #tpu.memory_space<vmem>>, %arg5: memref<1x128xf32, #tpu.memory_space<vmem>>, %arg6: memref<8x128xbf16, #tpu.memory_space<vmem>>) attributes {dimension_semantics = [#tpu.dimension_semantics<parallel>], iteration_bounds = array<i64: 1>, scalar_prefetch = 0 : i64, scratch_operands = 0 : i64, tpu.core_type = #tpu.core_type<tc>, window_params = [{transform_indices = @transform_0, window_bounds = array<i64: 8, 640>}, {transform_indices = @transform_1, window_bounds = array<i64: 8, 640>}, {pipeline_mode = #tpu.pipeline_mode<synchronous>, transform_indices = @transform_2, window_bounds = array<i64: 640, 128>}, {pipeline_mode = #tpu.pipeline_mode<synchronous>, transform_indices = @transform_3, window_bounds = array<i64: 640, 128>}, {pipeline_mode = #tpu.pipeline_mode<synchronous>, transform_indices = @transform_4, window_bounds = array<i64: 1, 128>}, {transform_indices = @transform_5, window_bounds = array<i64: 8, 128>}]} {
    %c0 = arith.constant 0 : index
    %c0_0 = arith.constant 0 : index
    %0 = vector.load %arg1[%c0, %c0_0] : memref<8x640xbf16, #tpu.memory_space<vmem>>, vector<8x640xbf16>
    %c0_1 = arith.constant 0 : index
    %c0_2 = arith.constant 0 : index
    %1 = vector.load %arg3[%c0_1, %c0_2] : memref<640x128xbf16, #tpu.memory_space<vmem>>, vector<640x128xbf16>
    %cst = arith.constant dense<0.000000e+00> : vector<8x128xf32>
    %2 = tpu.matmul %0, %1, %cst {dimension_numbers = #tpu.dot_dimension_numbers<[1], [0], [0], [1], [0, 0, 1, 1], [], []>} : vector<8x640xbf16>, vector<640x128xbf16>, vector<8x128xf32> -> vector<8x128xf32>
    %c0_3 = arith.constant 0 : index
    %c0_4 = arith.constant 0 : index
    %3 = vector.load %arg2[%c0_3, %c0_4] : memref<8x640xbf16, #tpu.memory_space<vmem>>, vector<8x640xbf16>
    %c0_5 = arith.constant 0 : index
    %c0_6 = arith.constant 0 : index
    %4 = vector.load %arg4[%c0_5, %c0_6] : memref<640x128xbf16, #tpu.memory_space<vmem>>, vector<640x128xbf16>
    %cst_7 = arith.constant dense<0.000000e+00> : vector<8x128xf32>
    %5 = tpu.matmul %3, %4, %cst_7 {dimension_numbers = #tpu.dot_dimension_numbers<[1], [0], [0], [1], [0, 0, 1, 1], [], []>} : vector<8x640xbf16>, vector<640x128xbf16>, vector<8x128xf32> -> vector<8x128xf32>
    %6 = arith.addf %2, %5 : vector<8x128xf32>
    %c0_8 = arith.constant 0 : index
    %c0_9 = arith.constant 0 : index
    %7 = vector.load %arg5[%c0_8, %c0_9] : memref<1x128xf32, #tpu.memory_space<vmem>>, vector<1x128xf32>
    %8 = vector.broadcast %7 : vector<1x128xf32> to vector<8x128xf32>
    %9 = arith.addf %6, %8 : vector<8x128xf32>
    %cst_10 = arith.constant 0.000000e+00 : f32
    %10 = vector.broadcast %cst_10 : f32 to vector<8x128xf32>
    %11 = arith.maximumf %9, %10 : vector<8x128xf32>
    %12 = arith.truncf %11 : vector<8x128xf32> to vector<8x128xbf16>
    %c0_11 = arith.constant 0 : index
    %c0_12 = arith.constant 0 : index
    %13 = vector.load %arg6[%c0_11, %c0_12] : memref<8x128xbf16, #tpu.memory_space<vmem>>, vector<8x128xbf16>
    tpu.vector_store %arg6[%c0_11, %c0_12], %12 {strides = array<i32>} : memref<8x128xbf16, #tpu.memory_space<vmem>>, vector<8x128xbf16>,
    return
  }
  func.func @transform_0(%arg0: i32) -> (i32, i32) {
    %c0_i32 = arith.constant 0 : i32
    %c0_i32_0 = arith.constant 0 : i32
    return %arg0, %c0_i32 : i32, i32
  }
  func.func @transform_1(%arg0: i32) -> (i32, i32) {
    %c0_i32 = arith.constant 0 : i32
    %c0_i32_0 = arith.constant 0 : i32
    return %arg0, %c0_i32 : i32, i32
  }
  func.func @transform_2(%arg0: i32) -> (i32, i32) {
    %c0_i32 = arith.constant 0 : i32
    %c0_i32_0 = arith.constant 0 : i32
    %c0_i32_1 = arith.constant 0 : i32
    return %c0_i32, %c0_i32_0 : i32, i32
  }
  func.func @transform_3(%arg0: i32) -> (i32, i32) {
    %c0_i32 = arith.constant 0 : i32
    %c0_i32_0 = arith.constant 0 : i32
    %c0_i32_1 = arith.constant 0 : i32
    return %c0_i32, %c0_i32_0 : i32, i32
  }
  func.func @transform_4(%arg0: i32) -> (i32, i32) {
    %c0_i32 = arith.constant 0 : i32
    %c0_i32_0 = arith.constant 0 : i32
    %c0_i32_1 = arith.constant 0 : i32
    return %c0_i32, %c0_i32_0 : i32, i32
  }
  func.func @transform_5(%arg0: i32) -> (i32, i32) {
    %c0_i32 = arith.constant 0 : i32
    %c0_i32_0 = arith.constant 0 : i32
    return %arg0, %c0_i32 : i32, i32
  }
}

module attributes {stable_mosaic.version = 11 : i64} {
  func.func @_mm_multi_kernel(%arg0: i32, %arg1: memref<8x256xbf16, #tpu.memory_space<vmem>>, %arg2: memref<8x256xbf16, #tpu.memory_space<vmem>>, %arg3: memref<256x128xbf16, #tpu.memory_space<vmem>>, %arg4: memref<256x128xbf16, #tpu.memory_space<vmem>>, %arg5: memref<1x128xf32, #tpu.memory_space<vmem>>, %arg6: memref<8x128xbf16, #tpu.memory_space<vmem>>) attributes {dimension_semantics = [#tpu.dimension_semantics<parallel>], iteration_bounds = array<i64: 1>, scalar_prefetch = 0 : i64, scratch_operands = 0 : i64, tpu.core_type = #tpu.core_type<tc>, window_params = [{transform_indices = @transform_0, window_bounds = array<i64: 8, 256>}, {transform_indices = @transform_1, window_bounds = array<i64: 8, 256>}, {pipeline_mode = #tpu.pipeline_mode<synchronous>, transform_indices = @transform_2, window_bounds = array<i64: 256, 128>}, {pipeline_mode = #tpu.pipeline_mode<synchronous>, transform_indices = @transform_3, window_bounds = array<i64: 256, 128>}, {pipeline_mode = #tpu.pipeline_mode<synchronous>, transform_indices = @transform_4, window_bounds = array<i64: 1, 128>}, {transform_indices = @transform_5, window_bounds = array<i64: 8, 128>}]} {
    %c0 = arith.constant 0 : index
    %c0_0 = arith.constant 0 : index
    %0 = vector.load %arg1[%c0, %c0_0] : memref<8x256xbf16, #tpu.memory_space<vmem>>, vector<8x256xbf16>
    %c0_1 = arith.constant 0 : index
    %c0_2 = arith.constant 0 : index
    %1 = vector.load %arg3[%c0_1, %c0_2] : memref<256x128xbf16, #tpu.memory_space<vmem>>, vector<256x128xbf16>
    %cst = arith.constant dense<0.000000e+00> : vector<8x128xf32>
    %2 = tpu.matmul %0, %1, %cst {dimension_numbers = #tpu.dot_dimension_numbers<[1], [0], [0], [1], [0, 0, 1, 1], [], []>} : vector<8x256xbf16>, vector<256x128xbf16>, vector<8x128xf32> -> vector<8x128xf32>
    %c0_3 = arith.constant 0 : index
    %c0_4 = arith.constant 0 : index
    %3 = vector.load %arg2[%c0_3, %c0_4] : memref<8x256xbf16, #tpu.memory_space<vmem>>, vector<8x256xbf16>
    %c0_5 = arith.constant 0 : index
    %c0_6 = arith.constant 0 : index
    %4 = vector.load %arg4[%c0_5, %c0_6] : memref<256x128xbf16, #tpu.memory_space<vmem>>, vector<256x128xbf16>
    %cst_7 = arith.constant dense<0.000000e+00> : vector<8x128xf32>
    %5 = tpu.matmul %3, %4, %cst_7 {dimension_numbers = #tpu.dot_dimension_numbers<[1], [0], [0], [1], [0, 0, 1, 1], [], []>} : vector<8x256xbf16>, vector<256x128xbf16>, vector<8x128xf32> -> vector<8x128xf32>
    %6 = arith.addf %2, %5 : vector<8x128xf32>
    %c0_8 = arith.constant 0 : index
    %c0_9 = arith.constant 0 : index
    %7 = vector.load %arg5[%c0_8, %c0_9] : memref<1x128xf32, #tpu.memory_space<vmem>>, vector<1x128xf32>
    %8 = vector.broadcast %7 : vector<1x128xf32> to vector<8x128xf32>
    %9 = arith.addf %6, %8 : vector<8x128xf32>
    %cst_10 = arith.constant 0.000000e+00 : f32
    %10 = vector.broadcast %cst_10 : f32 to vector<8x128xf32>
    %11 = arith.maximumf %9, %10 : vector<8x128xf32>
    %12 = arith.truncf %11 : vector<8x128xf32> to vector<8x128xbf16>
    %c0_11 = arith.constant 0 : index
    %c0_12 = arith.constant 0 : index
    %13 = vector.load %arg6[%c0_11, %c0_12] : memref<8x128xbf16, #tpu.memory_space<vmem>>, vector<8x128xbf16>
    tpu.vector_store %arg6[%c0_11, %c0_12], %12 {strides = array<i32>} : memref<8x128xbf16, #tpu.memory_space<vmem>>, vector<8x128xbf16>,
    return
  }
  func.func @transform_0(%arg0: i32) -> (i32, i32) {
    %c0_i32 = arith.constant 0 : i32
    %c0_i32_0 = arith.constant 0 : i32
    return %arg0, %c0_i32 : i32, i32
  }
  func.func @transform_1(%arg0: i32) -> (i32, i32) {
    %c0_i32 = arith.constant 0 : i32
    %c0_i32_0 = arith.constant 0 : i32
    return %arg0, %c0_i32 : i32, i32
  }
  func.func @transform_2(%arg0: i32) -> (i32, i32) {
    %c0_i32 = arith.constant 0 : i32
    %c0_i32_0 = arith.constant 0 : i32
    %c0_i32_1 = arith.constant 0 : i32
    return %c0_i32, %c0_i32_0 : i32, i32
  }
  func.func @transform_3(%arg0: i32) -> (i32, i32) {
    %c0_i32 = arith.constant 0 : i32
    %c0_i32_0 = arith.constant 0 : i32
    %c0_i32_1 = arith.constant 0 : i32
    return %c0_i32, %c0_i32_0 : i32, i32
  }
  func.func @transform_4(%arg0: i32) -> (i32, i32) {
    %c0_i32 = arith.constant 0 : i32
    %c0_i32_0 = arith.constant 0 : i32
    %c0_i32_1 = arith.constant 0 : i32
    return %c0_i32, %c0_i32_0 : i32, i32
  }
  func.func @transform_5(%arg0: i32) -> (i32, i32) {
    %c0_i32 = arith.constant 0 : i32
    %c0_i32_0 = arith.constant 0 : i32
    return %arg0, %c0_i32 : i32, i32
  }
}

module attributes {stable_mosaic.version = 11 : i64} {
  func.func @_mm_multi_kernel(%arg0: i32, %arg1: memref<8x384xbf16, #tpu.memory_space<vmem>>, %arg2: memref<8x384xbf16, #tpu.memory_space<vmem>>, %arg3: memref<384x128xbf16, #tpu.memory_space<vmem>>, %arg4: memref<384x128xbf16, #tpu.memory_space<vmem>>, %arg5: memref<1x128xf32, #tpu.memory_space<vmem>>, %arg6: memref<8x128xbf16, #tpu.memory_space<vmem>>) attributes {dimension_semantics = [#tpu.dimension_semantics<parallel>], iteration_bounds = array<i64: 1>, scalar_prefetch = 0 : i64, scratch_operands = 0 : i64, tpu.core_type = #tpu.core_type<tc>, window_params = [{transform_indices = @transform_0, window_bounds = array<i64: 8, 384>}, {transform_indices = @transform_1, window_bounds = array<i64: 8, 384>}, {pipeline_mode = #tpu.pipeline_mode<synchronous>, transform_indices = @transform_2, window_bounds = array<i64: 384, 128>}, {pipeline_mode = #tpu.pipeline_mode<synchronous>, transform_indices = @transform_3, window_bounds = array<i64: 384, 128>}, {pipeline_mode = #tpu.pipeline_mode<synchronous>, transform_indices = @transform_4, window_bounds = array<i64: 1, 128>}, {transform_indices = @transform_5, window_bounds = array<i64: 8, 128>}]} {
    %c0 = arith.constant 0 : index
    %c0_0 = arith.constant 0 : index
    %0 = vector.load %arg1[%c0, %c0_0] : memref<8x384xbf16, #tpu.memory_space<vmem>>, vector<8x384xbf16>
    %c0_1 = arith.constant 0 : index
    %c0_2 = arith.constant 0 : index
    %1 = vector.load %arg3[%c0_1, %c0_2] : memref<384x128xbf16, #tpu.memory_space<vmem>>, vector<384x128xbf16>
    %cst = arith.constant dense<0.000000e+00> : vector<8x128xf32>
    %2 = tpu.matmul %0, %1, %cst {dimension_numbers = #tpu.dot_dimension_numbers<[1], [0], [0], [1], [0, 0, 1, 1], [], []>} : vector<8x384xbf16>, vector<384x128xbf16>, vector<8x128xf32> -> vector<8x128xf32>
    %c0_3 = arith.constant 0 : index
    %c0_4 = arith.constant 0 : index
    %3 = vector.load %arg2[%c0_3, %c0_4] : memref<8x384xbf16, #tpu.memory_space<vmem>>, vector<8x384xbf16>
    %c0_5 = arith.constant 0 : index
    %c0_6 = arith.constant 0 : index
    %4 = vector.load %arg4[%c0_5, %c0_6] : memref<384x128xbf16, #tpu.memory_space<vmem>>, vector<384x128xbf16>
    %cst_7 = arith.constant dense<0.000000e+00> : vector<8x128xf32>
    %5 = tpu.matmul %3, %4, %cst_7 {dimension_numbers = #tpu.dot_dimension_numbers<[1], [0], [0], [1], [0, 0, 1, 1], [], []>} : vector<8x384xbf16>, vector<384x128xbf16>, vector<8x128xf32> -> vector<8x128xf32>
    %6 = arith.addf %2, %5 : vector<8x128xf32>
    %c0_8 = arith.constant 0 : index
    %c0_9 = arith.constant 0 : index
    %7 = vector.load %arg5[%c0_8, %c0_9] : memref<1x128xf32, #tpu.memory_space<vmem>>, vector<1x128xf32>
    %8 = vector.broadcast %7 : vector<1x128xf32> to vector<8x128xf32>
    %9 = arith.addf %6, %8 : vector<8x128xf32>
    %cst_10 = arith.constant 0.000000e+00 : f32
    %10 = vector.broadcast %cst_10 : f32 to vector<8x128xf32>
    %11 = arith.maximumf %9, %10 : vector<8x128xf32>
    %12 = arith.truncf %11 : vector<8x128xf32> to vector<8x128xbf16>
    %c0_11 = arith.constant 0 : index
    %c0_12 = arith.constant 0 : index
    %13 = vector.load %arg6[%c0_11, %c0_12] : memref<8x128xbf16, #tpu.memory_space<vmem>>, vector<8x128xbf16>
    tpu.vector_store %arg6[%c0_11, %c0_12], %12 {strides = array<i32>} : memref<8x128xbf16, #tpu.memory_space<vmem>>, vector<8x128xbf16>,
    return
  }
  func.func @transform_0(%arg0: i32) -> (i32, i32) {
    %c0_i32 = arith.constant 0 : i32
    %c0_i32_0 = arith.constant 0 : i32
    return %arg0, %c0_i32 : i32, i32
  }
  func.func @transform_1(%arg0: i32) -> (i32, i32) {
    %c0_i32 = arith.constant 0 : i32
    %c0_i32_0 = arith.constant 0 : i32
    return %arg0, %c0_i32 : i32, i32
  }
  func.func @transform_2(%arg0: i32) -> (i32, i32) {
    %c0_i32 = arith.constant 0 : i32
    %c0_i32_0 = arith.constant 0 : i32
    %c0_i32_1 = arith.constant 0 : i32
    return %c0_i32, %c0_i32_0 : i32, i32
  }
  func.func @transform_3(%arg0: i32) -> (i32, i32) {
    %c0_i32 = arith.constant 0 : i32
    %c0_i32_0 = arith.constant 0 : i32
    %c0_i32_1 = arith.constant 0 : i32
    return %c0_i32, %c0_i32_0 : i32, i32
  }
  func.func @transform_4(%arg0: i32) -> (i32, i32) {
    %c0_i32 = arith.constant 0 : i32
    %c0_i32_0 = arith.constant 0 : i32
    %c0_i32_1 = arith.constant 0 : i32
    return %c0_i32, %c0_i32_0 : i32, i32
  }
  func.func @transform_5(%arg0: i32) -> (i32, i32) {
    %c0_i32 = arith.constant 0 : i32
    %c0_i32_0 = arith.constant 0 : i32
    return %arg0, %c0_i32 : i32, i32
  }
}

module attributes {stable_mosaic.version = 11 : i64} {
  func.func @_mm_multi_kernel(%arg0: i32, %arg1: memref<8x128xbf16, #tpu.memory_space<vmem>>, %arg2: memref<8x128xbf16, #tpu.memory_space<vmem>>, %arg3: memref<128x128xbf16, #tpu.memory_space<vmem>>, %arg4: memref<128x128xbf16, #tpu.memory_space<vmem>>, %arg5: memref<1x128xf32, #tpu.memory_space<vmem>>, %arg6: memref<8x128xbf16, #tpu.memory_space<vmem>>) attributes {dimension_semantics = [#tpu.dimension_semantics<parallel>], iteration_bounds = array<i64: 1>, scalar_prefetch = 0 : i64, scratch_operands = 0 : i64, tpu.core_type = #tpu.core_type<tc>, window_params = [{transform_indices = @transform_0, window_bounds = array<i64: 8, 128>}, {transform_indices = @transform_1, window_bounds = array<i64: 8, 128>}, {pipeline_mode = #tpu.pipeline_mode<synchronous>, transform_indices = @transform_2, window_bounds = array<i64: 128, 128>}, {pipeline_mode = #tpu.pipeline_mode<synchronous>, transform_indices = @transform_3, window_bounds = array<i64: 128, 128>}, {pipeline_mode = #tpu.pipeline_mode<synchronous>, transform_indices = @transform_4, window_bounds = array<i64: 1, 128>}, {transform_indices = @transform_5, window_bounds = array<i64: 8, 128>}]} {
    %c0 = arith.constant 0 : index
    %c0_0 = arith.constant 0 : index
    %0 = vector.load %arg1[%c0, %c0_0] : memref<8x128xbf16, #tpu.memory_space<vmem>>, vector<8x128xbf16>
    %c0_1 = arith.constant 0 : index
    %c0_2 = arith.constant 0 : index
    %1 = vector.load %arg3[%c0_1, %c0_2] : memref<128x128xbf16, #tpu.memory_space<vmem>>, vector<128x128xbf16>
    %cst = arith.constant dense<0.000000e+00> : vector<8x128xf32>
    %2 = tpu.matmul %0, %1, %cst {dimension_numbers = #tpu.dot_dimension_numbers<[1], [0], [0], [1], [0, 0, 1, 1], [], []>} : vector<8x128xbf16>, vector<128x128xbf16>, vector<8x128xf32> -> vector<8x128xf32>
    %c0_3 = arith.constant 0 : index
    %c0_4 = arith.constant 0 : index
    %3 = vector.load %arg2[%c0_3, %c0_4] : memref<8x128xbf16, #tpu.memory_space<vmem>>, vector<8x128xbf16>
    %c0_5 = arith.constant 0 : index
    %c0_6 = arith.constant 0 : index
    %4 = vector.load %arg4[%c0_5, %c0_6] : memref<128x128xbf16, #tpu.memory_space<vmem>>, vector<128x128xbf16>
    %cst_7 = arith.constant dense<0.000000e+00> : vector<8x128xf32>
    %5 = tpu.matmul %3, %4, %cst_7 {dimension_numbers = #tpu.dot_dimension_numbers<[1], [0], [0], [1], [0, 0, 1, 1], [], []>} : vector<8x128xbf16>, vector<128x128xbf16>, vector<8x128xf32> -> vector<8x128xf32>
    %6 = arith.addf %2, %5 : vector<8x128xf32>
    %c0_8 = arith.constant 0 : index
    %c0_9 = arith.constant 0 : index
    %7 = vector.load %arg5[%c0_8, %c0_9] : memref<1x128xf32, #tpu.memory_space<vmem>>, vector<1x128xf32>
    %8 = vector.broadcast %7 : vector<1x128xf32> to vector<8x128xf32>
    %9 = arith.addf %6, %8 : vector<8x128xf32>
    %cst_10 = arith.constant 0.000000e+00 : f32
    %10 = vector.broadcast %cst_10 : f32 to vector<8x128xf32>
    %11 = arith.maximumf %9, %10 : vector<8x128xf32>
    %12 = arith.truncf %11 : vector<8x128xf32> to vector<8x128xbf16>
    %c0_11 = arith.constant 0 : index
    %c0_12 = arith.constant 0 : index
    %13 = vector.load %arg6[%c0_11, %c0_12] : memref<8x128xbf16, #tpu.memory_space<vmem>>, vector<8x128xbf16>
    tpu.vector_store %arg6[%c0_11, %c0_12], %12 {strides = array<i32>} : memref<8x128xbf16, #tpu.memory_space<vmem>>, vector<8x128xbf16>,
    return
  }
  func.func @transform_0(%arg0: i32) -> (i32, i32) {
    %c0_i32 = arith.constant 0 : i32
    %c0_i32_0 = arith.constant 0 : i32
    return %arg0, %c0_i32 : i32, i32
  }
  func.func @transform_1(%arg0: i32) -> (i32, i32) {
    %c0_i32 = arith.constant 0 : i32
    %c0_i32_0 = arith.constant 0 : i32
    return %arg0, %c0_i32 : i32, i32
  }
  func.func @transform_2(%arg0: i32) -> (i32, i32) {
    %c0_i32 = arith.constant 0 : i32
    %c0_i32_0 = arith.constant 0 : i32
    %c0_i32_1 = arith.constant 0 : i32
    return %c0_i32, %c0_i32_0 : i32, i32
  }
  func.func @transform_3(%arg0: i32) -> (i32, i32) {
    %c0_i32 = arith.constant 0 : i32
    %c0_i32_0 = arith.constant 0 : i32
    %c0_i32_1 = arith.constant 0 : i32
    return %c0_i32, %c0_i32_0 : i32, i32
  }
  func.func @transform_4(%arg0: i32) -> (i32, i32) {
    %c0_i32 = arith.constant 0 : i32
    %c0_i32_0 = arith.constant 0 : i32
    %c0_i32_1 = arith.constant 0 : i32
    return %c0_i32, %c0_i32_0 : i32, i32
  }
  func.func @transform_5(%arg0: i32) -> (i32, i32) {
    %c0_i32 = arith.constant 0 : i32
    %c0_i32_0 = arith.constant 0 : i32
    return %arg0, %c0_i32 : i32, i32
  }
}

module attributes {stable_mosaic.version = 11 : i64} {
  func.func @_mm_ktiled_kernel(%arg0: i32, %arg1: i32, %arg2: i32, %arg3: memref<8x128xbf16, #tpu.memory_space<vmem>>, %arg4: memref<128x128xbf16, #tpu.memory_space<vmem>>, %arg5: memref<1x128xf32, #tpu.memory_space<vmem>>, %arg6: memref<8x128xbf16, #tpu.memory_space<vmem>>, %arg7: memref<8x128xf32, #tpu.memory_space<vmem>>) attributes {dimension_semantics = [#tpu.dimension_semantics<parallel>, #tpu.dimension_semantics<parallel>, #tpu.dimension_semantics<arbitrary>], iteration_bounds = array<i64: 1, 1, 1>, scalar_prefetch = 0 : i64, scratch_operands = 1 : i64, tpu.core_type = #tpu.core_type<tc>, window_params = [{transform_indices = @transform_0, window_bounds = array<i64: 8, 128>}, {transform_indices = @transform_1, window_bounds = array<i64: 128, 128>}, {transform_indices = @transform_2, window_bounds = array<i64: 1, 128>}, {transform_indices = @transform_3, window_bounds = array<i64: 8, 128>}]} {
    %c0_i32 = arith.constant 0 : i32
    %0 = arith.cmpi eq, %arg2, %c0_i32 : i32
    %1 = arith.extui %0 : i1 to i32
    %c0_i32_0 = arith.constant 0 : i32
    %2 = arith.cmpi ne, %1, %c0_i32_0 : i32
    scf.if %2 {
      %cst_10 = arith.constant 0.000000e+00 : f32
      %12 = vector.broadcast %cst_10 : f32 to vector<8x128xf32>
      %c0_11 = arith.constant 0 : index
      %c0_12 = arith.constant 0 : index
      %13 = vector.load %arg7[%c0_11, %c0_12] : memref<8x128xf32, #tpu.memory_space<vmem>>, vector<8x128xf32>
      tpu.vector_store %arg7[%c0_11, %c0_12], %12 {strides = array<i32>} : memref<8x128xf32, #tpu.memory_space<vmem>>, vector<8x128xf32>,
    } else {
    }
    %c0 = arith.constant 0 : index
    %c0_1 = arith.constant 0 : index
    %3 = vector.load %arg7[%c0, %c0_1] : memref<8x128xf32, #tpu.memory_space<vmem>>, vector<8x128xf32>
    %c0_2 = arith.constant 0 : index
    %c0_3 = arith.constant 0 : index
    %4 = vector.load %arg3[%c0_2, %c0_3] : memref<8x128xbf16, #tpu.memory_space<vmem>>, vector<8x128xbf16>
    %c0_4 = arith.constant 0 : index
    %c0_5 = arith.constant 0 : index
    %5 = vector.load %arg4[%c0_4, %c0_5] : memref<128x128xbf16, #tpu.memory_space<vmem>>, vector<128x128xbf16>
    %cst = arith.constant dense<0.000000e+00> : vector<8x128xf32>
    %6 = tpu.matmul %4, %5, %cst {dimension_numbers = #tpu.dot_dimension_numbers<[1], [0], [0], [1], [0, 0, 1, 1], [], []>} : vector<8x128xbf16>, vector<128x128xbf16>, vector<8x128xf32> -> vector<8x128xf32>
    %7 = arith.addf %3, %6 : vector<8x128xf32>
    %c0_6 = arith.constant 0 : index
    %c0_7 = arith.constant 0 : index
    %8 = vector.load %arg7[%c0_6, %c0_7] : memref<8x128xf32, #tpu.memory_space<vmem>>, vector<8x128xf32>
    tpu.vector_store %arg7[%c0_6, %c0_7], %7 {strides = array<i32>} : memref<8x128xf32, #tpu.memory_space<vmem>>, vector<8x128xf32>,
    %c0_i32_8 = arith.constant 0 : i32
    %9 = arith.cmpi eq, %arg2, %c0_i32_8 : i32
    %10 = arith.extui %9 : i1 to i32
    %c0_i32_9 = arith.constant 0 : i32
    %11 = arith.cmpi ne, %10, %c0_i32_9 : i32
    scf.if %11 {
      %c0_10 = arith.constant 0 : index
      %c0_11 = arith.constant 0 : index
      %12 = vector.load %arg7[%c0_10, %c0_11] : memref<8x128xf32, #tpu.memory_space<vmem>>, vector<8x128xf32>
      %c0_12 = arith.constant 0 : index
      %c0_13 = arith.constant 0 : index
      %13 = vector.load %arg5[%c0_12, %c0_13] : memref<1x128xf32, #tpu.memory_space<vmem>>, vector<1x128xf32>
      %14 = vector.broadcast %13 : vector<1x128xf32> to vector<8x128xf32>
      %15 = arith.addf %12, %14 : vector<8x128xf32>
      %16 = arith.truncf %15 : vector<8x128xf32> to vector<8x128xbf16>
      %c0_14 = arith.constant 0 : index
      %c0_15 = arith.constant 0 : index
      %17 = vector.load %arg6[%c0_14, %c0_15] : memref<8x128xbf16, #tpu.memory_space<vmem>>, vector<8x128xbf16>
      tpu.vector_store %arg6[%c0_14, %c0_15], %16 {strides = array<i32>} : memref<8x128xbf16, #tpu.memory_space<vmem>>, vector<8x128xbf16>,
    } else {
    }
    return
  }
  func.func @transform_0(%arg0: i32, %arg1: i32, %arg2: i32) -> (i32, i32) {
    %c0_i32 = arith.constant 0 : i32
    return %arg0, %arg2 : i32, i32
  }
  func.func @transform_1(%arg0: i32, %arg1: i32, %arg2: i32) -> (i32, i32) {
    %c0_i32 = arith.constant 0 : i32
    return %arg2, %arg1 : i32, i32
  }
  func.func @transform_2(%arg0: i32, %arg1: i32, %arg2: i32) -> (i32, i32) {
    %c0_i32 = arith.constant 0 : i32
    %c0_i32_0 = arith.constant 0 : i32
    return %c0_i32, %arg1 : i32, i32
  }
  func.func @transform_3(%arg0: i32, %arg1: i32, %arg2: i32) -> (i32, i32) {
    %c0_i32 = arith.constant 0 : i32
    return %arg0, %arg1 : i32, i32
  }
}

module attributes {stable_mosaic.version = 11 : i64} {
  func.func @_mm_ktiled_kernel(%arg0: i32, %arg1: i32, %arg2: i32, %arg3: memref<16x256xbf16, #tpu.memory_space<vmem>>, %arg4: memref<256x128xbf16, #tpu.memory_space<vmem>>, %arg5: memref<1x128xf32, #tpu.memory_space<vmem>>, %arg6: memref<16x128xf32, #tpu.memory_space<vmem>>, %arg7: memref<16x128xf32, #tpu.memory_space<vmem>>) attributes {dimension_semantics = [#tpu.dimension_semantics<parallel>, #tpu.dimension_semantics<parallel>, #tpu.dimension_semantics<arbitrary>], iteration_bounds = array<i64: 2, 1, 1>, scalar_prefetch = 0 : i64, scratch_operands = 1 : i64, tpu.core_type = #tpu.core_type<tc>, window_params = [{transform_indices = @transform_0, window_bounds = array<i64: 16, 256>}, {transform_indices = @transform_1, window_bounds = array<i64: 256, 128>}, {transform_indices = @transform_2, window_bounds = array<i64: 1, 128>}, {transform_indices = @transform_3, window_bounds = array<i64: 16, 128>}]} {
    %c0_i32 = arith.constant 0 : i32
    %0 = arith.cmpi eq, %arg2, %c0_i32 : i32
    %1 = arith.extui %0 : i1 to i32
    %c0_i32_0 = arith.constant 0 : i32
    %2 = arith.cmpi ne, %1, %c0_i32_0 : i32
    scf.if %2 {
      %cst_10 = arith.constant 0.000000e+00 : f32
      %12 = vector.broadcast %cst_10 : f32 to vector<16x128xf32>
      %c0_11 = arith.constant 0 : index
      %c0_12 = arith.constant 0 : index
      %13 = vector.load %arg7[%c0_11, %c0_12] : memref<16x128xf32, #tpu.memory_space<vmem>>, vector<16x128xf32>
      tpu.vector_store %arg7[%c0_11, %c0_12], %12 {strides = array<i32>} : memref<16x128xf32, #tpu.memory_space<vmem>>, vector<16x128xf32>,
    } else {
    }
    %c0 = arith.constant 0 : index
    %c0_1 = arith.constant 0 : index
    %3 = vector.load %arg7[%c0, %c0_1] : memref<16x128xf32, #tpu.memory_space<vmem>>, vector<16x128xf32>
    %c0_2 = arith.constant 0 : index
    %c0_3 = arith.constant 0 : index
    %4 = vector.load %arg3[%c0_2, %c0_3] : memref<16x256xbf16, #tpu.memory_space<vmem>>, vector<16x256xbf16>
    %c0_4 = arith.constant 0 : index
    %c0_5 = arith.constant 0 : index
    %5 = vector.load %arg4[%c0_4, %c0_5] : memref<256x128xbf16, #tpu.memory_space<vmem>>, vector<256x128xbf16>
    %cst = arith.constant dense<0.000000e+00> : vector<16x128xf32>
    %6 = tpu.matmul %4, %5, %cst {dimension_numbers = #tpu.dot_dimension_numbers<[1], [0], [0], [1], [0, 0, 1, 1], [], []>} : vector<16x256xbf16>, vector<256x128xbf16>, vector<16x128xf32> -> vector<16x128xf32>
    %7 = arith.addf %3, %6 : vector<16x128xf32>
    %c0_6 = arith.constant 0 : index
    %c0_7 = arith.constant 0 : index
    %8 = vector.load %arg7[%c0_6, %c0_7] : memref<16x128xf32, #tpu.memory_space<vmem>>, vector<16x128xf32>
    tpu.vector_store %arg7[%c0_6, %c0_7], %7 {strides = array<i32>} : memref<16x128xf32, #tpu.memory_space<vmem>>, vector<16x128xf32>,
    %c0_i32_8 = arith.constant 0 : i32
    %9 = arith.cmpi eq, %arg2, %c0_i32_8 : i32
    %10 = arith.extui %9 : i1 to i32
    %c0_i32_9 = arith.constant 0 : i32
    %11 = arith.cmpi ne, %10, %c0_i32_9 : i32
    scf.if %11 {
      %c0_10 = arith.constant 0 : index
      %c0_11 = arith.constant 0 : index
      %12 = vector.load %arg7[%c0_10, %c0_11] : memref<16x128xf32, #tpu.memory_space<vmem>>, vector<16x128xf32>
      %c0_12 = arith.constant 0 : index
      %c0_13 = arith.constant 0 : index
      %13 = vector.load %arg5[%c0_12, %c0_13] : memref<1x128xf32, #tpu.memory_space<vmem>>, vector<1x128xf32>
      %14 = vector.broadcast %13 : vector<1x128xf32> to vector<16x128xf32>
      %15 = arith.addf %12, %14 : vector<16x128xf32>
      %16 = math.tanh %15 : vector<16x128xf32>
      %c0_14 = arith.constant 0 : index
      %c0_15 = arith.constant 0 : index
      %17 = vector.load %arg6[%c0_14, %c0_15] : memref<16x128xf32, #tpu.memory_space<vmem>>, vector<16x128xf32>
      tpu.vector_store %arg6[%c0_14, %c0_15], %16 {strides = array<i32>} : memref<16x128xf32, #tpu.memory_space<vmem>>, vector<16x128xf32>,
    } else {
    }
    return
  }
  func.func @transform_0(%arg0: i32, %arg1: i32, %arg2: i32) -> (i32, i32) {
    %c0_i32 = arith.constant 0 : i32
    return %arg0, %arg2 : i32, i32
  }
  func.func @transform_1(%arg0: i32, %arg1: i32, %arg2: i32) -> (i32, i32) {
    %c0_i32 = arith.constant 0 : i32
    return %arg2, %arg1 : i32, i32
  }
  func.func @transform_2(%arg0: i32, %arg1: i32, %arg2: i32) -> (i32, i32) {
    %c0_i32 = arith.constant 0 : i32
    %c0_i32_0 = arith.constant 0 : i32
    return %c0_i32, %arg1 : i32, i32
  }
  func.func @transform_3(%arg0: i32, %arg1: i32, %arg2: i32) -> (i32, i32) {
    %c0_i32 = arith.constant 0 : i32
    return %arg0, %arg1 : i32, i32
  }
}

</mosaic_0001>

<bundles_post_ra>
// kernel: generator_forward.16
= control target key start
LH: loop header
LB: loop body
LE: loop exit
PB: predicated region body
PF: predicated region fallthrough
CT: control target
= control target key end

     0   :  { %s2594_s12 = smov 0   ;;  %s2596_s13 = smov 0   ;;  %s2880_s0 = inlined_call_operand.vmem [shape: bf16[2048,256], index: 0, kind: input, shape index: {}]   ;;  %s2881_s1 = inlined_call_operand.vmem [shape: bf16[256,128], index: 1, kind: input, shape index: {}]   ;;  %s2882_s2 = inlined_call_operand.vmem [shape: f32[1,128], index: 2, kind: input, shape index: {}]   ;;  %s2883_s3 = inlined_call_operand.vmem [shape: bf16[2048,128], index: 3, kind: output, shape index: {}]  }
   0x1   :  { %s2598_s14 = smov 0  }
   0x2 LB: > { %s32_s15 = sadd.s32 1, %s2567_s13  ;;  %p1971_p0 = scmp.ge.s32.totalorder %s2571_s14, 1  ;;  %s2571_s14 = sphi %s2598_s14, %s13_s14   ;;  %s2567_s13 = sphi %s2596_s13, %s2885_s13   ;;  %s2563_s12 = sphi %s2594_s12, %s2884_s12  }
   0x3   : > { %p34_p1 = scmp.ge.s32.totalorder %s32_s15, 4  ;;  %p191_p2 = scmp.lt.s32.totalorder %s2571_s14, 5 }
   0x5   : > { %s2887_s15 = smov (%p34_p1, %s32_s15), 0  ;;  %p192_p3 = pnand %p1971_p0, %p191_p2 }
   0x6   : > { %v2437_v0 = vld [vmem:[%s2881_s1] sm:$0xff] (!%p192_p3)   ;;  %v2573_v1 = vmov (!%p192_p3), 0   ;;  %s1972_s18 = sshll.u32 (!%p192_p3), %s2563_s12, 6  ;;  %v2438_v2 = vld [vmem:[%s2881_s1 + $0x8] sm:$0xff] (!%p192_p3)   ;;  %v2439_v3 = vld [vmem:[%s2881_s1 + $0x10] sm:$0xff] (!%p192_p3)  }
   0x7   : > { %195 = sbr.rel (%p192_p3) target bundleno = 412 (0x19c), region = 32  ;;  %912 = vmatprep.subr.bf16.mxu0 (!%p192_p3), %v2573_v1  ;;  %2380 = vmatprep.subr.bf16.mxu1 (!%p192_p3), %v2573_v1  ;;  %p236_p4 = scmp.lt.s32.totalorder (!%p192_p3), %s1972_s18, 255  ;;  %v2440_v4 = vld [vmem:[%s2881_s1 + $0x18] sm:$0xff] (!%p192_p3)   ;;  %v2441_v5 = vld [vmem:[%s2881_s1 + $0x20] sm:$0xff] (!%p192_p3)   ;;  %v2442_v7 = vld [vmem:[%s2881_s1 + $0x28] sm:$0xff] (!%p192_p3)  }
   0x8   : > { %913 = vmatpush1.bf16.msra.mxu0 (!%p192_p3), %v2437_v0  ;;  %2396 = vmatpush1.bf16.msra.mxu1 (!%p192_p3), %v2437_v0  ;;  %v2443_v9 = vld [vmem:[%s2881_s1 + $0x30] sm:$0xff] (!%p192_p3)   ;;  %v2444_v10 = vld [vmem:[%s2881_s1 + $0x38] sm:$0xff] (!%p192_p3)   ;;  %v2445_v11 = vld [vmem:[%s2881_s1 + $0x40] sm:$0xff] (!%p192_p3)  }
   0x9   : > { %914 = vmatprep.subr.bf16.mxu0 (!%p192_p3), %v2573_v1  ;;  %2381 = vmatprep.subr.bf16.mxu1 (!%p192_p3), %v2573_v1  ;;  %v2446_v12 = vld [vmem:[%s2881_s1 + $0x48] sm:$0xff] (!%p192_p3)   ;;  %v2447_v13 = vld [vmem:[%s2881_s1 + $0x50] sm:$0xff] (!%p192_p3)   ;;  %v2448_v14 = vld [vmem:[%s2881_s1 + $0x58] sm:$0xff] (!%p192_p3)  }
   0xa   : > { %v2449_v15 = vld [vmem:[%s2881_s1 + $0x60] sm:$0xff] (!%p192_p3)   ;;  %v2450_v16 = vld [vmem:[%s2881_s1 + $0x68] sm:$0xff] (!%p192_p3)   ;;  %v2451_v17 = vld [vmem:[%s2881_s1 + $0x70] sm:$0xff] (!%p192_p3)  }
   0xb   : > { %v2452_v18 = vld [vmem:[%s2881_s1 + $0x78] sm:$0xff] (!%p192_p3)  }
   0xc   : > { %915 = vmatpush1.bf16.msra.mxu0 (!%p192_p3), %v2438_v2  ;;  %2397 = vmatpush1.bf16.msra.mxu1 (!%p192_p3), %v2438_v2 }
   0xd   : > { %916 = vmatprep.subr.bf16.mxu0 (!%p192_p3), %v2573_v1  ;;  %2382 = vmatprep.subr.bf16.mxu1 (!%p192_p3), %v2573_v1 }
   0xe   : > { %s2889_s18 = smov (!%p236_p4, %s1972_s18), 255 }
   0xf   : > { %s2124_s25 = sshll.u32 %s2889_s18, 3  ;;  %s1976_s6 = sshll.u32 %s2889_s18, 2 }
  0x10   : > { %917 = vmatpush1.bf16.msra.mxu0 %v2439_v3  ;;  %2398 = vmatpush1.bf16.msra.mxu1 %v2439_v3  ;;  %s2641_s30 = scalar_lea.vmem %s2880_s0, %s2124_s25  ;;  %s2777_s8 = scalar_lea.vmem %s2883_s3, %s1976_s6 }
  0x11   : > { %918 = vmatprep.subr.bf16.mxu0 %v2573_v1  ;;  %2383 = vmatprep.subr.bf16.mxu1 %v2573_v1  ;;  %v2455_v6 = vld [vmem:[%s2641_s30 + $0x4] ss:$8 sps:$4 sm:$0xff]   ;;  %v2453_v19 = vld [vmem:[%s2641_s30] ss:$8 sps:$4 sm:$0xff]   ;;  %v2459_v21 = vld [vmem:[%s2641_s30 + $0x14] ss:$8 sps:$4 sm:$0xff]  }
  0x12   : > { %v2458_v8 = vld [vmem:[%s2641_s30 + $0x104] ss:$8 sps:$4 sm:$0xff]   ;;  %944 = vmatprep.mubr.bf16.mxu0 %v2455_v6  ;;  %v2456_v20 = vld [vmem:[%s2641_s30 + $0x100] ss:$8 sps:$4 sm:$0xff]   ;;  %v2461_v22 = vld [vmem:[%s2641_s30 + $0x114] ss:$8 sps:$4 sm:$0xff]  }
  0x13   : > { %1072 = vmatprep.mubr.bf16.mxu1 %v2458_v8  ;;  %v2463_v23 = vld [vmem:[%s2641_s30 + $0x10] ss:$8 sps:$4 sm:$0xff]   ;;  %v2465_v25 = vld [vmem:[%s2641_s30 + $0x24] ss:$8 sps:$4 sm:$0xff]   ;;  %v2469_v27 = vld [vmem:[%s2641_s30 + $0x20] ss:$8 sps:$4 sm:$0xff]  }
  0x14   : > { %919 = vmatpush1.bf16.msra.mxu0 %v2440_v4  ;;  %2399 = vmatpush1.bf16.msra.mxu1 %v2440_v4  ;;  %v2464_v24 = vld [vmem:[%s2641_s30 + $0x110] ss:$8 sps:$4 sm:$0xff]   ;;  %v2467_v26 = vld [vmem:[%s2641_s30 + $0x124] ss:$8 sps:$4 sm:$0xff]   ;;  %v2470_v28 = vld [vmem:[%s2641_s30 + $0x120] ss:$8 sps:$4 sm:$0xff]  }
  0x15   : > { %920 = vmatprep.subr.bf16.mxu0 %v2573_v1  ;;  %2384 = vmatprep.subr.bf16.mxu1 %v2573_v1  ;;  %v2471_v29 = vld [vmem:[%s2641_s30 + $0x34] ss:$8 sps:$4 sm:$0xff]   ;;  %v2475_v31 = vld [vmem:[%s2641_s30 + $0x30] ss:$8 sps:$4 sm:$0xff]   ;;  %v2477_v33 = vld [vmem:[%s2641_s30 + $0x44] ss:$8 sps:$4 sm:$0xff]  }
  0x16   : > { %v2473_v30 = vld [vmem:[%s2641_s30 + $0x134] ss:$8 sps:$4 sm:$0xff]   ;;  %v2476_v32 = vld [vmem:[%s2641_s30 + $0x130] ss:$8 sps:$4 sm:$0xff]   ;;  %v2479_v34 = vld [vmem:[%s2641_s30 + $0x144] ss:$8 sps:$4 sm:$0xff]  }
  0x17   : > { %v2481_v35 = vld [vmem:[%s2641_s30 + $0x40] ss:$8 sps:$4 sm:$0xff]   ;;  %v2483_v37 = vld [vmem:[%s2641_s30 + $0x54] ss:$8 sps:$4 sm:$0xff]   ;;  %v2487_v39 = vld [vmem:[%s2641_s30 + $0x50] ss:$8 sps:$4 sm:$0xff]  }
  0x18   : > { %921 = vmatpush1.bf16.msra.mxu0 %v2441_v5  ;;  %2400 = vmatpush1.bf16.msra.mxu1 %v2441_v5  ;;  %v2482_v36 = vld [vmem:[%s2641_s30 + $0x140] ss:$8 sps:$4 sm:$0xff]   ;;  %v2485_v38 = vld [vmem:[%s2641_s30 + $0x154] ss:$8 sps:$4 sm:$0xff]   ;;  %v2488_v40 = vld [vmem:[%s2641_s30 + $0x150] ss:$8 sps:$4 sm:$0xff]  }
  0x19   : > { %922 = vmatprep.subr.bf16.mxu0 %v2573_v1  ;;  %2385 = vmatprep.subr.bf16.mxu1 %v2573_v1  ;;  %v2489_v41 = vld [vmem:[%s2641_s30 + $0x64] ss:$8 sps:$4 sm:$0xff]   ;;  %v2493_v43 = vld [vmem:[%s2641_s30 + $0x60] ss:$8 sps:$4 sm:$0xff]   ;;  %v2495_v45 = vld [vmem:[%s2641_s30 + $0x74] ss:$8 sps:$4 sm:$0xff]  }
  0x1a   : > { %v2491_v42 = vld [vmem:[%s2641_s30 + $0x164] ss:$8 sps:$4 sm:$0xff]   ;;  %v2494_v44 = vld [vmem:[%s2641_s30 + $0x160] ss:$8 sps:$4 sm:$0xff]   ;;  %v2497_v46 = vld [vmem:[%s2641_s30 + $0x174] ss:$8 sps:$4 sm:$0xff]  }
  0x1b   : > { %v2499_v47 = vld [vmem:[%s2641_s30 + $0x70] ss:$8 sps:$4 sm:$0xff]   ;;  %v2501_v49 = vld [vmem:[%s2641_s30 + $0x84] ss:$8 sps:$4 sm:$0xff]   ;;  %v2505_v51 = vld [vmem:[%s2641_s30 + $0x80] ss:$8 sps:$4 sm:$0xff]  }
  0x1c   : > { %923 = vmatpush1.bf16.msra.mxu0 %v2442_v7  ;;  %2401 = vmatpush1.bf16.msra.mxu1 %v2442_v7  ;;  %v2500_v48 = vld [vmem:[%s2641_s30 + $0x170] ss:$8 sps:$4 sm:$0xff]   ;;  %v2503_v50 = vld [vmem:[%s2641_s30 + $0x184] ss:$8 sps:$4 sm:$0xff]   ;;  %v2506_v52 = vld [vmem:[%s2641_s30 + $0x180] ss:$8 sps:$4 sm:$0xff]  }
  0x1d   : > { %924 = vmatprep.subr.bf16.mxu0 %v2573_v1  ;;  %2386 = vmatprep.subr.bf16.mxu1 %v2573_v1  ;;  %v2507_v53 = vld [vmem:[%s2641_s30 + $0x94] ss:$8 sps:$4 sm:$0xff]   ;;  %v2511_v55 = vld [vmem:[%s2641_s30 + $0x90] ss:$8 sps:$4 sm:$0xff]   ;;  %v2513_v57 = vld [vmem:[%s2641_s30 + $0xa4] ss:$8 sps:$4 sm:$0xff]  }
  0x1e   : > { %v2509_v54 = vld [vmem:[%s2641_s30 + $0x194] ss:$8 sps:$4 sm:$0xff]   ;;  %v2512_v56 = vld [vmem:[%s2641_s30 + $0x190] ss:$8 sps:$4 sm:$0xff]   ;;  %v2515_v58 = vld [vmem:[%s2641_s30 + $0x1a4] ss:$8 sps:$4 sm:$0xff]  }
  0x1f   : > { %v2517_v59 = vld [vmem:[%s2641_s30 + $0xa0] ss:$8 sps:$4 sm:$0xff]   ;;  %v2519_v61 = vld [vmem:[%s2641_s30 + $0xb4] ss:$8 sps:$4 sm:$0xff]   ;;  %v2523_v63 = vld [vmem:[%s2641_s30 + $0xb0] ss:$8 sps:$4 sm:$0xff]  }
  0x20   : > { %925 = vmatpush1.bf16.msra.mxu0 %v2443_v9  ;;  %2402 = vmatpush1.bf16.msra.mxu1 %v2443_v9  ;;  %v2518_v60 = vld [vmem:[%s2641_s30 + $0x1a0] ss:$8 sps:$4 sm:$0xff]   ;;  %v2521_v62 = vld [vmem:[%s2641_s30 + $0x1b4] ss:$8 sps:$4 sm:$0xff]   ;;  %v2524_v0 = vld [vmem:[%s2641_s30 + $0x1b0] ss:$8 sps:$4 sm:$0xff]  }
  0x21   : > { %926 = vmatprep.subr.bf16.mxu0 %v2573_v1  ;;  %2387 = vmatprep.subr.bf16.mxu1 %v2573_v1  ;;  %v2527_v2 = vld [vmem:[%s2641_s30 + $0x1c4] ss:$8 sps:$4 sm:$0xff]   ;;  %v2529_v3 = vld [vmem:[%s2641_s30 + $0xc0] ss:$8 sps:$4 sm:$0xff]   ;;  %v2531_v5 = vld [vmem:[%s2641_s30 + $0xd4] ss:$8 sps:$4 sm:$0xff]  }
  0x22   : > { %v2530_v4 = vld [vmem:[%s2641_s30 + $0x1c0] ss:$8 sps:$4 sm:$0xff]   ;;  %v2533_v6 = vld [vmem:[%s2641_s30 + $0x1d4] ss:$8 sps:$4 sm:$0xff]   ;;  %v2535_v7 = vld [vmem:[%s2641_s30 + $0xd0] ss:$8 sps:$4 sm:$0xff]  }
  0x23   : > { %v2536_v8 = vld [vmem:[%s2641_s30 + $0x1d0] ss:$8 sps:$4 sm:$0xff]   ;;  %v2537_v9 = vld [vmem:[%s2641_s30 + $0xe4] ss:$8 sps:$4 sm:$0xff]  }
  0x24   : > { %927 = vmatpush1.bf16.msra.mxu0 %v2444_v10  ;;  %2403 = vmatpush1.bf16.msra.mxu1 %v2444_v10  ;;  %v2539_v10 = vld [vmem:[%s2641_s30 + $0x1e4] ss:$8 sps:$4 sm:$0xff]  }
  0x25   : > { %928 = vmatprep.subr.bf16.mxu0 %v2573_v1  ;;  %2388 = vmatprep.subr.bf16.mxu1 %v2573_v1 }
  0x28   : > { %929 = vmatpush1.bf16.msra.mxu0 %v2445_v11  ;;  %2404 = vmatpush1.bf16.msra.mxu1 %v2445_v11  ;;  %v2541_v11 = vld [vmem:[%s2641_s30 + $0xe0] ss:$8 sps:$4 sm:$0xff]  }
  0x29   : > { %930 = vmatprep.subr.bf16.mxu0 %v2573_v1  ;;  %2389 = vmatprep.subr.bf16.mxu1 %v2573_v1 }
  0x2c   : > { %931 = vmatpush1.bf16.msra.mxu0 %v2446_v12  ;;  %2405 = vmatpush1.bf16.msra.mxu1 %v2446_v12  ;;  %v2542_v12 = vld [vmem:[%s2641_s30 + $0x1e0] ss:$8 sps:$4 sm:$0xff]  }
  0x2d   : > { %932 = vmatprep.subr.bf16.mxu0 %v2573_v1  ;;  %2390 = vmatprep.subr.bf16.mxu1 %v2573_v1 }
  0x30   : > { %933 = vmatpush1.bf16.msra.mxu0 %v2447_v13  ;;  %2406 = vmatpush1.bf16.msra.mxu1 %v2447_v13  ;;  %v2543_v13 = vld [vmem:[%s2641_s30 + $0xf4] ss:$8 sps:$4 sm:$0xff]  }
  0x31   : > { %934 = vmatprep.subr.bf16.mxu0 %v2573_v1  ;;  %2391 = vmatprep.subr.bf16.mxu1 %v2573_v1 }
  0x34   : > { %935 = vmatpush1.bf16.msra.mxu0 %v2448_v14  ;;  %2407 = vmatpush1.bf16.msra.mxu1 %v2448_v14  ;;  %v2545_v14 = vld [vmem:[%s2641_s30 + $0x1f4] ss:$8 sps:$4 sm:$0xff]  }
  0x35   : > { %936 = vmatprep.subr.bf16.mxu0 %v2573_v1  ;;  %2392 = vmatprep.subr.bf16.mxu1 %v2573_v1 }
  0x38   : > { %937 = vmatpush1.bf16.msra.mxu0 %v2449_v15  ;;  %2408 = vmatpush1.bf16.msra.mxu1 %v2449_v15  ;;  %v2547_v15 = vld [vmem:[%s2641_s30 + $0xf0] ss:$8 sps:$4 sm:$0xff]  }
  0x39   : > { %938 = vmatprep.subr.bf16.mxu0 %v2573_v1  ;;  %2393 = vmatprep.subr.bf16.mxu1 %v2573_v1 }
  0x3c   : > { %939 = vmatpush1.bf16.msra.mxu0 %v2450_v16  ;;  %2409 = vmatpush1.bf16.msra.mxu1 %v2450_v16  ;;  %v2548_v16 = vld [vmem:[%s2641_s30 + $0x1f0] ss:$8 sps:$4 sm:$0xff]  }
  0x3d   : > { %940 = vmatprep.subr.bf16.mxu0 %v2573_v1  ;;  %2394 = vmatprep.subr.bf16.mxu1 %v2573_v1 }
  0x40   : > { %941 = vmatpush1.bf16.msra.mxu0 %v2451_v17  ;;  %2410 = vmatpush1.bf16.msra.mxu1 %v2451_v17  ;;  %v2767_v17 = vld [vmem:[%s2882_s2] ss:$0 sm:$0xff] }
  0x41   : > { %942 = vmatprep.subr.bf16.mxu0 %v2573_v1  ;;  %2395 = vmatprep.subr.bf16.mxu1 %v2573_v1  ;;  %v2525_v1 = vld [vmem:[%s2641_s30 + $0xc4] ss:$8 sps:$4 sm:$0xff]  }
  0x44   : > { %943 = vmatpush1.bf16.msra.mxu0 %v2452_v18  ;;  %2411 = vmatpush1.bf16.msra.mxu1 %v2452_v18 }
  0x47   : > { %945 = vmatmul.mubr.bf16.vlgmr.msra.gmra.mrb[0].mxu0 %v2453_v19  ;;  %1073 = vmatmul.mubr.bf16.vlgmr.msra.gmra.mrb[0].mxu1 %v2456_v20 }
  0x48   : > { %952 = vmatprep.mubr.bf16.mxu0 %v2459_v21  ;;  %1080 = vmatprep.mubr.bf16.mxu1 %v2461_v22 }
  0x4f   : > { %953 = vmatmul.mubr.bf16.gmra.mrb[4].mxu0 %v2463_v23  ;;  %1081 = vmatmul.mubr.bf16.gmra.mrb[4].mxu1 %v2464_v24 }
  0x50   : > { %960 = vmatprep.mubr.bf16.mxu0 %v2465_v25  ;;  %1088 = vmatprep.mubr.bf16.mxu1 %v2467_v26 }
  0x57   : > { %961 = vmatmul.mubr.bf16.gmra.mrb[8].mxu0 %v2469_v27  ;;  %1089 = vmatmul.mubr.bf16.gmra.mrb[8].mxu1 %v2470_v28 }
  0x58   : > { %968 = vmatprep.mubr.bf16.mxu0 %v2471_v29  ;;  %1096 = vmatprep.mubr.bf16.mxu1 %v2473_v30 }
  0x5f   : > { %969 = vmatmul.mubr.bf16.gmra.mrb[12].mxu0 %v2475_v31  ;;  %1097 = vmatmul.mubr.bf16.gmra.mrb[12].mxu1 %v2476_v32 }
  0x60   : > { %976 = vmatprep.mubr.bf16.mxu0 %v2477_v33  ;;  %1104 = vmatprep.mubr.bf16.mxu1 %v2479_v34 }
  0x67   : > { %977 = vmatmul.mubr.bf16.gmra.mrb[16].mxu0 %v2481_v35  ;;  %1105 = vmatmul.mubr.bf16.gmra.mrb[16].mxu1 %v2482_v36 }
  0x68   : > { %984 = vmatprep.mubr.bf16.mxu0 %v2483_v37  ;;  %1112 = vmatprep.mubr.bf16.mxu1 %v2485_v38 }
  0x6f   : > { %985 = vmatmul.mubr.bf16.gmra.mrb[20].mxu0 %v2487_v39  ;;  %1113 = vmatmul.mubr.bf16.gmra.mrb[20].mxu1 %v2488_v40 }
  0x70   : > { %992 = vmatprep.mubr.bf16.mxu0 %v2489_v41  ;;  %1120 = vmatprep.mubr.bf16.mxu1 %v2491_v42 }
  0x77   : > { %993 = vmatmul.mubr.bf16.gmra.mrb[24].mxu0 %v2493_v43  ;;  %1121 = vmatmul.mubr.bf16.gmra.mrb[24].mxu1 %v2494_v44 }
  0x78   : > { %1000 = vmatprep.mubr.bf16.mxu0 %v2495_v45  ;;  %1128 = vmatprep.mubr.bf16.mxu1 %v2497_v46 }
  0x7f   : > { %1001 = vmatmul.mubr.bf16.gmra.mrb[28].mxu0 %v2499_v47  ;;  %1129 = vmatmul.mubr.bf16.gmra.mrb[28].mxu1 %v2500_v48 }
  0x80   : > { %1008 = vmatprep.mubr.bf16.mxu0 %v2501_v49  ;;  %1136 = vmatprep.mubr.bf16.mxu1 %v2503_v50 }
  0x87   : > { %1009 = vmatmul.mubr.bf16.gmra.mrb[32].mxu0 %v2505_v51  ;;  %1137 = vmatmul.mubr.bf16.gmra.mrb[32].mxu1 %v2506_v52 }
  0x88   : > { %1016 = vmatprep.mubr.bf16.mxu0 %v2507_v53  ;;  %1144 = vmatprep.mubr.bf16.mxu1 %v2509_v54 }
  0x8f   : > { %1017 = vmatmul.mubr.bf16.gmra.mrb[36].mxu0 %v2511_v55  ;;  %1145 = vmatmul.mubr.bf16.gmra.mrb[36].mxu1 %v2512_v56 }
  0x90   : > { %1024 = vmatprep.mubr.bf16.mxu0 %v2513_v57  ;;  %1152 = vmatprep.mubr.bf16.mxu1 %v2515_v58 }
  0x97   : > { %1025 = vmatmul.mubr.bf16.gmra.mrb[40].mxu0 %v2517_v59  ;;  %1153 = vmatmul.mubr.bf16.gmra.mrb[40].mxu1 %v2518_v60 }
  0x98   : > { %1032 = vmatprep.mubr.bf16.mxu0 %v2519_v61  ;;  %1160 = vmatprep.mubr.bf16.mxu1 %v2521_v62 }
  0x9f   : > { %1033 = vmatmul.mubr.bf16.gmra.mrb[44].mxu0 %v2523_v63  ;;  %1161 = vmatmul.mubr.bf16.gmra.mrb[44].mxu1 %v2524_v0 }
  0xa0   : > { %1040 = vmatprep.mubr.bf16.mxu0 %v2525_v1  ;;  %1168 = vmatprep.mubr.bf16.mxu1 %v2527_v2 }
  0xa7   : > { %1041 = vmatmul.mubr.bf16.gmra.mrb[48].mxu0 %v2529_v3  ;;  %1169 = vmatmul.mubr.bf16.gmra.mrb[48].mxu1 %v2530_v4 }
  0xa8   : > { %1048 = vmatprep.mubr.bf16.mxu0 %v2531_v5  ;;  %1176 = vmatprep.mubr.bf16.mxu1 %v2533_v6 }
  0xaf   : > { %1049 = vmatmul.mubr.bf16.gmra.mrb[52].mxu0 %v2535_v7  ;;  %1177 = vmatmul.mubr.bf16.gmra.mrb[52].mxu1 %v2536_v8 }
  0xb0   : > { %1056 = vmatprep.mubr.bf16.mxu0 %v2537_v9  ;;  %1184 = vmatprep.mubr.bf16.mxu1 %v2539_v10 }
  0xb7   : > { %1057 = vmatmul.mubr.bf16.gmra.mrb[56].mxu0 %v2541_v11  ;;  %1185 = vmatmul.mubr.bf16.gmra.mrb[56].mxu1 %v2542_v12 }
  0xb8   : > { %1064 = vmatprep.mubr.bf16.mxu0 %v2543_v13  ;;  %1192 = vmatprep.mubr.bf16.mxu1 %v2545_v14 }
  0xbf   : > { %1065 = vmatmul.mubr.bf16.gmra.mrb[60].mxu0 %v2547_v15  ;;  %1193 = vmatmul.mubr.bf16.gmra.mrb[60].mxu1 %v2548_v16 }
 0x11a   : > { %v946_v18 = vpop.f32.mrb[0].mxu0  ;;  %v1074_v19 = vpop.f32.mrb[0].mxu1 }
 0x11b   : > { %v1403_v20 = vadd.f32 %v2767_v17, %v946_v18  ;;  %v1435_v21 = vadd.f32 %v2767_v17, %v1074_v19  ;;  %v948_v22 = vpop.f32.mrb[1].mxu0  ;;  %v1076_v23 = vpop.f32.mrb[1].mxu1 }
 0x11c   : > { %v949_v24 = vpop.f32.mrb[2].mxu0  ;;  %v1077_v25 = vpop.f32.mrb[2].mxu1 }
 0x11d   : > { %v1404_v26 = vadd.f32 %v2767_v17, %v949_v24  ;;  %v1436_v27 = vadd.f32 %v2767_v17, %v1077_v25  ;;  %v951_v28 = vpop.f32.mrb[3].mxu0  ;;  %v1079_v29 = vpop.f32.mrb[3].mxu1  ;;  %v1467_v30 = vmax.f32 %v1403_v20, 0.0  ;;  %v1499_v31 = vmax.f32 %v1435_v21, 0.0 }
 0x11f   : > { %v1468_v32 = vmax.f32 %v1404_v26, 0.0  ;;  %v1500_v33 = vmax.f32 %v1436_v27, 0.0 }
 0x121   : > { %v2192_v34 = vpack.c.bf16 %v1468_v32, %v1467_v30  ;;  %v2272_v35 = vpack.c.bf16 %v1500_v33, %v1499_v31 }
 0x122   : > { %v954_v36 = vpop.f32.mrb[4].mxu0  ;;  %v1082_v37 = vpop.f32.mrb[4].mxu1 }
 0x123   : > { %2193 = vst [vmem:[%s2777_s8] sm:$0xff] %v2192_v34   ;;  %2364 = vst [vmem:[%s2777_s8 + $0x80] sm:$0xff] %v2272_v35   ;;  %v1405_v38 = vadd.f32 %v2767_v17, %v954_v36  ;;  %v1437_v39 = vadd.f32 %v2767_v17, %v1082_v37  ;;  %v956_v40 = vpop.f32.mrb[5].mxu0  ;;  %v1084_v41 = vpop.f32.mrb[5].mxu1 }
 0x124   : > { %v957_v42 = vpop.f32.mrb[6].mxu0  ;;  %v1085_v43 = vpop.f32.mrb[6].mxu1 }
 0x125   : > { %v1406_v44 = vadd.f32 %v2767_v17, %v957_v42  ;;  %v1438_v45 = vadd.f32 %v2767_v17, %v1085_v43  ;;  %v959_v46 = vpop.f32.mrb[7].mxu0  ;;  %v1087_v47 = vpop.f32.mrb[7].mxu1  ;;  %v1469_v48 = vmax.f32 %v1405_v38, 0.0  ;;  %v1501_v49 = vmax.f32 %v1437_v39, 0.0 }
 0x127   : > { %v1470_v50 = vmax.f32 %v1406_v44, 0.0  ;;  %v1502_v51 = vmax.f32 %v1438_v45, 0.0 }
 0x129   : > { %v2197_v52 = vpack.c.bf16 %v1470_v50, %v1469_v48  ;;  %v2277_v53 = vpack.c.bf16 %v1502_v51, %v1501_v49 }
 0x12a   : > { %v962_v54 = vpop.f32.mrb[8].mxu0  ;;  %v1090_v55 = vpop.f32.mrb[8].mxu1 }
 0x12b   : > { %2349 = vst [vmem:[%s2777_s8 + $0x8] sm:$0xff] %v2197_v52   ;;  %2365 = vst [vmem:[%s2777_s8 + $0x88] sm:$0xff] %v2277_v53   ;;  %v1407_v56 = vadd.f32 %v2767_v17, %v962_v54  ;;  %v1439_v57 = vadd.f32 %v2767_v17, %v1090_v55  ;;  %v964_v58 = vpop.f32.mrb[9].mxu0  ;;  %v1092_v59 = vpop.f32.mrb[9].mxu1 }
 0x12c   : > { %v965_v60 = vpop.f32.mrb[10].mxu0  ;;  %v1093_v61 = vpop.f32.mrb[10].mxu1 }
 0x12d   : > { %v1408_v62 = vadd.f32 %v2767_v17, %v965_v60  ;;  %v1440_v63 = vadd.f32 %v2767_v17, %v1093_v61  ;;  %v967_v0 = vpop.f32.mrb[11].mxu0  ;;  %v1095_v1 = vpop.f32.mrb[11].mxu1  ;;  %v1471_v2 = vmax.f32 %v1407_v56, 0.0  ;;  %v1503_v3 = vmax.f32 %v1439_v57, 0.0 }
 0x12f   : > { %v1472_v4 = vmax.f32 %v1408_v62, 0.0  ;;  %v1504_v5 = vmax.f32 %v1440_v63, 0.0 }
 0x131   : > { %v2202_v6 = vpack.c.bf16 %v1472_v4, %v1471_v2  ;;  %v2282_v7 = vpack.c.bf16 %v1504_v5, %v1503_v3 }
 0x132   : > { %v970_v8 = vpop.f32.mrb[12].mxu0  ;;  %v1098_v9 = vpop.f32.mrb[12].mxu1 }
 0x133   : > { %2350 = vst [vmem:[%s2777_s8 + $0x10] sm:$0xff] %v2202_v6   ;;  %2366 = vst [vmem:[%s2777_s8 + $0x90] sm:$0xff] %v2282_v7   ;;  %v1409_v10 = vadd.f32 %v2767_v17, %v970_v8  ;;  %v1441_v11 = vadd.f32 %v2767_v17, %v1098_v9  ;;  %v972_v12 = vpop.f32.mrb[13].mxu0  ;;  %v1100_v13 = vpop.f32.mrb[13].mxu1 }
 0x134   : > { %v973_v14 = vpop.f32.mrb[14].mxu0  ;;  %v1101_v15 = vpop.f32.mrb[14].mxu1 }
 0x135   : > { %v1410_v16 = vadd.f32 %v2767_v17, %v973_v14  ;;  %v1442_v18 = vadd.f32 %v2767_v17, %v1101_v15  ;;  %v975_v19 = vpop.f32.mrb[15].mxu0  ;;  %v1103_v20 = vpop.f32.mrb[15].mxu1  ;;  %v1473_v21 = vmax.f32 %v1409_v10, 0.0  ;;  %v1505_v22 = vmax.f32 %v1441_v11, 0.0 }
 0x137   : > { %v1474_v23 = vmax.f32 %v1410_v16, 0.0  ;;  %v1506_v24 = vmax.f32 %v1442_v18, 0.0 }
 0x139   : > { %v2207_v25 = vpack.c.bf16 %v1474_v23, %v1473_v21  ;;  %v2287_v26 = vpack.c.bf16 %v1506_v24, %v1505_v22 }
 0x13a   : > { %v978_v27 = vpop.f32.mrb[16].mxu0  ;;  %v1106_v28 = vpop.f32.mrb[16].mxu1 }
 0x13b   : > { %2351 = vst [vmem:[%s2777_s8 + $0x18] sm:$0xff] %v2207_v25   ;;  %2367 = vst [vmem:[%s2777_s8 + $0x98] sm:$0xff] %v2287_v26   ;;  %v1411_v29 = vadd.f32 %v2767_v17, %v978_v27  ;;  %v1443_v30 = vadd.f32 %v2767_v17, %v1106_v28  ;;  %v980_v31 = vpop.f32.mrb[17].mxu0  ;;  %v1108_v32 = vpop.f32.mrb[17].mxu1 }
 0x13c   : > { %v981_v33 = vpop.f32.mrb[18].mxu0  ;;  %v1109_v34 = vpop.f32.mrb[18].mxu1 }
 0x13d   : > { %v1412_v35 = vadd.f32 %v2767_v17, %v981_v33  ;;  %v1444_v36 = vadd.f32 %v2767_v17, %v1109_v34  ;;  %v983_v37 = vpop.f32.mrb[19].mxu0  ;;  %v1111_v38 = vpop.f32.mrb[19].mxu1  ;;  %v1475_v39 = vmax.f32 %v1411_v29, 0.0  ;;  %v1507_v40 = vmax.f32 %v1443_v30, 0.0 }
 0x13f   : > { %v1476_v41 = vmax.f32 %v1412_v35, 0.0  ;;  %v1508_v42 = vmax.f32 %v1444_v36, 0.0 }
 0x141   : > { %v2212_v43 = vpack.c.bf16 %v1476_v41, %v1475_v39  ;;  %v2292_v44 = vpack.c.bf16 %v1508_v42, %v1507_v40 }
 0x142   : > { %v986_v45 = vpop.f32.mrb[20].mxu0  ;;  %v1114_v46 = vpop.f32.mrb[20].mxu1 }
 0x143   : > { %2352 = vst [vmem:[%s2777_s8 + $0x20] sm:$0xff] %v2212_v43   ;;  %2368 = vst [vmem:[%s2777_s8 + $0xa0] sm:$0xff] %v2292_v44   ;;  %v1413_v47 = vadd.f32 %v2767_v17, %v986_v45  ;;  %v1445_v48 = vadd.f32 %v2767_v17, %v1114_v46  ;;  %v988_v49 = vpop.f32.mrb[21].mxu0  ;;  %v1116_v50 = vpop.f32.mrb[21].mxu1 }
 0x144   : > { %v989_v51 = vpop.f32.mrb[22].mxu0  ;;  %v1117_v52 = vpop.f32.mrb[22].mxu1 }
 0x145   : > { %v1414_v53 = vadd.f32 %v2767_v17, %v989_v51  ;;  %v1446_v54 = vadd.f32 %v2767_v17, %v1117_v52  ;;  %v991_v55 = vpop.f32.mrb[23].mxu0  ;;  %v1119_v56 = vpop.f32.mrb[23].mxu1  ;;  %v1477_v57 = vmax.f32 %v1413_v47, 0.0  ;;  %v1509_v58 = vmax.f32 %v1445_v48, 0.0 }
 0x147   : > { %v1478_v59 = vmax.f32 %v1414_v53, 0.0  ;;  %v1510_v60 = vmax.f32 %v1446_v54, 0.0 }
 0x149   : > { %v2217_v61 = vpack.c.bf16 %v1478_v59, %v1477_v57  ;;  %v2297_v62 = vpack.c.bf16 %v1510_v60, %v1509_v58 }
 0x14a   : > { %v994_v63 = vpop.f32.mrb[24].mxu0  ;;  %v1122_v0 = vpop.f32.mrb[24].mxu1 }
 0x14b   : > { %2353 = vst [vmem:[%s2777_s8 + $0x28] sm:$0xff] %v2217_v61   ;;  %2369 = vst [vmem:[%s2777_s8 + $0xa8] sm:$0xff] %v2297_v62   ;;  %v1415_v1 = vadd.f32 %v2767_v17, %v994_v63  ;;  %v1447_v2 = vadd.f32 %v2767_v17, %v1122_v0  ;;  %v996_v3 = vpop.f32.mrb[25].mxu0  ;;  %v1124_v4 = vpop.f32.mrb[25].mxu1 }
 0x14c   : > { %v997_v5 = vpop.f32.mrb[26].mxu0  ;;  %v1125_v6 = vpop.f32.mrb[26].mxu1 }
 0x14d   : > { %v1416_v7 = vadd.f32 %v2767_v17, %v997_v5  ;;  %v1448_v8 = vadd.f32 %v2767_v17, %v1125_v6  ;;  %v999_v9 = vpop.f32.mrb[27].mxu0  ;;  %v1127_v10 = vpop.f32.mrb[27].mxu1  ;;  %v1479_v11 = vmax.f32 %v1415_v1, 0.0  ;;  %v1511_v12 = vmax.f32 %v1447_v2, 0.0 }
 0x14f   : > { %v1480_v13 = vmax.f32 %v1416_v7, 0.0  ;;  %v1512_v14 = vmax.f32 %v1448_v8, 0.0 }
 0x151   : > { %v2222_v15 = vpack.c.bf16 %v1480_v13, %v1479_v11  ;;  %v2302_v16 = vpack.c.bf16 %v1512_v14, %v1511_v12 }
 0x152   : > { %v1002_v18 = vpop.f32.mrb[28].mxu0  ;;  %v1130_v19 = vpop.f32.mrb[28].mxu1 }
 0x153   : > { %2354 = vst [vmem:[%s2777_s8 + $0x30] sm:$0xff] %v2222_v15   ;;  %2370 = vst [vmem:[%s2777_s8 + $0xb0] sm:$0xff] %v2302_v16   ;;  %v1417_v20 = vadd.f32 %v2767_v17, %v1002_v18  ;;  %v1449_v21 = vadd.f32 %v2767_v17, %v1130_v19  ;;  %v1004_v22 = vpop.f32.mrb[29].mxu0  ;;  %v1132_v23 = vpop.f32.mrb[29].mxu1 }
 0x154   : > { %v1005_v24 = vpop.f32.mrb[30].mxu0  ;;  %v1133_v25 = vpop.f32.mrb[30].mxu1 }
 0x155   : > { %v1418_v26 = vadd.f32 %v2767_v17, %v1005_v24  ;;  %v1450_v27 = vadd.f32 %v2767_v17, %v1133_v25  ;;  %v1007_v28 = vpop.f32.mrb[31].mxu0  ;;  %v1135_v29 = vpop.f32.mrb[31].mxu1  ;;  %v1481_v30 = vmax.f32 %v1417_v20, 0.0  ;;  %v1513_v31 = vmax.f32 %v1449_v21, 0.0 }
 0x157   : > { %v1482_v32 = vmax.f32 %v1418_v26, 0.0  ;;  %v1514_v33 = vmax.f32 %v1450_v27, 0.0 }
 0x159   : > { %v2227_v34 = vpack.c.bf16 %v1482_v32, %v1481_v30  ;;  %v2307_v35 = vpack.c.bf16 %v1514_v33, %v1513_v31 }
 0x15a   : > { %v1010_v36 = vpop.f32.mrb[32].mxu0  ;;  %v1138_v37 = vpop.f32.mrb[32].mxu1 }
 0x15b   : > { %2355 = vst [vmem:[%s2777_s8 + $0x38] sm:$0xff] %v2227_v34   ;;  %2371 = vst [vmem:[%s2777_s8 + $0xb8] sm:$0xff] %v2307_v35   ;;  %v1419_v38 = vadd.f32 %v2767_v17, %v1010_v36  ;;  %v1451_v39 = vadd.f32 %v2767_v17, %v1138_v37  ;;  %v1012_v40 = vpop.f32.mrb[33].mxu0  ;;  %v1140_v41 = vpop.f32.mrb[33].mxu1 }
 0x15c   : > { %v1013_v42 = vpop.f32.mrb[34].mxu0  ;;  %v1141_v43 = vpop.f32.mrb[34].mxu1 }
 0x15d   : > { %v1420_v44 = vadd.f32 %v2767_v17, %v1013_v42  ;;  %v1452_v45 = vadd.f32 %v2767_v17, %v1141_v43  ;;  %v1015_v46 = vpop.f32.mrb[35].mxu0  ;;  %v1143_v47 = vpop.f32.mrb[35].mxu1  ;;  %v1483_v48 = vmax.f32 %v1419_v38, 0.0  ;;  %v1515_v49 = vmax.f32 %v1451_v39, 0.0 }
 0x15f   : > { %v1484_v50 = vmax.f32 %v1420_v44, 0.0  ;;  %v1516_v51 = vmax.f32 %v1452_v45, 0.0 }
 0x161   : > { %v2232_v52 = vpack.c.bf16 %v1484_v50, %v1483_v48  ;;  %v2312_v53 = vpack.c.bf16 %v1516_v51, %v1515_v49 }
 0x162   : > { %v1018_v54 = vpop.f32.mrb[36].mxu0  ;;  %v1146_v55 = vpop.f32.mrb[36].mxu1 }
 0x163   : > { %2356 = vst [vmem:[%s2777_s8 + $0x40] sm:$0xff] %v2232_v52   ;;  %2372 = vst [vmem:[%s2777_s8 + $0xc0] sm:$0xff] %v2312_v53   ;;  %v1421_v56 = vadd.f32 %v2767_v17, %v1018_v54  ;;  %v1453_v57 = vadd.f32 %v2767_v17, %v1146_v55  ;;  %v1020_v58 = vpop.f32.mrb[37].mxu0  ;;  %v1148_v59 = vpop.f32.mrb[37].mxu1 }
 0x164   : > { %v1021_v60 = vpop.f32.mrb[38].mxu0  ;;  %v1149_v61 = vpop.f32.mrb[38].mxu1 }
 0x165   : > { %v1422_v62 = vadd.f32 %v2767_v17, %v1021_v60  ;;  %v1454_v63 = vadd.f32 %v2767_v17, %v1149_v61  ;;  %v1023_v0 = vpop.f32.mrb[39].mxu0  ;;  %v1151_v1 = vpop.f32.mrb[39].mxu1  ;;  %v1485_v2 = vmax.f32 %v1421_v56, 0.0  ;;  %v1517_v3 = vmax.f32 %v1453_v57, 0.0 }
 0x167   : > { %v1486_v4 = vmax.f32 %v1422_v62, 0.0  ;;  %v1518_v5 = vmax.f32 %v1454_v63, 0.0 }
 0x169   : > { %v2237_v6 = vpack.c.bf16 %v1486_v4, %v1485_v2  ;;  %v2317_v7 = vpack.c.bf16 %v1518_v5, %v1517_v3 }
 0x16a   : > { %v1026_v8 = vpop.f32.mrb[40].mxu0  ;;  %v1154_v9 = vpop.f32.mrb[40].mxu1 }
 0x16b   : > { %2357 = vst [vmem:[%s2777_s8 + $0x48] sm:$0xff] %v2237_v6   ;;  %2373 = vst [vmem:[%s2777_s8 + $0xc8] sm:$0xff] %v2317_v7   ;;  %v1423_v10 = vadd.f32 %v2767_v17, %v1026_v8  ;;  %v1455_v11 = vadd.f32 %v2767_v17, %v1154_v9  ;;  %v1028_v12 = vpop.f32.mrb[41].mxu0  ;;  %v1156_v13 = vpop.f32.mrb[41].mxu1 }
 0x16c   : > { %v1029_v14 = vpop.f32.mrb[42].mxu0  ;;  %v1157_v15 = vpop.f32.mrb[42].mxu1 }
 0x16d   : > { %v1424_v16 = vadd.f32 %v2767_v17, %v1029_v14  ;;  %v1456_v18 = vadd.f32 %v2767_v17, %v1157_v15  ;;  %v1031_v19 = vpop.f32.mrb[43].mxu0  ;;  %v1159_v20 = vpop.f32.mrb[43].mxu1  ;;  %v1487_v21 = vmax.f32 %v1423_v10, 0.0  ;;  %v1519_v22 = vmax.f32 %v1455_v11, 0.0 }
 0x16f   : > { %v1488_v23 = vmax.f32 %v1424_v16, 0.0  ;;  %v1520_v24 = vmax.f32 %v1456_v18, 0.0 }
 0x171   : > { %v2242_v25 = vpack.c.bf16 %v1488_v23, %v1487_v21  ;;  %v2322_v26 = vpack.c.bf16 %v1520_v24, %v1519_v22 }
 0x172   : > { %v1034_v27 = vpop.f32.mrb[44].mxu0  ;;  %v1162_v28 = vpop.f32.mrb[44].mxu1 }
 0x173   : > { %2358 = vst [vmem:[%s2777_s8 + $0x50] sm:$0xff] %v2242_v25   ;;  %2374 = vst [vmem:[%s2777_s8 + $0xd0] sm:$0xff] %v2322_v26   ;;  %v1425_v29 = vadd.f32 %v2767_v17, %v1034_v27  ;;  %v1457_v30 = vadd.f32 %v2767_v17, %v1162_v28  ;;  %v1036_v31 = vpop.f32.mrb[45].mxu0  ;;  %v1164_v32 = vpop.f32.mrb[45].mxu1 }
 0x174   : > { %v1037_v33 = vpop.f32.mrb[46].mxu0  ;;  %v1165_v34 = vpop.f32.mrb[46].mxu1 }
 0x175   : > { %v1426_v35 = vadd.f32 %v2767_v17, %v1037_v33  ;;  %v1458_v36 = vadd.f32 %v2767_v17, %v1165_v34  ;;  %v1039_v37 = vpop.f32.mrb[47].mxu0  ;;  %v1167_v38 = vpop.f32.mrb[47].mxu1  ;;  %v1489_v39 = vmax.f32 %v1425_v29, 0.0  ;;  %v1521_v40 = vmax.f32 %v1457_v30, 0.0 }
 0x177   : > { %v1490_v41 = vmax.f32 %v1426_v35, 0.0  ;;  %v1522_v42 = vmax.f32 %v1458_v36, 0.0 }
 0x179   : > { %v2247_v43 = vpack.c.bf16 %v1490_v41, %v1489_v39  ;;  %v2327_v44 = vpack.c.bf16 %v1522_v42, %v1521_v40 }
 0x17a   : > { %v1042_v45 = vpop.f32.mrb[48].mxu0  ;;  %v1170_v46 = vpop.f32.mrb[48].mxu1 }
 0x17b   : > { %2359 = vst [vmem:[%s2777_s8 + $0x58] sm:$0xff] %v2247_v43   ;;  %2375 = vst [vmem:[%s2777_s8 + $0xd8] sm:$0xff] %v2327_v44   ;;  %v1427_v47 = vadd.f32 %v2767_v17, %v1042_v45  ;;  %v1459_v48 = vadd.f32 %v2767_v17, %v1170_v46  ;;  %v1044_v49 = vpop.f32.mrb[49].mxu0  ;;  %v1172_v50 = vpop.f32.mrb[49].mxu1 }
 0x17c   : > { %v1045_v51 = vpop.f32.mrb[50].mxu0  ;;  %v1173_v52 = vpop.f32.mrb[50].mxu1 }
 0x17d   : > { %v1428_v53 = vadd.f32 %v2767_v17, %v1045_v51  ;;  %v1460_v54 = vadd.f32 %v2767_v17, %v1173_v52  ;;  %v1047_v55 = vpop.f32.mrb[51].mxu0  ;;  %v1175_v56 = vpop.f32.mrb[51].mxu1  ;;  %v1491_v57 = vmax.f32 %v1427_v47, 0.0  ;;  %v1523_v58 = vmax.f32 %v1459_v48, 0.0 }
 0x17f   : > { %v1492_v59 = vmax.f32 %v1428_v53, 0.0  ;;  %v1524_v60 = vmax.f32 %v1460_v54, 0.0 }
 0x181   : > { %v2252_v61 = vpack.c.bf16 %v1492_v59, %v1491_v57  ;;  %v2332_v62 = vpack.c.bf16 %v1524_v60, %v1523_v58 }
 0x182   : > { %v1050_v63 = vpop.f32.mrb[52].mxu0  ;;  %v1178_v0 = vpop.f32.mrb[52].mxu1 }
 0x183   : > { %2360 = vst [vmem:[%s2777_s8 + $0x60] sm:$0xff] %v2252_v61   ;;  %2376 = vst [vmem:[%s2777_s8 + $0xe0] sm:$0xff] %v2332_v62   ;;  %v1429_v1 = vadd.f32 %v2767_v17, %v1050_v63  ;;  %v1461_v2 = vadd.f32 %v2767_v17, %v1178_v0  ;;  %v1052_v3 = vpop.f32.mrb[53].mxu0  ;;  %v1180_v4 = vpop.f32.mrb[53].mxu1 }
 0x184   : > { %v1053_v5 = vpop.f32.mrb[54].mxu0  ;;  %v1181_v6 = vpop.f32.mrb[54].mxu1 }
 0x185   : > { %v1430_v7 = vadd.f32 %v2767_v17, %v1053_v5  ;;  %v1462_v8 = vadd.f32 %v2767_v17, %v1181_v6  ;;  %v1055_v9 = vpop.f32.mrb[55].mxu0  ;;  %v1183_v10 = vpop.f32.mrb[55].mxu1  ;;  %v1493_v11 = vmax.f32 %v1429_v1, 0.0  ;;  %v1525_v12 = vmax.f32 %v1461_v2, 0.0 }
 0x187   : > { %v1494_v13 = vmax.f32 %v1430_v7, 0.0  ;;  %v1526_v14 = vmax.f32 %v1462_v8, 0.0 }
 0x189   : > { %v2257_v15 = vpack.c.bf16 %v1494_v13, %v1493_v11  ;;  %v2337_v16 = vpack.c.bf16 %v1526_v14, %v1525_v12 }
 0x18a   : > { %v1058_v18 = vpop.f32.mrb[56].mxu0  ;;  %v1186_v19 = vpop.f32.mrb[56].mxu1 }
 0x18b   : > { %2361 = vst [vmem:[%s2777_s8 + $0x68] sm:$0xff] %v2257_v15   ;;  %2377 = vst [vmem:[%s2777_s8 + $0xe8] sm:$0xff] %v2337_v16   ;;  %v1431_v20 = vadd.f32 %v2767_v17, %v1058_v18  ;;  %v1463_v21 = vadd.f32 %v2767_v17, %v1186_v19  ;;  %v1060_v22 = vpop.f32.mrb[57].mxu0  ;;  %v1188_v23 = vpop.f32.mrb[57].mxu1 }
 0x18c   : > { %v1061_v24 = vpop.f32.mrb[58].mxu0  ;;  %v1189_v25 = vpop.f32.mrb[58].mxu1 }
 0x18d   : > { %v1432_v26 = vadd.f32 %v2767_v17, %v1061_v24  ;;  %v1464_v27 = vadd.f32 %v2767_v17, %v1189_v25  ;;  %v1063_v28 = vpop.f32.mrb[59].mxu0  ;;  %v1191_v29 = vpop.f32.mrb[59].mxu1  ;;  %v1495_v30 = vmax.f32 %v1431_v20, 0.0  ;;  %v1527_v31 = vmax.f32 %v1463_v21, 0.0 }
 0x18f   : > { %v1496_v32 = vmax.f32 %v1432_v26, 0.0  ;;  %v1528_v33 = vmax.f32 %v1464_v27, 0.0 }
 0x191   : > { %v2262_v34 = vpack.c.bf16 %v1496_v32, %v1495_v30  ;;  %v2342_v35 = vpack.c.bf16 %v1528_v33, %v1527_v31 }
 0x192   : > { %v1066_v36 = vpop.f32.mrb[60].mxu0  ;;  %v1194_v37 = vpop.f32.mrb[60].mxu1 }
 0x193   : > { %2362 = vst [vmem:[%s2777_s8 + $0x70] sm:$0xff] %v2262_v34   ;;  %2378 = vst [vmem:[%s2777_s8 + $0xf0] sm:$0xff] %v2342_v35   ;;  %v1433_v38 = vadd.f32 %v2767_v17, %v1066_v36  ;;  %v1465_v39 = vadd.f32 %v2767_v17, %v1194_v37  ;;  %v1068_v40 = vpop.f32.mrb[61].mxu0  ;;  %v1196_v41 = vpop.f32.mrb[61].mxu1 }
 0x194   : > { %v1069_v42 = vpop.f32.mrb[62].mxu0  ;;  %v1197_v43 = vpop.f32.mrb[62].mxu1 }
 0x195   : > { %v1434_v44 = vadd.f32 %v2767_v17, %v1069_v42  ;;  %v1466_v45 = vadd.f32 %v2767_v17, %v1197_v43  ;;  %v1071_v46 = vpop.f32.mrb[63].mxu0  ;;  %v1199_v47 = vpop.f32.mrb[63].mxu1  ;;  %v1497_v48 = vmax.f32 %v1433_v38, 0.0  ;;  %v1529_v49 = vmax.f32 %v1465_v39, 0.0 }
 0x197   : > { %v1498_v50 = vmax.f32 %v1434_v44, 0.0  ;;  %v1530_v51 = vmax.f32 %v1466_v45, 0.0 }
 0x199   : > { %v2267_v52 = vpack.c.bf16 %v1498_v50, %v1497_v48  ;;  %v2347_v53 = vpack.c.bf16 %v1530_v51, %v1529_v49 }
 0x19b   : > { %2363 = vst [vmem:[%s2777_s8 + $0x78] sm:$0xff] %v2267_v52   ;;  %2379 = vst [vmem:[%s2777_s8 + $0xf8] sm:$0xff] %v2347_v53  }
 0x19c PF: > { %s13_s14 = sadd.s32 1, %s2571_s14   ;;  %s2884_s12 = smov %s2567_s13 }
 0x19d   : > { %p10_p5 = scmp.ge.s32.totalorder %s13_s14, 6   ;;  %s2885_s13 = smov %s2887_s15 }
 0x19f   :  { %12 = sbr.rel (!%p10_p5) target bundleno = 2 (0x2), region = 76 }

// kernel: generator_forward.17
= control target key start
LH: loop header
LB: loop body
LE: loop exit
PB: predicated region body
PF: predicated region fallthrough
CT: control target
= control target key end

     0   :  { %s1499_s12 = smov 0   ;;  %s1501_s13 = smov 0   ;;  %s1636_s0 = inlined_call_operand.vmem [shape: bf16[512,128], index: 0, kind: input, shape index: {}]   ;;  %s1637_s1 = inlined_call_operand.vmem [shape: bf16[128,128], index: 1, kind: input, shape index: {}]   ;;  %s1638_s2 = inlined_call_operand.vmem [shape: f32[1,128], index: 2, kind: input, shape index: {}]   ;;  %s1639_s3 = inlined_call_operand.vmem [shape: bf16[512,128], index: 3, kind: output, shape index: {}]  }
   0x1   :  { %s1503_s14 = smov 0  }
   0x2 LB: > { %s32_s15 = sadd.s32 1, %s1473_s13  ;;  %p1128_p0 = scmp.ge.s32.totalorder %s1477_s14, 1  ;;  %s1477_s14 = sphi %s1503_s14, %s13_s14   ;;  %s1473_s13 = sphi %s1501_s13, %s1641_s13   ;;  %s1469_s12 = sphi %s1499_s12, %s1640_s12  }
   0x3   : > { %p34_p1 = scmp.ge.s32.totalorder %s32_s15, 2  ;;  %p188_p2 = scmp.lt.s32.totalorder %s1477_s14, 3 }
   0x5   : > { %s1643_s15 = smov (%p34_p1, %s32_s15), 0  ;;  %p189_p3 = pnand %p1128_p0, %p188_p2 }
   0x6   : > { %v1431_v0 = vld [vmem:[%s1637_s1] sm:$0xff] (!%p189_p3)   ;;  %s1129_s18 = sshll.u32 (!%p189_p3), %s1469_s12, 5  ;;  %v1432_v1 = vld [vmem:[%s1637_s1 + $0x8] sm:$0xff] (!%p189_p3)   ;;  %v1433_v2 = vld [vmem:[%s1637_s1 + $0x10] sm:$0xff] (!%p189_p3)  }
   0x7   : > { %192 = sbr.rel (%p189_p3) target bundleno = 285 (0x11d), region = 32  ;;  %p230_p4 = scmp.lt.s32.totalorder (!%p189_p3), %s1129_s18, 63  ;;  %1343 = vmatprep.subr.bf16.mxu0 (!%p189_p3), %v1431_v0  ;;  %1391 = vmatprep.subr.bf16.mxu1 (!%p189_p3), %v1431_v0  ;;  %v1434_v3 = vld [vmem:[%s1637_s1 + $0x18] sm:$0xff] (!%p189_p3)   ;;  %v1435_v6 = vld [vmem:[%s1637_s1 + $0x20] sm:$0xff] (!%p189_p3)   ;;  %v1436_v7 = vld [vmem:[%s1637_s1 + $0x28] sm:$0xff] (!%p189_p3)  }
   0x8   : > { %1344 = vmatpush3.bf16.msra.mxu0 (!%p189_p3), %v1431_v0  ;;  %1399 = vmatpush3.bf16.msra.mxu1 (!%p189_p3), %v1431_v0  ;;  %v1437_v8 = vld [vmem:[%s1637_s1 + $0x30] sm:$0xff] (!%p189_p3)   ;;  %v1438_v9 = vld [vmem:[%s1637_s1 + $0x38] sm:$0xff] (!%p189_p3)   ;;  %v1570_v24 = vld [vmem:[%s1638_s2] ss:$0 sm:$0xff] (!%p189_p3) }
   0x9   : > { %1345 = vmatprep.subr.bf16.mxu0 (!%p189_p3), %v1432_v1  ;;  %1392 = vmatprep.subr.bf16.mxu1 (!%p189_p3), %v1432_v1 }
   0xc   : > { %1346 = vmatpush3.bf16.msra.mxu0 (!%p189_p3), %v1432_v1  ;;  %1400 = vmatpush3.bf16.msra.mxu1 (!%p189_p3), %v1432_v1 }
   0xd   : > { %1347 = vmatprep.subr.bf16.mxu0 (!%p189_p3), %v1433_v2  ;;  %1393 = vmatprep.subr.bf16.mxu1 (!%p189_p3), %v1433_v2 }
   0xe   : > { %s1645_s18 = smov (!%p230_p4, %s1129_s18), 63 }
   0xf   : > { %s1130_s23 = sshll.u32 %s1645_s18, 2 }
  0x10   : > { %s1534_s26 = scalar_lea.vmem %s1636_s0, %s1130_s23  ;;  %1348 = vmatpush3.bf16.msra.mxu0 %v1433_v2  ;;  %1401 = vmatpush3.bf16.msra.mxu1 %v1433_v2  ;;  %s1585_s17 = scalar_lea.vmem %s1639_s3, %s1130_s23 }
  0x11   : > { %v1439_v4 = vld [vmem:[%s1534_s26] sm:$0xff]   ;;  %1349 = vmatprep.subr.bf16.mxu0 %v1434_v3  ;;  %1394 = vmatprep.subr.bf16.mxu1 %v1434_v3  ;;  %v1441_v10 = vld [vmem:[%s1534_s26 + $0x8] sm:$0xff]   ;;  %v1443_v12 = vld [vmem:[%s1534_s26 + $0x10] sm:$0xff]  }
  0x12   : > { %v1440_v5 = vld [vmem:[%s1534_s26 + $0x40] sm:$0xff]   ;;  %1359 = vmatprep.mubr.bf16.mxu0 %v1439_v4  ;;  %v1442_v11 = vld [vmem:[%s1534_s26 + $0x48] sm:$0xff]   ;;  %v1444_v13 = vld [vmem:[%s1534_s26 + $0x50] sm:$0xff]  }
  0x13   : > { %1375 = vmatprep.mubr.bf16.mxu1 %v1440_v5  ;;  %v1445_v14 = vld [vmem:[%s1534_s26 + $0x18] sm:$0xff]   ;;  %v1447_v16 = vld [vmem:[%s1534_s26 + $0x20] sm:$0xff]   ;;  %v1449_v18 = vld [vmem:[%s1534_s26 + $0x28] sm:$0xff]  }
  0x14   : > { %1350 = vmatpush3.bf16.msra.mxu0 %v1434_v3  ;;  %1402 = vmatpush3.bf16.msra.mxu1 %v1434_v3  ;;  %v1446_v15 = vld [vmem:[%s1534_s26 + $0x58] sm:$0xff]   ;;  %v1448_v17 = vld [vmem:[%s1534_s26 + $0x60] sm:$0xff]   ;;  %v1450_v19 = vld [vmem:[%s1534_s26 + $0x68] sm:$0xff]  }
  0x15   : > { %1351 = vmatprep.subr.bf16.mxu0 %v1435_v6  ;;  %1395 = vmatprep.subr.bf16.mxu1 %v1435_v6  ;;  %v1451_v20 = vld [vmem:[%s1534_s26 + $0x30] sm:$0xff]   ;;  %v1453_v22 = vld [vmem:[%s1534_s26 + $0x38] sm:$0xff]  }
  0x16   : > { %v1452_v21 = vld [vmem:[%s1534_s26 + $0x70] sm:$0xff]   ;;  %v1454_v23 = vld [vmem:[%s1534_s26 + $0x78] sm:$0xff]  }
  0x18   : > { %1352 = vmatpush3.bf16.msra.mxu0 %v1435_v6  ;;  %1403 = vmatpush3.bf16.msra.mxu1 %v1435_v6 }
  0x19   : > { %1353 = vmatprep.subr.bf16.mxu0 %v1436_v7  ;;  %1396 = vmatprep.subr.bf16.mxu1 %v1436_v7 }
  0x1c   : > { %1354 = vmatpush3.bf16.msra.mxu0 %v1436_v7  ;;  %1404 = vmatpush3.bf16.msra.mxu1 %v1436_v7 }
  0x1d   : > { %1355 = vmatprep.subr.bf16.mxu0 %v1437_v8  ;;  %1397 = vmatprep.subr.bf16.mxu1 %v1437_v8 }
  0x20   : > { %1356 = vmatpush3.bf16.msra.mxu0 %v1437_v8  ;;  %1405 = vmatpush3.bf16.msra.mxu1 %v1437_v8 }
  0x21   : > { %1357 = vmatprep.subr.bf16.mxu0 %v1438_v9  ;;  %1398 = vmatprep.subr.bf16.mxu1 %v1438_v9 }
  0x24   : > { %1358 = vmatpush3.bf16.msra.mxu0 %v1438_v9  ;;  %1406 = vmatpush3.bf16.msra.mxu1 %v1438_v9 }
  0x27   : > { %1360 = vmatmul.mubr.bf16.vlgmr.msra.gmra.mrb[0].mxu0 %v1441_v10  ;;  %1376 = vmatmul.mubr.bf16.vlgmr.msra.gmra.mrb[0].mxu1 %v1442_v11 }
  0x28   : > { %1363 = vmatprep.mubr.bf16.mxu0 %v1443_v12  ;;  %1379 = vmatprep.mubr.bf16.mxu1 %v1444_v13 }
  0x2f   : > { %1364 = vmatmul.mubr.bf16.gmra.mrb[4].mxu0 %v1445_v14  ;;  %1380 = vmatmul.mubr.bf16.gmra.mrb[4].mxu1 %v1446_v15 }
  0x30   : > { %1367 = vmatprep.mubr.bf16.mxu0 %v1447_v16  ;;  %1383 = vmatprep.mubr.bf16.mxu1 %v1448_v17 }
  0x37   : > { %1368 = vmatmul.mubr.bf16.gmra.mrb[8].mxu0 %v1449_v18  ;;  %1384 = vmatmul.mubr.bf16.gmra.mrb[8].mxu1 %v1450_v19 }
  0x38   : > { %1371 = vmatprep.mubr.bf16.mxu0 %v1451_v20  ;;  %1387 = vmatprep.mubr.bf16.mxu1 %v1452_v21 }
  0x3f   : > { %1372 = vmatmul.mubr.bf16.gmra.mrb[12].mxu0 %v1453_v22  ;;  %1388 = vmatmul.mubr.bf16.gmra.mrb[12].mxu1 %v1454_v23 }
  0xfa   : > { %v1361_v25 = vpop.f32.mrb[0].mxu0  ;;  %v1377_v26 = vpop.f32.mrb[0].mxu1 }
  0xfb   : > { %v789_v27 = vadd.f32 %v1361_v25, %v1570_v24  ;;  %v805_v28 = vadd.f32 %v1377_v26, %v1570_v24  ;;  %v554_v29 = vpop.f32.mrb[1].mxu0  ;;  %v618_v30 = vpop.f32.mrb[1].mxu1 }
  0xfc   : > { %v787_v31 = vadd.f32 %v1570_v24, %v554_v29  ;;  %v803_v32 = vadd.f32 %v1570_v24, %v618_v30  ;;  %v1362_v33 = vpop.f32.mrb[2].mxu0  ;;  %v1378_v34 = vpop.f32.mrb[2].mxu1 }
  0xfd   : > { %v790_v35 = vadd.f32 %v1362_v33, %v1570_v24  ;;  %v806_v36 = vadd.f32 %v1378_v34, %v1570_v24  ;;  %v557_v37 = vpop.f32.mrb[3].mxu0  ;;  %v621_v38 = vpop.f32.mrb[3].mxu1  ;;  %v821_v41 = vmax.f32 %v789_v27, 0.0  ;;  %v837_v42 = vmax.f32 %v805_v28, 0.0 }
  0xfe   : > { %v788_v39 = vadd.f32 %v1570_v24, %v557_v37  ;;  %v804_v40 = vadd.f32 %v1570_v24, %v621_v38  ;;  %v819_v45 = vmax.f32 %v787_v31, 0.0  ;;  %v835_v46 = vmax.f32 %v803_v32, 0.0 }
  0xff   : > { %v822_v43 = vmax.f32 %v790_v35, 0.0  ;;  %v838_v44 = vmax.f32 %v806_v36, 0.0 }
 0x100   : > { %v820_v47 = vmax.f32 %v788_v39, 0.0  ;;  %v836_v48 = vmax.f32 %v804_v40, 0.0 }
 0x101   : > { %v1232_v49 = vpack.c.bf16 %v822_v43, %v821_v41  ;;  %v1272_v50 = vpack.c.bf16 %v838_v44, %v837_v42 }
 0x102   : > { %v1227_v51 = vpack.c.bf16 %v820_v47, %v819_v45  ;;  %v1267_v52 = vpack.c.bf16 %v836_v48, %v835_v46  ;;  %v1365_v53 = vpop.f32.mrb[4].mxu0  ;;  %v1381_v54 = vpop.f32.mrb[4].mxu1 }
 0x103   : > { %1304 = vst [vmem:[%s1585_s17 + $0x8] sm:$0xff] %v1232_v49   ;;  %1312 = vst [vmem:[%s1585_s17 + $0x48] sm:$0xff] %v1272_v50   ;;  %v793_v55 = vadd.f32 %v1365_v53, %v1570_v24  ;;  %v809_v56 = vadd.f32 %v1381_v54, %v1570_v24  ;;  %v570_v57 = vpop.f32.mrb[5].mxu0  ;;  %v634_v58 = vpop.f32.mrb[5].mxu1 }
 0x104   : > { %1228 = vst [vmem:[%s1585_s17] sm:$0xff] %v1227_v51   ;;  %1311 = vst [vmem:[%s1585_s17 + $0x40] sm:$0xff] %v1267_v52   ;;  %v791_v59 = vadd.f32 %v1570_v24, %v570_v57  ;;  %v807_v60 = vadd.f32 %v1570_v24, %v634_v58  ;;  %v1366_v61 = vpop.f32.mrb[6].mxu0  ;;  %v1382_v62 = vpop.f32.mrb[6].mxu1 }
 0x105   : > { %v794_v63 = vadd.f32 %v1366_v61, %v1570_v24  ;;  %v810_v0 = vadd.f32 %v1382_v62, %v1570_v24  ;;  %v573_v1 = vpop.f32.mrb[7].mxu0  ;;  %v637_v2 = vpop.f32.mrb[7].mxu1  ;;  %v825_v5 = vmax.f32 %v793_v55, 0.0  ;;  %v841_v6 = vmax.f32 %v809_v56, 0.0 }
 0x106   : > { %v792_v3 = vadd.f32 %v1570_v24, %v573_v1  ;;  %v808_v4 = vadd.f32 %v1570_v24, %v637_v2  ;;  %v823_v9 = vmax.f32 %v791_v59, 0.0  ;;  %v839_v10 = vmax.f32 %v807_v60, 0.0 }
 0x107   : > { %v826_v7 = vmax.f32 %v794_v63, 0.0  ;;  %v842_v8 = vmax.f32 %v810_v0, 0.0 }
 0x108   : > { %v824_v11 = vmax.f32 %v792_v3, 0.0  ;;  %v840_v12 = vmax.f32 %v808_v4, 0.0 }
 0x109   : > { %v1242_v13 = vpack.c.bf16 %v826_v7, %v825_v5  ;;  %v1282_v14 = vpack.c.bf16 %v842_v8, %v841_v6 }
 0x10a   : > { %v1237_v15 = vpack.c.bf16 %v824_v11, %v823_v9  ;;  %v1277_v16 = vpack.c.bf16 %v840_v12, %v839_v10  ;;  %v1369_v17 = vpop.f32.mrb[8].mxu0  ;;  %v1385_v18 = vpop.f32.mrb[8].mxu1 }
 0x10b   : > { %1306 = vst [vmem:[%s1585_s17 + $0x18] sm:$0xff] %v1242_v13   ;;  %1314 = vst [vmem:[%s1585_s17 + $0x58] sm:$0xff] %v1282_v14   ;;  %v797_v19 = vadd.f32 %v1369_v17, %v1570_v24  ;;  %v813_v20 = vadd.f32 %v1385_v18, %v1570_v24  ;;  %v586_v21 = vpop.f32.mrb[9].mxu0  ;;  %v650_v22 = vpop.f32.mrb[9].mxu1 }
 0x10c   : > { %1305 = vst [vmem:[%s1585_s17 + $0x10] sm:$0xff] %v1237_v15   ;;  %1313 = vst [vmem:[%s1585_s17 + $0x50] sm:$0xff] %v1277_v16   ;;  %v795_v23 = vadd.f32 %v1570_v24, %v586_v21  ;;  %v811_v25 = vadd.f32 %v1570_v24, %v650_v22  ;;  %v1370_v26 = vpop.f32.mrb[10].mxu0  ;;  %v1386_v27 = vpop.f32.mrb[10].mxu1 }
 0x10d   : > { %v798_v28 = vadd.f32 %v1370_v26, %v1570_v24  ;;  %v814_v29 = vadd.f32 %v1386_v27, %v1570_v24  ;;  %v589_v30 = vpop.f32.mrb[11].mxu0  ;;  %v653_v31 = vpop.f32.mrb[11].mxu1  ;;  %v829_v34 = vmax.f32 %v797_v19, 0.0  ;;  %v845_v35 = vmax.f32 %v813_v20, 0.0 }
 0x10e   : > { %v796_v32 = vadd.f32 %v1570_v24, %v589_v30  ;;  %v812_v33 = vadd.f32 %v1570_v24, %v653_v31  ;;  %v827_v38 = vmax.f32 %v795_v23, 0.0  ;;  %v843_v39 = vmax.f32 %v811_v25, 0.0 }
 0x10f   : > { %v830_v36 = vmax.f32 %v798_v28, 0.0  ;;  %v846_v37 = vmax.f32 %v814_v29, 0.0 }
 0x110   : > { %v828_v40 = vmax.f32 %v796_v32, 0.0  ;;  %v844_v41 = vmax.f32 %v812_v33, 0.0 }
 0x111   : > { %v1252_v42 = vpack.c.bf16 %v830_v36, %v829_v34  ;;  %v1292_v43 = vpack.c.bf16 %v846_v37, %v845_v35 }
 0x112   : > { %v1247_v44 = vpack.c.bf16 %v828_v40, %v827_v38  ;;  %v1287_v45 = vpack.c.bf16 %v844_v41, %v843_v39  ;;  %v1373_v46 = vpop.f32.mrb[12].mxu0  ;;  %v1389_v47 = vpop.f32.mrb[12].mxu1 }
 0x113   : > { %1308 = vst [vmem:[%s1585_s17 + $0x28] sm:$0xff] %v1252_v42   ;;  %1316 = vst [vmem:[%s1585_s17 + $0x68] sm:$0xff] %v1292_v43   ;;  %v801_v48 = vadd.f32 %v1373_v46, %v1570_v24  ;;  %v817_v49 = vadd.f32 %v1389_v47, %v1570_v24  ;;  %v602_v50 = vpop.f32.mrb[13].mxu0  ;;  %v666_v51 = vpop.f32.mrb[13].mxu1 }
 0x114   : > { %1307 = vst [vmem:[%s1585_s17 + $0x20] sm:$0xff] %v1247_v44   ;;  %1315 = vst [vmem:[%s1585_s17 + $0x60] sm:$0xff] %v1287_v45   ;;  %v799_v52 = vadd.f32 %v1570_v24, %v602_v50  ;;  %v815_v53 = vadd.f32 %v1570_v24, %v666_v51  ;;  %v1374_v54 = vpop.f32.mrb[14].mxu0  ;;  %v1390_v55 = vpop.f32.mrb[14].mxu1 }
 0x115   : > { %v802_v56 = vadd.f32 %v1374_v54, %v1570_v24  ;;  %v818_v57 = vadd.f32 %v1390_v55, %v1570_v24  ;;  %v605_v58 = vpop.f32.mrb[15].mxu0  ;;  %v669_v59 = vpop.f32.mrb[15].mxu1  ;;  %v833_v62 = vmax.f32 %v801_v48, 0.0  ;;  %v849_v63 = vmax.f32 %v817_v49, 0.0 }
 0x116   : > { %v800_v60 = vadd.f32 %v1570_v24, %v605_v58  ;;  %v816_v61 = vadd.f32 %v1570_v24, %v669_v59  ;;  %v831_v2 = vmax.f32 %v799_v52, 0.0  ;;  %v847_v3 = vmax.f32 %v815_v53, 0.0 }
 0x117   : > { %v834_v0 = vmax.f32 %v802_v56, 0.0  ;;  %v850_v1 = vmax.f32 %v818_v57, 0.0 }
 0x118   : > { %v832_v4 = vmax.f32 %v800_v60, 0.0  ;;  %v848_v5 = vmax.f32 %v816_v61, 0.0 }
 0x119   : > { %v1262_v6 = vpack.c.bf16 %v834_v0, %v833_v62  ;;  %v1302_v7 = vpack.c.bf16 %v850_v1, %v849_v63 }
 0x11a   : > { %v1257_v8 = vpack.c.bf16 %v832_v4, %v831_v2  ;;  %v1297_v9 = vpack.c.bf16 %v848_v5, %v847_v3 }
 0x11b   : > { %1310 = vst [vmem:[%s1585_s17 + $0x38] sm:$0xff] %v1262_v6   ;;  %1318 = vst [vmem:[%s1585_s17 + $0x78] sm:$0xff] %v1302_v7  }
 0x11c   : > { %1309 = vst [vmem:[%s1585_s17 + $0x30] sm:$0xff] %v1257_v8   ;;  %1317 = vst [vmem:[%s1585_s17 + $0x70] sm:$0xff] %v1297_v9  }
 0x11d PF: > { %s13_s14 = sadd.s32 1, %s1477_s14   ;;  %s1640_s12 = smov %s1473_s13 }
 0x11e   : > { %p10_p5 = scmp.ge.s32.totalorder %s13_s14, 4   ;;  %s1641_s13 = smov %s1643_s15 }
 0x120   :  { %12 = sbr.rel (!%p10_p5) target bundleno = 2 (0x2), region = 76 }

// kernel: generator_forward.18
= control target key start
LH: loop header
LB: loop body
LE: loop exit
PB: predicated region body
PF: predicated region fallthrough
CT: control target
= control target key end

     0   :  { %s964_s12 = smov 0   ;;  %s966_s13 = smov 0   ;;  %s1062_s0 = inlined_call_operand.vmem [shape: bf16[128,256], index: 0, kind: input, shape index: {}]   ;;  %s1063_s1 = inlined_call_operand.vmem [shape: bf16[256,128], index: 1, kind: input, shape index: {}]   ;;  %s1064_s2 = inlined_call_operand.vmem [shape: f32[1,128], index: 2, kind: input, shape index: {}]   ;;  %s1065_s3 = inlined_call_operand.vmem [shape: bf16[128,128], index: 3, kind: output, shape index: {}]  }
   0x1   :  { %s968_s14 = smov 0  }
   0x2 LB: > { %s32_s15 = sadd.s32 1, %s938_s13  ;;  %p739_p0 = scmp.ge.s32.totalorder %s942_s14, 1  ;;  %s942_s14 = sphi %s968_s14, %s13_s14   ;;  %s938_s13 = sphi %s966_s13, %s1067_s13   ;;  %s934_s12 = sphi %s964_s12, %s1066_s12  }
   0x3   : > { %p34_p1 = scmp.ge.s32.totalorder %s32_s15, 2  ;;  %p191_p2 = scmp.lt.s32.totalorder %s942_s14, 3 }
   0x5   : > { %s1069_s15 = smov (%p34_p1, %s32_s15), 0  ;;  %p192_p3 = pnand %p739_p0, %p191_p2 }
   0x6   : > { %v892_v0 = vld [vmem:[%s1063_s1 + $0x40] sm:$0xff] (!%p192_p3)   ;;  %s740_s18 = sshll.u32 (!%p192_p3), %s934_s12, 3  ;;  %v894_v2 = vld [vmem:[%s1063_s1 + $0x48] sm:$0xff] (!%p192_p3)   ;;  %v896_v4 = vld [vmem:[%s1063_s1 + $0x50] sm:$0xff] (!%p192_p3)  }
   0x7   : > { %195 = sbr.rel (%p192_p3) target bundleno = 272 (0x110), region = 32  ;;  %v893_v1 = vld [vmem:[%s1063_s1] sm:$0xff] (!%p192_p3)   ;;  %812 = vmatprep.subr.bf16.mxu0 (!%p192_p3), %v892_v0  ;;  %852 = vmatprep.subr.bf16.mxu1 (!%p192_p3), %v892_v0  ;;  %v895_v3 = vld [vmem:[%s1063_s1 + $0x8] sm:$0xff] (!%p192_p3)   ;;  %p236_p4 = scmp.lt.s32.totalorder (!%p192_p3), %s740_s18, 15  ;;  %v897_v5 = vld [vmem:[%s1063_s1 + $0x10] sm:$0xff] (!%p192_p3)  }
   0x8   : > { %813 = vmatpush3.bf16.msra.mxu0 (!%p192_p3), %v893_v1  ;;  %860 = vmatpush3.bf16.msra.mxu1 (!%p192_p3), %v893_v1  ;;  %v898_v6 = vld [vmem:[%s1063_s1 + $0x58] sm:$0xff] (!%p192_p3)   ;;  %v900_v8 = vld [vmem:[%s1063_s1 + $0x60] sm:$0xff] (!%p192_p3)   ;;  %v902_v10 = vld [vmem:[%s1063_s1 + $0x68] sm:$0xff] (!%p192_p3)  }
   0x9   : > { %814 = vmatprep.subr.bf16.mxu0 (!%p192_p3), %v894_v2  ;;  %853 = vmatprep.subr.bf16.mxu1 (!%p192_p3), %v894_v2  ;;  %v899_v7 = vld [vmem:[%s1063_s1 + $0x18] sm:$0xff] (!%p192_p3)   ;;  %v901_v9 = vld [vmem:[%s1063_s1 + $0x20] sm:$0xff] (!%p192_p3)   ;;  %v903_v13 = vld [vmem:[%s1063_s1 + $0x28] sm:$0xff] (!%p192_p3)  }
   0xa   : > { %v904_v14 = vld [vmem:[%s1063_s1 + $0x70] sm:$0xff] (!%p192_p3)   ;;  %v906_v16 = vld [vmem:[%s1063_s1 + $0x78] sm:$0xff] (!%p192_p3)   ;;  %v769_v27 = vld [vmem:[%s1064_s2] ss:$0 sm:$0xff] (!%p192_p3) }
   0xb   : > { %v905_v15 = vld [vmem:[%s1063_s1 + $0x30] sm:$0xff] (!%p192_p3)   ;;  %v907_v17 = vld [vmem:[%s1063_s1 + $0x38] sm:$0xff] (!%p192_p3)  }
   0xc   : > { %815 = vmatpush3.bf16.msra.mxu0 (!%p192_p3), %v895_v3  ;;  %861 = vmatpush3.bf16.msra.mxu1 (!%p192_p3), %v895_v3 }
   0xd   : > { %816 = vmatprep.subr.bf16.mxu0 (!%p192_p3), %v896_v4  ;;  %854 = vmatprep.subr.bf16.mxu1 (!%p192_p3), %v896_v4 }
   0xe   : > { %s1071_s18 = smov (!%p236_p4, %s740_s18), 15 }
   0xf   : > { %s780_s6 = sshll.u32 %s1071_s18, 3  ;;  %s744_s5 = sshll.u32 %s1071_s18, 2 }
  0x10   : > { %817 = vmatpush3.bf16.msra.mxu0 %v897_v5  ;;  %862 = vmatpush3.bf16.msra.mxu1 %v897_v5  ;;  %s1015_s11 = scalar_lea.vmem %s1062_s0, %s780_s6  ;;  %s265_s8 = scalar_lea.vmem %s1065_s3, %s744_s5 }
  0x11   : > { %818 = vmatprep.subr.bf16.mxu0 %v898_v6  ;;  %855 = vmatprep.subr.bf16.mxu1 %v898_v6  ;;  %v910_v11 = vld [vmem:[%s1015_s11 + $0x4] ss:$8 sps:$4 sm:$0xff]   ;;  %v908_v18 = vld [vmem:[%s1015_s11] ss:$8 sps:$4 sm:$0xff]   ;;  %v914_v20 = vld [vmem:[%s1015_s11 + $0x14] ss:$8 sps:$4 sm:$0xff]  }
  0x12   : > { %v913_v12 = vld [vmem:[%s1015_s11 + $0x24] ss:$8 sps:$4 sm:$0xff]   ;;  %496 = vmatprep.mubr.bf16.mxu0 %v910_v11  ;;  %v911_v19 = vld [vmem:[%s1015_s11 + $0x20] ss:$8 sps:$4 sm:$0xff]   ;;  %v916_v21 = vld [vmem:[%s1015_s11 + $0x34] ss:$8 sps:$4 sm:$0xff]  }
  0x13   : > { %512 = vmatprep.mubr.bf16.mxu1 %v913_v12  ;;  %v918_v22 = vld [vmem:[%s1015_s11 + $0x10] ss:$8 sps:$4 sm:$0xff]  }
  0x14   : > { %819 = vmatpush3.bf16.msra.mxu0 %v899_v7  ;;  %863 = vmatpush3.bf16.msra.mxu1 %v899_v7  ;;  %v919_v23 = vld [vmem:[%s1015_s11 + $0x30] ss:$8 sps:$4 sm:$0xff]  }
  0x15   : > { %820 = vmatprep.subr.bf16.mxu0 %v900_v8  ;;  %856 = vmatprep.subr.bf16.mxu1 %v900_v8 }
  0x18   : > { %821 = vmatpush3.bf16.msra.mxu0 %v901_v9  ;;  %864 = vmatpush3.bf16.msra.mxu1 %v901_v9 }
  0x19   : > { %822 = vmatprep.subr.bf16.mxu0 %v902_v10  ;;  %857 = vmatprep.subr.bf16.mxu1 %v902_v10 }
  0x1c   : > { %823 = vmatpush3.bf16.msra.mxu0 %v903_v13  ;;  %865 = vmatpush3.bf16.msra.mxu1 %v903_v13 }
  0x1d   : > { %824 = vmatprep.subr.bf16.mxu0 %v904_v14  ;;  %858 = vmatprep.subr.bf16.mxu1 %v904_v14 }
  0x20   : > { %825 = vmatpush3.bf16.msra.mxu0 %v905_v15  ;;  %866 = vmatpush3.bf16.msra.mxu1 %v905_v15 }
  0x21   : > { %826 = vmatprep.subr.bf16.mxu0 %v906_v16  ;;  %859 = vmatprep.subr.bf16.mxu1 %v906_v16 }
  0x24   : > { %827 = vmatpush3.bf16.msra.mxu0 %v907_v17  ;;  %867 = vmatpush3.bf16.msra.mxu1 %v907_v17 }
  0x27   : > { %497 = vmatmul.mubr.bf16.vlgmr.msra.gmra.mrb[0].mxu0 %v908_v18  ;;  %513 = vmatmul.mubr.bf16.vlgmr.msra.gmra.mrb[0].mxu1 %v911_v19 }
  0x28   : > { %504 = vmatprep.mubr.bf16.mxu0 %v914_v20  ;;  %520 = vmatprep.mubr.bf16.mxu1 %v916_v21 }
  0x2f   : > { %505 = vmatmul.mubr.bf16.gmra.mrb[4].mxu0 %v918_v22  ;;  %521 = vmatmul.mubr.bf16.gmra.mrb[4].mxu1 %v919_v23 }
  0xfa   : > { %v828_v24 = vpop.f32.mrb[0].mxu0  ;;  %v840_v25 = vpop.f32.mrb[0].mxu1 }
  0xfb   : > { %v829_v26 = vpop.f32.mrb[1].mxu0  ;;  %v841_v28 = vpop.f32.mrb[1].mxu1 }
  0xfc   : > { %v830_v29 = vadd.f32 %v829_v26, %v828_v24  ;;  %v842_v30 = vadd.f32 %v841_v28, %v840_v25  ;;  %v831_v31 = vpop.f32.mrb[2].mxu0  ;;  %v843_v32 = vpop.f32.mrb[2].mxu1 }
  0xfd   : > { %v832_v33 = vpop.f32.mrb[3].mxu0  ;;  %v844_v34 = vpop.f32.mrb[3].mxu1 }
  0xfe   : > { %v563_v35 = vadd.f32 %v830_v29, %v769_v27  ;;  %v567_v36 = vadd.f32 %v842_v30, %v769_v27  ;;  %v833_v37 = vadd.f32 %v832_v33, %v831_v31  ;;  %v845_v38 = vadd.f32 %v844_v34, %v843_v32 }
 0x100   : > { %v564_v39 = vadd.f32 %v833_v37, %v769_v27  ;;  %v568_v40 = vadd.f32 %v845_v38, %v769_v27  ;;  %v571_v41 = vmax.f32 %v563_v35, 0.0  ;;  %v575_v42 = vmax.f32 %v567_v36, 0.0 }
 0x102   : > { %v572_v43 = vmax.f32 %v564_v39, 0.0  ;;  %v576_v44 = vmax.f32 %v568_v40, 0.0  ;;  %v834_v45 = vpop.f32.mrb[4].mxu0  ;;  %v846_v46 = vpop.f32.mrb[4].mxu1 }
 0x103   : > { %v835_v47 = vpop.f32.mrb[5].mxu0  ;;  %v847_v48 = vpop.f32.mrb[5].mxu1 }
 0x104   : > { %v792_v49 = vpack.c.bf16 %v572_v43, %v571_v41  ;;  %v802_v50 = vpack.c.bf16 %v576_v44, %v575_v42  ;;  %v836_v51 = vadd.f32 %v835_v47, %v834_v45  ;;  %v848_v52 = vadd.f32 %v847_v48, %v846_v46  ;;  %v837_v53 = vpop.f32.mrb[6].mxu0  ;;  %v849_v54 = vpop.f32.mrb[6].mxu1 }
 0x105   : > { %v838_v55 = vpop.f32.mrb[7].mxu0  ;;  %v850_v56 = vpop.f32.mrb[7].mxu1 }
 0x106   : > { %793 = vst [vmem:[%s265_s8] sm:$0xff] %v792_v49   ;;  %810 = vst [vmem:[%s265_s8 + $0x10] sm:$0xff] %v802_v50   ;;  %v565_v57 = vadd.f32 %v836_v51, %v769_v27  ;;  %v569_v58 = vadd.f32 %v848_v52, %v769_v27  ;;  %v839_v59 = vadd.f32 %v838_v55, %v837_v53 }
 0x107   : > { %v851_v60 = vadd.f32 %v850_v56, %v849_v54 }
 0x108   : > { %v566_v61 = vadd.f32 %v839_v59, %v769_v27  ;;  %v573_v63 = vmax.f32 %v565_v57, 0.0  ;;  %v577_v0 = vmax.f32 %v569_v58, 0.0 }
 0x109   : > { %v570_v62 = vadd.f32 %v851_v60, %v769_v27 }
 0x10a   : > { %v574_v1 = vmax.f32 %v566_v61, 0.0 }
 0x10b   : > { %v578_v2 = vmax.f32 %v570_v62, 0.0 }
 0x10c   : > { %v797_v3 = vpack.c.bf16 %v574_v1, %v573_v63 }
 0x10d   : > { %v807_v4 = vpack.c.bf16 %v578_v2, %v577_v0 }
 0x10e   : > { %809 = vst [vmem:[%s265_s8 + $0x8] sm:$0xff] %v797_v3  }
 0x10f   : > { %811 = vst [vmem:[%s265_s8 + $0x18] sm:$0xff] %v807_v4  }
 0x110 PF: > { %s13_s14 = sadd.s32 1, %s942_s14   ;;  %s1066_s12 = smov %s938_s13 }
 0x111   : > { %p10_p5 = scmp.ge.s32.totalorder %s13_s14, 4   ;;  %s1067_s13 = smov %s1069_s15 }
 0x113   :  { %12 = sbr.rel (!%p10_p5) target bundleno = 2 (0x2), region = 76 }

// kernel: generator_forward.19
= control target key start
LH: loop header
LB: loop body
LE: loop exit
PB: predicated region body
PF: predicated region fallthrough
CT: control target
= control target key end

     0   :  { %s916_s12 = smov 0   ;;  %s918_s13 = smov 0   ;;  %s1031_s0 = inlined_call_operand.vmem [shape: bf16[32,384], index: 0, kind: input, shape index: {}]   ;;  %s1032_s1 = inlined_call_operand.vmem [shape: bf16[384,128], index: 1, kind: input, shape index: {}]   ;;  %s1033_s2 = inlined_call_operand.vmem [shape: f32[1,128], index: 2, kind: input, shape index: {}]   ;;  %s1034_s3 = inlined_call_operand.vmem [shape: bf16[32,128], index: 3, kind: output, shape index: {}]  }
   0x1   :  { %s920_s14 = smov 0  }
   0x2 LB: > { %s32_s15 = sadd.s32 1, %s888_s13  ;;  %p720_p0 = scmp.ge.s32.totalorder %s892_s14, 1  ;;  %s892_s14 = sphi %s920_s14, %s13_s14   ;;  %s888_s13 = sphi %s918_s13, %s1036_s13   ;;  %s884_s12 = sphi %s916_s12, %s1035_s12  }
   0x3   : > { %p34_p1 = scmp.ge.s32.totalorder %s32_s15, 2  ;;  %p191_p2 = scmp.lt.s32.totalorder %s892_s14, 3 }
   0x5   : > { %s1038_s15 = smov (%p34_p1, %s32_s15), 0  ;;  %p192_p3 = pnand %p720_p0, %p191_p2 }
   0x6   : > { %v842_v0 = vld [vmem:[%s1032_s1 + $0x40] sm:$0xff] (!%p192_p3)   ;;  %v894_v1 = vmov (!%p192_p3), 0.0   ;;  %v845_v4 = vld [vmem:[%s1032_s1 + $0x48] sm:$0xff] (!%p192_p3)   ;;  %vm895_vm0 = vmmov (!%p192_p3), 0   ;;  %v848_v7 = vld [vmem:[%s1032_s1 + $0x50] sm:$0xff] (!%p192_p3)   ;;  %s721_s5 = sshll.u32 (!%p192_p3), %s884_s12, 1 }
   0x7   : > { %195 = sbr.rel (%p192_p3) target bundleno = 265 (0x109), region = 32  ;;  %795 = vmatprep.subr.bf16.mxu1 (!%p192_p3), %v894_v1  ;;  %v843_v2 = vld [vmem:[%s1032_s1] sm:$0xff] (!%p192_p3)   ;;  %764 = vmatprep.subr.bf16.mxu0 (!%p192_p3), %v842_v0  ;;  %v846_v5 = vld [vmem:[%s1032_s1 + $0x8] sm:$0xff] (!%p192_p3)   ;;  %v849_v8 = vld [vmem:[%s1032_s1 + $0x10] sm:$0xff] (!%p192_p3)   ;;  %p236_p4 = scmp.lt.s32.totalorder (!%p192_p3), %s721_s5, 3 }
   0x8   : > { %v844_v3 = vld [vmem:[%s1032_s1 + $0x80] sm:$0xff] (!%p192_p3)   ;;  %765 = vmatpush3.bf16.msra.mxu0 (!%p192_p3), %v843_v2  ;;  %811 = vmatprep.mubr.msk.bf16.mxu1 (!%p192_p3), %vm895_vm0, %v894_v1  ;;  %v847_v6 = vld [vmem:[%s1032_s1 + $0x88] sm:$0xff] (!%p192_p3)   ;;  %v850_v9 = vld [vmem:[%s1032_s1 + $0x90] sm:$0xff] (!%p192_p3)  }
   0x9   : > { %796 = vmatpush3.bf16.msra.mxu1 (!%p192_p3), %v844_v3  ;;  %766 = vmatprep.subr.bf16.mxu0 (!%p192_p3), %v845_v4  ;;  %v851_v10 = vld [vmem:[%s1032_s1 + $0x58] sm:$0xff] (!%p192_p3)   ;;  %v854_v13 = vld [vmem:[%s1032_s1 + $0x60] sm:$0xff] (!%p192_p3)   ;;  %v857_v16 = vld [vmem:[%s1032_s1 + $0x68] sm:$0xff] (!%p192_p3)  }
   0xa   : > { %797 = vmatprep.subr.bf16.mxu1 (!%p192_p3), %v894_v1  ;;  %v852_v11 = vld [vmem:[%s1032_s1 + $0x18] sm:$0xff] (!%p192_p3)   ;;  %v855_v14 = vld [vmem:[%s1032_s1 + $0x20] sm:$0xff] (!%p192_p3)   ;;  %v858_v17 = vld [vmem:[%s1032_s1 + $0x28] sm:$0xff] (!%p192_p3)  }
   0xb   : > { %v853_v12 = vld [vmem:[%s1032_s1 + $0x98] sm:$0xff] (!%p192_p3)   ;;  %v856_v15 = vld [vmem:[%s1032_s1 + $0xa0] sm:$0xff] (!%p192_p3)   ;;  %v859_v18 = vld [vmem:[%s1032_s1 + $0xa8] sm:$0xff] (!%p192_p3)  }
   0xc   : > { %767 = vmatpush3.bf16.msra.mxu0 (!%p192_p3), %v846_v5  ;;  %v860_v19 = vld [vmem:[%s1032_s1 + $0x70] sm:$0xff] (!%p192_p3)   ;;  %v863_v22 = vld [vmem:[%s1032_s1 + $0x78] sm:$0xff] (!%p192_p3)   ;;  %v752_v34 = vld [vmem:[%s1033_s2] ss:$0 sm:$0xff] (!%p192_p3) }
   0xd   : > { %798 = vmatpush3.bf16.msra.mxu1 (!%p192_p3), %v847_v6  ;;  %768 = vmatprep.subr.bf16.mxu0 (!%p192_p3), %v848_v7  ;;  %v861_v20 = vld [vmem:[%s1032_s1 + $0x30] sm:$0xff] (!%p192_p3)   ;;  %v864_v24 = vld [vmem:[%s1032_s1 + $0x38] sm:$0xff] (!%p192_p3)  }
   0xe   : > { %799 = vmatprep.subr.bf16.mxu1 %v894_v1  ;;  %s1040_s5 = smov (!%p236_p4, %s721_s5), 3  ;;  %v862_v21 = vld [vmem:[%s1032_s1 + $0xb0] sm:$0xff]   ;;  %v865_v25 = vld [vmem:[%s1032_s1 + $0xb8] sm:$0xff]  }
   0xf   : > { %s815_s27 = smul.u32 12, %s1040_s5  ;;  %s724_s24 = sshll.u32 %s1040_s5, 2 }
  0x10   : > { %769 = vmatpush3.bf16.msra.mxu0 %v849_v8 }
  0x11   : > { %800 = vmatpush3.bf16.msra.mxu1 %v850_v9  ;;  %770 = vmatprep.subr.bf16.mxu0 %v851_v10  ;;  %s243_s10 = scalar_lea.vmem %s1031_s0, %s815_s27  ;;  %s265_s27 = scalar_lea.vmem %s1034_s3, %s724_s24 }
  0x12   : > { %801 = vmatprep.subr.bf16.mxu1 %v894_v1  ;;  %v868_v23 = vld [vmem:[%s243_s10 + $0x4] ss:$12 sps:$4 sm:$0xff]   ;;  %v866_v26 = vld [vmem:[%s243_s10] ss:$12 sps:$4 sm:$0xff]   ;;  %v869_v27 = vld [vmem:[%s243_s10 + $0x8] ss:$12 sps:$4 sm:$0xff]  }
  0x13   : > { %520 = vmatprep.mubr.bf16.mxu0 %v868_v23 }
  0x14   : > { %771 = vmatpush3.bf16.msra.mxu0 %v852_v11 }
  0x15   : > { %802 = vmatpush3.bf16.msra.mxu1 %v853_v12  ;;  %772 = vmatprep.subr.bf16.mxu0 %v854_v13 }
  0x16   : > { %803 = vmatprep.subr.bf16.mxu1 %v894_v1 }
  0x18   : > { %773 = vmatpush3.bf16.msra.mxu0 %v855_v14 }
  0x19   : > { %804 = vmatpush3.bf16.msra.mxu1 %v856_v15  ;;  %774 = vmatprep.subr.bf16.mxu0 %v857_v16 }
  0x1a   : > { %805 = vmatprep.subr.bf16.mxu1 %v894_v1 }
  0x1c   : > { %775 = vmatpush3.bf16.msra.mxu0 %v858_v17 }
  0x1d   : > { %806 = vmatpush3.bf16.msra.mxu1 %v859_v18  ;;  %776 = vmatprep.subr.bf16.mxu0 %v860_v19 }
  0x1e   : > { %807 = vmatprep.subr.bf16.mxu1 %v894_v1 }
  0x20   : > { %777 = vmatpush3.bf16.msra.mxu0 %v861_v20 }
  0x21   : > { %808 = vmatpush3.bf16.msra.mxu1 %v862_v21  ;;  %778 = vmatprep.subr.bf16.mxu0 %v863_v22 }
  0x22   : > { %809 = vmatprep.subr.bf16.mxu1 %v894_v1 }
  0x24   : > { %779 = vmatpush3.bf16.msra.mxu0 %v864_v24 }
  0x25   : > { %810 = vmatpush3.bf16.msra.mxu1 %v865_v25 }
  0x27   : > { %521 = vmatmul.mubr.bf16.vlgmr.msra.gmra.mrb[0].mxu0 %v866_v26 }
  0x28   : > { %812 = vmatmul.mubr.bf16.vlgmr.msra.gmra.mrb[0].mxu1 %v869_v27 }
  0xfa   : > { %v780_v28 = vpop.f32.mrb[0].mxu0 }
  0xfb   : > { %v563_v29 = vpop.f32.mrb[0].mxu1  ;;  %v781_v30 = vpop.f32.mrb[1].mxu0 }
  0xfc   : > { %v782_v31 = vadd.f32 %v781_v30, %v780_v28  ;;  %v813_v32 = vpop.f32.mrb[1].mxu1  ;;  %v783_v33 = vpop.f32.mrb[2].mxu0 }
  0xfd   : > { %v566_v35 = vpop.f32.mrb[2].mxu1  ;;  %v784_v36 = vpop.f32.mrb[3].mxu0 }
  0xfe   : > { %v564_v37 = vadd.f32 %v782_v31, %v563_v29  ;;  %v785_v38 = vadd.f32 %v784_v36, %v783_v33  ;;  %v814_v39 = vpop.f32.mrb[3].mxu1 }
 0x100   : > { %v586_v40 = vadd.f32 %v752_v34, %v564_v37  ;;  %v567_v41 = vadd.f32 %v785_v38, %v566_v35 }
 0x102   : > { %v587_v42 = vadd.f32 %v752_v34, %v567_v41  ;;  %v588_v43 = vmax.f32 %v586_v40, 0.0 }
 0x104   : > { %v589_v44 = vmax.f32 %v587_v42, 0.0 }
 0x106   : > { %v762_v45 = vpack.c.bf16 %v589_v44, %v588_v43 }
 0x108   : > { %763 = vst [vmem:[%s265_s27] sm:$0xff] %v762_v45  }
 0x109 PF: > { %s13_s14 = sadd.s32 1, %s892_s14   ;;  %s1035_s12 = smov %s888_s13 }
 0x10a   : > { %p10_p5 = scmp.ge.s32.totalorder %s13_s14, 4   ;;  %s1036_s13 = smov %s1038_s15 }
 0x10c   :  { %12 = sbr.rel (!%p10_p5) target bundleno = 2 (0x2), region = 76 }

// kernel: generator_forward.20
= control target key start
LH: loop header
LB: loop body
LE: loop exit
PB: predicated region body
PF: predicated region fallthrough
CT: control target
= control target key end

     0   :  { %s866_s12 = smov 0   ;;  %s868_s13 = smov 0   ;;  %s941_s0 = inlined_call_operand.vmem [shape: bf16[8,768], index: 0, kind: input, shape index: {}]   ;;  %s942_s1 = inlined_call_operand.vmem [shape: bf16[768,128], index: 1, kind: input, shape index: {}]   ;;  %s943_s2 = inlined_call_operand.vmem [shape: f32[1,128], index: 2, kind: input, shape index: {}]   ;;  %s944_s3 = inlined_call_operand.vmem [shape: bf16[8,128], index: 3, kind: output, shape index: {}]  }
   0x1   :  { %s870_s14 = smov 0  }
   0x2 LB: > { %s25_s15 = sadd.s32 1, %s837_s13  ;;  %p678_p0 = scmp.ge.s32.totalorder %s841_s14, 1  ;;  %s841_s14 = sphi %s870_s14, %s13_s14   ;;  %s837_s13 = sphi %s868_s13, %s946_s13   ;;  %s833_s12 = sphi %s866_s12, %s945_s12  }
   0x3   : > { %p26_p1 = scmp.ge.s32.totalorder %s25_s15, 2  ;;  %p189_p2 = scmp.lt.s32.totalorder %s841_s14, 3 }
   0x5   : > { %s948_s15 = smov (%p26_p1, %s25_s15), 0  ;;  %p190_p3 = pnand %p678_p0, %p189_p2 }
   0x6   : > { %s230_s16 = smul.u32 (!%p190_p3), 3, %s833_s12  ;;  %p681_p6 = scmp.ne.s32.totalorder (!%p190_p3), %s833_s12, 0 }
   0x7   : > { %193 = sbr.rel (%p190_p3) target bundleno = 291 (0x123), region = 32 }
   0x8   : > { %s240_s17 = smul.u32 (!%p190_p3), 48, %s833_s12  ;;  %p233_p4 = scmp.lt.s32.totalorder (!%p190_p3), %s230_s16, 5 }
   0xa   : > { %p241_p5 = scmp.lt.s32.totalorder (!%p190_p3), %s240_s17, 95 }
   0xe   : > { %s950_s16 = smov (!%p233_p4, %s230_s16), 5  ;;  %s952_s17 = smov (!%p241_p5, %s240_s17), 95 }
   0xf   : > { %s679_s18 = sshll.u32 %s950_s16, 2  ;;  %s680_s22 = sshll.u32 %s952_s17, 2  ;;  %v843_v0 = vmov (!%p681_p6), 0.0  }
  0x10   : > { %s891_s21 = scalar_lea.vmem %s941_s0, %s679_s18  ;;  %s896_s25 = scalar_lea.vmem %s942_s1, %s680_s22  ;;  %264 = vst [vmem:[#allocation2] sm:$0xff] (!%p681_p6), %v843_v0 }
  0x11   : > { %263 = sbr.rel (%p681_p6) target bundleno = 24 (0x18), region = 36 }
  0x18 PF: > { %v792_v1 = vld [vmem:[%s896_s25 + $0x40] sm:$0xff]   ;;  %v844_v2 = vmov 0.0   ;;  %vm845_vm0 = vmmov 0   ;;  %v795_v5 = vld [vmem:[%s896_s25 + $0x48] sm:$0xff]   ;;  %v798_v8 = vld [vmem:[%s896_s25 + $0x50] sm:$0xff]   ;;  %p709_p7 = scmp.ne.s32.totalorder %s833_s12, 1 }
  0x19   : > { %745 = vmatprep.subr.bf16.mxu1 %v844_v2  ;;  %v793_v3 = vld [vmem:[%s896_s25] sm:$0xff]   ;;  %714 = vmatprep.subr.bf16.mxu0 %v792_v1  ;;  %v796_v6 = vld [vmem:[%s896_s25 + $0x8] sm:$0xff]   ;;  %v799_v9 = vld [vmem:[%s896_s25 + $0x10] sm:$0xff]  }
  0x1a   : > { %v794_v4 = vld [vmem:[%s896_s25 + $0x80] sm:$0xff]   ;;  %761 = vmatprep.mubr.msk.bf16.mxu1 %vm845_vm0, %v844_v2  ;;  %715 = vmatpush3.bf16.msra.mxu0 %v793_v3  ;;  %v797_v7 = vld [vmem:[%s896_s25 + $0x88] sm:$0xff]   ;;  %v800_v10 = vld [vmem:[%s896_s25 + $0x90] sm:$0xff]  }
  0x1b   : > { %746 = vmatpush3.bf16.msra.mxu1 %v794_v4  ;;  %716 = vmatprep.subr.bf16.mxu0 %v795_v5  ;;  %v801_v11 = vld [vmem:[%s896_s25 + $0x58] sm:$0xff]   ;;  %v804_v14 = vld [vmem:[%s896_s25 + $0x60] sm:$0xff]   ;;  %v807_v17 = vld [vmem:[%s896_s25 + $0x68] sm:$0xff]  }
  0x1c   : > { %747 = vmatprep.subr.bf16.mxu1 %v844_v2  ;;  %v802_v12 = vld [vmem:[%s896_s25 + $0x18] sm:$0xff]   ;;  %v805_v15 = vld [vmem:[%s896_s25 + $0x20] sm:$0xff]   ;;  %v808_v18 = vld [vmem:[%s896_s25 + $0x28] sm:$0xff]  }
  0x1d   : > { %v803_v13 = vld [vmem:[%s896_s25 + $0x98] sm:$0xff]   ;;  %v806_v16 = vld [vmem:[%s896_s25 + $0xa0] sm:$0xff]   ;;  %v809_v19 = vld [vmem:[%s896_s25 + $0xa8] sm:$0xff]  }
  0x1e   : > { %717 = vmatpush3.bf16.msra.mxu0 %v796_v6  ;;  %v810_v20 = vld [vmem:[%s896_s25 + $0x70] sm:$0xff]   ;;  %v813_v23 = vld [vmem:[%s896_s25 + $0x78] sm:$0xff]   ;;  %v266_v24 = vld [vmem:[%s891_s21] sm:$0xff] }
  0x1f   : > { %748 = vmatpush3.bf16.msra.mxu1 %v797_v7  ;;  %718 = vmatprep.subr.bf16.mxu0 %v798_v8  ;;  %v811_v21 = vld [vmem:[%s896_s25 + $0x30] sm:$0xff]   ;;  %v683_v25 = vcombine.high %v266_v24, %v266_v24  ;;  %v814_v26 = vld [vmem:[%s896_s25 + $0x38] sm:$0xff]   ;;  %v682_v28 = vcombine.low %v266_v24, %v266_v24  ;;  %v818_v29 = vld [vmem:[%s891_s21 + $0x8] ss:$0 sps:$4 sm:$0xff]  }
  0x20   : > { %749 = vmatprep.subr.bf16.mxu1 %v844_v2  ;;  %v812_v22 = vld [vmem:[%s896_s25 + $0xb0] sm:$0xff]   ;;  %v815_v27 = vld [vmem:[%s896_s25 + $0xb8] sm:$0xff]   ;;  %v265_v36 = vld [vmem:[#allocation2] sm:$0xff] }
  0x21   : > { %503 = vmatprep.mubr.bf16.mxu0 %v683_v25  ;;  %v710_v43 = vld [vmem:[%s943_s2] ss:$0 sm:$0xff] (!%p709_p7) }
  0x22   : > { %719 = vmatpush3.bf16.msra.mxu0 %v799_v9 }
  0x23   : > { %750 = vmatpush3.bf16.msra.mxu1 %v800_v10  ;;  %720 = vmatprep.subr.bf16.mxu0 %v801_v11 }
  0x24   : > { %751 = vmatprep.subr.bf16.mxu1 %v844_v2 }
  0x26   : > { %721 = vmatpush3.bf16.msra.mxu0 %v802_v12 }
  0x27   : > { %752 = vmatpush3.bf16.msra.mxu1 %v803_v13  ;;  %722 = vmatprep.subr.bf16.mxu0 %v804_v14 }
  0x28   : > { %753 = vmatprep.subr.bf16.mxu1 %v844_v2 }
  0x2a   : > { %723 = vmatpush3.bf16.msra.mxu0 %v805_v15 }
  0x2b   : > { %754 = vmatpush3.bf16.msra.mxu1 %v806_v16  ;;  %724 = vmatprep.subr.bf16.mxu0 %v807_v17 }
  0x2c   : > { %755 = vmatprep.subr.bf16.mxu1 %v844_v2 }
  0x2e   : > { %725 = vmatpush3.bf16.msra.mxu0 %v808_v18 }
  0x2f   : > { %756 = vmatpush3.bf16.msra.mxu1 %v809_v19  ;;  %726 = vmatprep.subr.bf16.mxu0 %v810_v20 }
  0x30   : > { %757 = vmatprep.subr.bf16.mxu1 %v844_v2 }
  0x32   : > { %727 = vmatpush3.bf16.msra.mxu0 %v811_v21 }
  0x33   : > { %758 = vmatpush3.bf16.msra.mxu1 %v812_v22  ;;  %728 = vmatprep.subr.bf16.mxu0 %v813_v23 }
  0x34   : > { %759 = vmatprep.subr.bf16.mxu1 %v844_v2 }
  0x36   : > { %729 = vmatpush3.bf16.msra.mxu0 %v814_v26 }
  0x37   : > { %760 = vmatpush3.bf16.msra.mxu1 %v815_v27 }
  0x39   : > { %504 = vmatmul.mubr.bf16.vlgmr.msra.gmra.mrb[0].mxu0 %v682_v28 }
  0x3a   : > { %762 = vmatmul.mubr.bf16.vlgmr.msra.gmra.mrb[0].mxu1 %v818_v29 }
 0x10c   : > { %v730_v30 = vpop.f32.mrb[0].mxu0 }
 0x10d   : > { %v545_v31 = vpop.f32.mrb[0].mxu1  ;;  %v731_v32 = vpop.f32.mrb[1].mxu0 }
 0x10e   : > { %v732_v33 = vadd.f32 %v731_v32, %v730_v30  ;;  %v763_v34 = vpop.f32.mrb[1].mxu1  ;;  %v733_v35 = vpop.f32.mrb[2].mxu0  ;;  %556 = sbr.rel (%p709_p7) target bundleno = 291 (0x123), region = 40 }
 0x10f   : > { %v548_v37 = vpop.f32.mrb[2].mxu1  ;;  %v734_v38 = vpop.f32.mrb[3].mxu0 }
 0x110   : > { %v546_v39 = vadd.f32 %v732_v33, %v545_v31  ;;  %v764_v40 = vpop.f32.mrb[3].mxu1 }
 0x112   : > { %v551_v41 = vadd.f32 %v546_v39, %v265_v36 }
 0x114   : > { %552 = vst [vmem:[#allocation2] sm:$0xff] %v551_v41 }
 0x11b   : > { %v557_v42 = vld [vmem:[#allocation2] sm:$0xff] }
 0x11c   : > { %v565_v44 = vadd.f32 %v710_v43, %v557_v42 }
 0x11e   : > { %v566_v45 = vmax.f32 %v565_v44, 0.0 }
 0x120   : > { %v567_v46 = vpack.c.bf16 %v566_v45, %v566_v45 }
 0x122   : > { %568 = vst [vmem:[%s944_s3] sm:$0xf] %v567_v46 }
 0x123 PF: > { %s13_s14 = sadd.s32 1, %s841_s14   ;;  %s945_s12 = smov %s837_s13 }
 0x124   : > { %p10_p8 = scmp.ge.s32.totalorder %s13_s14, 4   ;;  %s946_s13 = smov %s948_s15 }
 0x126   :  { %12 = sbr.rel (!%p10_p8) target bundleno = 2 (0x2), region = 76 }

// kernel: generator_forward.21
= control target key start
LH: loop header
LB: loop body
LE: loop exit
PB: predicated region body
PF: predicated region fallthrough
CT: control target
= control target key end

     0   :  { %s866_s12 = smov 0   ;;  %s868_s13 = smov 0   ;;  %s941_s0 = inlined_call_operand.vmem [shape: bf16[8,1152], index: 0, kind: input, shape index: {}]   ;;  %s942_s1 = inlined_call_operand.vmem [shape: bf16[1152,128], index: 1, kind: input, shape index: {}]   ;;  %s943_s2 = inlined_call_operand.vmem [shape: f32[1,128], index: 2, kind: input, shape index: {}]   ;;  %s944_s3 = inlined_call_operand.vmem [shape: bf16[8,128], index: 3, kind: output, shape index: {}]  }
   0x1   :  { %s870_s14 = smov 0  }
   0x2 LB: > { %s25_s15 = sadd.s32 1, %s837_s13  ;;  %p678_p0 = scmp.ge.s32.totalorder %s841_s14, 1  ;;  %s841_s14 = sphi %s870_s14, %s13_s14   ;;  %s837_s13 = sphi %s868_s13, %s946_s13   ;;  %s833_s12 = sphi %s866_s12, %s945_s12  }
   0x3   : > { %p26_p1 = scmp.ge.s32.totalorder %s25_s15, 3  ;;  %p189_p2 = scmp.lt.s32.totalorder %s841_s14, 4 }
   0x5   : > { %s948_s15 = smov (%p26_p1, %s25_s15), 0  ;;  %p190_p3 = pnand %p678_p0, %p189_p2 }
   0x6   : > { %s230_s16 = smul.u32 (!%p190_p3), 3, %s833_s12  ;;  %p681_p6 = scmp.ne.s32.totalorder (!%p190_p3), %s833_s12, 0 }
   0x7   : > { %193 = sbr.rel (%p190_p3) target bundleno = 291 (0x123), region = 32 }
   0x8   : > { %s240_s17 = smul.u32 (!%p190_p3), 48, %s833_s12  ;;  %p233_p4 = scmp.lt.s32.totalorder (!%p190_p3), %s230_s16, 8 }
   0xa   : > { %p241_p5 = scmp.lt.s32.totalorder (!%p190_p3), %s240_s17, 143 }
   0xe   : > { %s950_s16 = smov (!%p233_p4, %s230_s16), 8  ;;  %s952_s17 = smov (!%p241_p5, %s240_s17), 143 }
   0xf   : > { %s679_s18 = sshll.u32 %s950_s16, 2  ;;  %s680_s22 = sshll.u32 %s952_s17, 2  ;;  %v843_v0 = vmov (!%p681_p6), 0.0  }
  0x10   : > { %s891_s21 = scalar_lea.vmem %s941_s0, %s679_s18  ;;  %s896_s25 = scalar_lea.vmem %s942_s1, %s680_s22  ;;  %264 = vst [vmem:[#allocation2] sm:$0xff] (!%p681_p6), %v843_v0 }
  0x11   : > { %263 = sbr.rel (%p681_p6) target bundleno = 24 (0x18), region = 36 }
  0x18 PF: > { %v792_v1 = vld [vmem:[%s896_s25 + $0x40] sm:$0xff]   ;;  %v844_v2 = vmov 0.0   ;;  %vm845_vm0 = vmmov 0   ;;  %v795_v5 = vld [vmem:[%s896_s25 + $0x48] sm:$0xff]   ;;  %v798_v8 = vld [vmem:[%s896_s25 + $0x50] sm:$0xff]   ;;  %p709_p7 = scmp.ne.s32.totalorder %s833_s12, 2 }
  0x19   : > { %745 = vmatprep.subr.bf16.mxu1 %v844_v2  ;;  %v793_v3 = vld [vmem:[%s896_s25] sm:$0xff]   ;;  %714 = vmatprep.subr.bf16.mxu0 %v792_v1  ;;  %v796_v6 = vld [vmem:[%s896_s25 + $0x8] sm:$0xff]   ;;  %v799_v9 = vld [vmem:[%s896_s25 + $0x10] sm:$0xff]  }
  0x1a   : > { %v794_v4 = vld [vmem:[%s896_s25 + $0x80] sm:$0xff]   ;;  %761 = vmatprep.mubr.msk.bf16.mxu1 %vm845_vm0, %v844_v2  ;;  %715 = vmatpush3.bf16.msra.mxu0 %v793_v3  ;;  %v797_v7 = vld [vmem:[%s896_s25 + $0x88] sm:$0xff]   ;;  %v800_v10 = vld [vmem:[%s896_s25 + $0x90] sm:$0xff]  }
  0x1b   : > { %746 = vmatpush3.bf16.msra.mxu1 %v794_v4  ;;  %716 = vmatprep.subr.bf16.mxu0 %v795_v5  ;;  %v801_v11 = vld [vmem:[%s896_s25 + $0x58] sm:$0xff]   ;;  %v804_v14 = vld [vmem:[%s896_s25 + $0x60] sm:$0xff]   ;;  %v807_v17 = vld [vmem:[%s896_s25 + $0x68] sm:$0xff]  }
  0x1c   : > { %747 = vmatprep.subr.bf16.mxu1 %v844_v2  ;;  %v802_v12 = vld [vmem:[%s896_s25 + $0x18] sm:$0xff]   ;;  %v805_v15 = vld [vmem:[%s896_s25 + $0x20] sm:$0xff]   ;;  %v808_v18 = vld [vmem:[%s896_s25 + $0x28] sm:$0xff]  }
  0x1d   : > { %v803_v13 = vld [vmem:[%s896_s25 + $0x98] sm:$0xff]   ;;  %v806_v16 = vld [vmem:[%s896_s25 + $0xa0] sm:$0xff]   ;;  %v809_v19 = vld [vmem:[%s896_s25 + $0xa8] sm:$0xff]  }
  0x1e   : > { %717 = vmatpush3.bf16.msra.mxu0 %v796_v6  ;;  %v810_v20 = vld [vmem:[%s896_s25 + $0x70] sm:$0xff]   ;;  %v813_v23 = vld [vmem:[%s896_s25 + $0x78] sm:$0xff]   ;;  %v266_v24 = vld [vmem:[%s891_s21] sm:$0xff] }
  0x1f   : > { %748 = vmatpush3.bf16.msra.mxu1 %v797_v7  ;;  %718 = vmatprep.subr.bf16.mxu0 %v798_v8  ;;  %v811_v21 = vld [vmem:[%s896_s25 + $0x30] sm:$0xff]   ;;  %v683_v25 = vcombine.high %v266_v24, %v266_v24  ;;  %v814_v26 = vld [vmem:[%s896_s25 + $0x38] sm:$0xff]   ;;  %v682_v28 = vcombine.low %v266_v24, %v266_v24  ;;  %v818_v29 = vld [vmem:[%s891_s21 + $0x8] ss:$0 sps:$4 sm:$0xff]  }
  0x20   : > { %749 = vmatprep.subr.bf16.mxu1 %v844_v2  ;;  %v812_v22 = vld [vmem:[%s896_s25 + $0xb0] sm:$0xff]   ;;  %v815_v27 = vld [vmem:[%s896_s25 + $0xb8] sm:$0xff]   ;;  %v265_v36 = vld [vmem:[#allocation2] sm:$0xff] }
  0x21   : > { %503 = vmatprep.mubr.bf16.mxu0 %v683_v25  ;;  %v710_v43 = vld [vmem:[%s943_s2] ss:$0 sm:$0xff] (!%p709_p7) }
  0x22   : > { %719 = vmatpush3.bf16.msra.mxu0 %v799_v9 }
  0x23   : > { %750 = vmatpush3.bf16.msra.mxu1 %v800_v10  ;;  %720 = vmatprep.subr.bf16.mxu0 %v801_v11 }
  0x24   : > { %751 = vmatprep.subr.bf16.mxu1 %v844_v2 }
  0x26   : > { %721 = vmatpush3.bf16.msra.mxu0 %v802_v12 }
  0x27   : > { %752 = vmatpush3.bf16.msra.mxu1 %v803_v13  ;;  %722 = vmatprep.subr.bf16.mxu0 %v804_v14 }
  0x28   : > { %753 = vmatprep.subr.bf16.mxu1 %v844_v2 }
  0x2a   : > { %723 = vmatpush3.bf16.msra.mxu0 %v805_v15 }
  0x2b   : > { %754 = vmatpush3.bf16.msra.mxu1 %v806_v16  ;;  %724 = vmatprep.subr.bf16.mxu0 %v807_v17 }
  0x2c   : > { %755 = vmatprep.subr.bf16.mxu1 %v844_v2 }
  0x2e   : > { %725 = vmatpush3.bf16.msra.mxu0 %v808_v18 }
  0x2f   : > { %756 = vmatpush3.bf16.msra.mxu1 %v809_v19  ;;  %726 = vmatprep.subr.bf16.mxu0 %v810_v20 }
  0x30   : > { %757 = vmatprep.subr.bf16.mxu1 %v844_v2 }
  0x32   : > { %727 = vmatpush3.bf16.msra.mxu0 %v811_v21 }
  0x33   : > { %758 = vmatpush3.bf16.msra.mxu1 %v812_v22  ;;  %728 = vmatprep.subr.bf16.mxu0 %v813_v23 }
  0x34   : > { %759 = vmatprep.subr.bf16.mxu1 %v844_v2 }
  0x36   : > { %729 = vmatpush3.bf16.msra.mxu0 %v814_v26 }
  0x37   : > { %760 = vmatpush3.bf16.msra.mxu1 %v815_v27 }
  0x39   : > { %504 = vmatmul.mubr.bf16.vlgmr.msra.gmra.mrb[0].mxu0 %v682_v28 }
  0x3a   : > { %762 = vmatmul.mubr.bf16.vlgmr.msra.gmra.mrb[0].mxu1 %v818_v29 }
 0x10c   : > { %v730_v30 = vpop.f32.mrb[0].mxu0 }
 0x10d   : > { %v545_v31 = vpop.f32.mrb[0].mxu1  ;;  %v731_v32 = vpop.f32.mrb[1].mxu0 }
 0x10e   : > { %v732_v33 = vadd.f32 %v731_v32, %v730_v30  ;;  %v763_v34 = vpop.f32.mrb[1].mxu1  ;;  %v733_v35 = vpop.f32.mrb[2].mxu0  ;;  %556 = sbr.rel (%p709_p7) target bundleno = 291 (0x123), region = 40 }
 0x10f   : > { %v548_v37 = vpop.f32.mrb[2].mxu1  ;;  %v734_v38 = vpop.f32.mrb[3].mxu0 }
 0x110   : > { %v546_v39 = vadd.f32 %v732_v33, %v545_v31  ;;  %v764_v40 = vpop.f32.mrb[3].mxu1 }
 0x112   : > { %v551_v41 = vadd.f32 %v546_v39, %v265_v36 }
 0x114   : > { %552 = vst [vmem:[#allocation2] sm:$0xff] %v551_v41 }
 0x11b   : > { %v557_v42 = vld [vmem:[#allocation2] sm:$0xff] }
 0x11c   : > { %v565_v44 = vadd.f32 %v710_v43, %v557_v42 }
 0x11e   : > { %v566_v45 = vmax.f32 %v565_v44, 0.0 }
 0x120   : > { %v567_v46 = vpack.c.bf16 %v566_v45, %v566_v45 }
 0x122   : > { %568 = vst [vmem:[%s944_s3] sm:$0xf] %v567_v46 }
 0x123 PF: > { %s13_s14 = sadd.s32 1, %s841_s14   ;;  %s945_s12 = smov %s837_s13 }
 0x124   : > { %p10_p8 = scmp.ge.s32.totalorder %s13_s14, 5   ;;  %s946_s13 = smov %s948_s15 }
 0x126   :  { %12 = sbr.rel (!%p10_p8) target bundleno = 2 (0x2), region = 76 }

// kernel: generator_forward.24
= control target key start
LH: loop header
LB: loop body
LE: loop exit
PB: predicated region body
PF: predicated region fallthrough
CT: control target
= control target key end

     0   :  { %s1029_s18 = smov 0   ;;  %s1031_s19 = smov 0   ;;  %s1110_s0 = inlined_call_operand.vmem [shape: bf16[8,1152], index: 0, kind: input, shape index: {}]   ;;  %s1111_s1 = inlined_call_operand.vmem [shape: bf16[1152,128], index: 1, kind: input, shape index: {}]   ;;  %s1112_s2 = inlined_call_operand.vmem [shape: f32[1,128], index: 2, kind: input, shape index: {}]   ;;  %s1113_s3 = inlined_call_operand.vmem [shape: bf16[8,128], index: 3, kind: input, shape index: {}]   ;;  %s1114_s4 = inlined_call_operand.vmem [shape: bf16[8,128], index: 4, kind: input, shape index: {}]   ;;  %s1115_s5 = inlined_call_operand.vmem [shape: bf16[8,128], index: 5, kind: output, shape index: {}]  }
   0x1   :  { %s1033_s20 = smov 0  }
   0x2 LB: > { %s27_s21 = sadd.s32 1, %s990_s19  ;;  %p831_p0 = scmp.ge.s32.totalorder %s994_s20, 1  ;;  %s994_s20 = sphi %s1033_s20, %s15_s20   ;;  %s990_s19 = sphi %s1031_s19, %s1117_s19   ;;  %s986_s18 = sphi %s1029_s18, %s1116_s18  }
   0x3   : > { %p28_p1 = scmp.ge.s32.totalorder %s27_s21, 3  ;;  %p267_p2 = scmp.lt.s32.totalorder %s994_s20, 4 }
   0x5   : > { %s1119_s21 = smov (%p28_p1, %s27_s21), 0  ;;  %p268_p3 = pnand %p831_p0, %p267_p2 }
   0x6   : > { %s326_s22 = smul.u32 (!%p268_p3), 3, %s986_s18  ;;  %p834_p6 = scmp.ne.s32.totalorder (!%p268_p3), %s986_s18, 0 }
   0x7   : > { %271 = sbr.rel (%p268_p3) target bundleno = 293 (0x125), region = 40 }
   0x8   : > { %s336_s23 = smul.u32 (!%p268_p3), 48, %s986_s18  ;;  %p329_p4 = scmp.lt.s32.totalorder (!%p268_p3), %s326_s22, 8 }
   0xa   : > { %p337_p5 = scmp.lt.s32.totalorder (!%p268_p3), %s336_s23, 143 }
   0xe   : > { %s1121_s22 = smov (!%p329_p4, %s326_s22), 8  ;;  %s1123_s23 = smov (!%p337_p5, %s336_s23), 143 }
   0xf   : > { %s832_s24 = sshll.u32 %s1121_s22, 2  ;;  %s833_s28 = sshll.u32 %s1123_s23, 2  ;;  %v996_v0 = vmov (!%p834_p6), 0.0  }
  0x10   : > { %s1054_s27 = scalar_lea.vmem %s1110_s0, %s832_s24  ;;  %s1059_s6 = scalar_lea.vmem %s1111_s1, %s833_s28  ;;  %374 = vst [vmem:[#allocation2] sm:$0xff] (!%p834_p6), %v996_v0 }
  0x11   : > { %373 = sbr.rel (%p834_p6) target bundleno = 24 (0x18), region = 44 }
  0x18 PF: > { %v945_v1 = vld [vmem:[%s1059_s6 + $0x40] sm:$0xff]   ;;  %v997_v2 = vmov 0.0   ;;  %vm998_vm0 = vmmov 0   ;;  %v948_v5 = vld [vmem:[%s1059_s6 + $0x48] sm:$0xff]   ;;  %v951_v8 = vld [vmem:[%s1059_s6 + $0x50] sm:$0xff]   ;;  %p862_p7 = scmp.ne.s32.totalorder %s986_s18, 2 }
  0x19   : > { %898 = vmatprep.subr.bf16.mxu1 %v997_v2  ;;  %v946_v3 = vld [vmem:[%s1059_s6] sm:$0xff]   ;;  %867 = vmatprep.subr.bf16.mxu0 %v945_v1  ;;  %v949_v6 = vld [vmem:[%s1059_s6 + $0x8] sm:$0xff]   ;;  %v952_v9 = vld [vmem:[%s1059_s6 + $0x10] sm:$0xff]  }
  0x1a   : > { %v947_v4 = vld [vmem:[%s1059_s6 + $0x80] sm:$0xff]   ;;  %914 = vmatprep.mubr.msk.bf16.mxu1 %vm998_vm0, %v997_v2  ;;  %868 = vmatpush3.bf16.msra.mxu0 %v946_v3  ;;  %v950_v7 = vld [vmem:[%s1059_s6 + $0x88] sm:$0xff]   ;;  %v953_v10 = vld [vmem:[%s1059_s6 + $0x90] sm:$0xff]  }
  0x1b   : > { %899 = vmatpush3.bf16.msra.mxu1 %v947_v4  ;;  %869 = vmatprep.subr.bf16.mxu0 %v948_v5  ;;  %v954_v11 = vld [vmem:[%s1059_s6 + $0x58] sm:$0xff]   ;;  %v957_v14 = vld [vmem:[%s1059_s6 + $0x60] sm:$0xff]   ;;  %v960_v17 = vld [vmem:[%s1059_s6 + $0x68] sm:$0xff]  }
  0x1c   : > { %900 = vmatprep.subr.bf16.mxu1 %v997_v2  ;;  %v955_v12 = vld [vmem:[%s1059_s6 + $0x18] sm:$0xff]   ;;  %v958_v15 = vld [vmem:[%s1059_s6 + $0x20] sm:$0xff]   ;;  %v961_v18 = vld [vmem:[%s1059_s6 + $0x28] sm:$0xff]  }
  0x1d   : > { %v956_v13 = vld [vmem:[%s1059_s6 + $0x98] sm:$0xff]   ;;  %v959_v16 = vld [vmem:[%s1059_s6 + $0xa0] sm:$0xff]   ;;  %v962_v19 = vld [vmem:[%s1059_s6 + $0xa8] sm:$0xff]  }
  0x1e   : > { %870 = vmatpush3.bf16.msra.mxu0 %v949_v6  ;;  %v963_v20 = vld [vmem:[%s1059_s6 + $0x70] sm:$0xff]   ;;  %v966_v23 = vld [vmem:[%s1059_s6 + $0x78] sm:$0xff]   ;;  %v376_v24 = vld [vmem:[%s1054_s27] sm:$0xff] }
  0x1f   : > { %901 = vmatpush3.bf16.msra.mxu1 %v950_v7  ;;  %871 = vmatprep.subr.bf16.mxu0 %v951_v8  ;;  %v964_v21 = vld [vmem:[%s1059_s6 + $0x30] sm:$0xff]   ;;  %v836_v25 = vcombine.high %v376_v24, %v376_v24  ;;  %v967_v26 = vld [vmem:[%s1059_s6 + $0x38] sm:$0xff]   ;;  %v835_v28 = vcombine.low %v376_v24, %v376_v24  ;;  %v971_v29 = vld [vmem:[%s1054_s27 + $0x8] ss:$0 sps:$4 sm:$0xff]  }
  0x20   : > { %902 = vmatprep.subr.bf16.mxu1 %v997_v2  ;;  %v965_v22 = vld [vmem:[%s1059_s6 + $0xb0] sm:$0xff]   ;;  %v968_v27 = vld [vmem:[%s1059_s6 + $0xb8] sm:$0xff]   ;;  %v375_v36 = vld [vmem:[#allocation2] sm:$0xff] }
  0x21   : > { %613 = vmatprep.mubr.bf16.mxu0 %v836_v25  ;;  %v863_v43 = vld [vmem:[%s1112_s2] ss:$0 sm:$0xff] (!%p862_p7) }
  0x22   : > { %872 = vmatpush3.bf16.msra.mxu0 %v952_v9  ;;  %v676_v44 = vld [vmem:[%s1113_s3] sm:$0xf] (!%p862_p7) }
  0x23   : > { %903 = vmatpush3.bf16.msra.mxu1 %v953_v10  ;;  %873 = vmatprep.subr.bf16.mxu0 %v954_v11  ;;  %v677_v46 = vunpack.c.l.bf16 (!%p862_p7), %v676_v44  ;;  %v679_v47 = vld [vmem:[%s1114_s4] sm:$0xf] (!%p862_p7) }
  0x24   : > { %904 = vmatprep.subr.bf16.mxu1 %v997_v2  ;;  %v680_v48 = vunpack.c.l.bf16 (!%p862_p7), %v679_v47 }
  0x26   : > { %874 = vmatpush3.bf16.msra.mxu0 %v955_v12 }
  0x27   : > { %905 = vmatpush3.bf16.msra.mxu1 %v956_v13  ;;  %875 = vmatprep.subr.bf16.mxu0 %v957_v14 }
  0x28   : > { %906 = vmatprep.subr.bf16.mxu1 %v997_v2 }
  0x2a   : > { %876 = vmatpush3.bf16.msra.mxu0 %v958_v15 }
  0x2b   : > { %907 = vmatpush3.bf16.msra.mxu1 %v959_v16  ;;  %877 = vmatprep.subr.bf16.mxu0 %v960_v17 }
  0x2c   : > { %908 = vmatprep.subr.bf16.mxu1 %v997_v2 }
  0x2e   : > { %878 = vmatpush3.bf16.msra.mxu0 %v961_v18 }
  0x2f   : > { %909 = vmatpush3.bf16.msra.mxu1 %v962_v19  ;;  %879 = vmatprep.subr.bf16.mxu0 %v963_v20 }
  0x30   : > { %910 = vmatprep.subr.bf16.mxu1 %v997_v2 }
  0x32   : > { %880 = vmatpush3.bf16.msra.mxu0 %v964_v21 }
  0x33   : > { %911 = vmatpush3.bf16.msra.mxu1 %v965_v22  ;;  %881 = vmatprep.subr.bf16.mxu0 %v966_v23 }
  0x34   : > { %912 = vmatprep.subr.bf16.mxu1 %v997_v2 }
  0x36   : > { %882 = vmatpush3.bf16.msra.mxu0 %v967_v26 }
  0x37   : > { %913 = vmatpush3.bf16.msra.mxu1 %v968_v27 }
  0x39   : > { %614 = vmatmul.mubr.bf16.vlgmr.msra.gmra.mrb[0].mxu0 %v835_v28 }
  0x3a   : > { %915 = vmatmul.mubr.bf16.vlgmr.msra.gmra.mrb[0].mxu1 %v971_v29 }
 0x10c   : > { %v883_v30 = vpop.f32.mrb[0].mxu0 }
 0x10d   : > { %v655_v31 = vpop.f32.mrb[0].mxu1  ;;  %v884_v32 = vpop.f32.mrb[1].mxu0 }
 0x10e   : > { %v885_v33 = vadd.f32 %v884_v32, %v883_v30  ;;  %v916_v34 = vpop.f32.mrb[1].mxu1  ;;  %v886_v35 = vpop.f32.mrb[2].mxu0  ;;  %666 = sbr.rel (%p862_p7) target bundleno = 293 (0x125), region = 48 }
 0x10f   : > { %v658_v37 = vpop.f32.mrb[2].mxu1  ;;  %v887_v38 = vpop.f32.mrb[3].mxu0 }
 0x110   : > { %v656_v39 = vadd.f32 %v885_v33, %v655_v31  ;;  %v917_v40 = vpop.f32.mrb[3].mxu1 }
 0x112   : > { %v661_v41 = vadd.f32 %v656_v39, %v375_v36 }
 0x114   : > { %662 = vst [vmem:[#allocation2] sm:$0xff] %v661_v41 }
 0x11b   : > { %v667_v42 = vld [vmem:[#allocation2] sm:$0xff] }
 0x11c   : > { %v675_v45 = vadd.f32 %v863_v43, %v667_v42 }
 0x11e   : > { %v678_v49 = vadd.f32 %v677_v46, %v675_v45 }
 0x120   : > { %v681_v50 = vadd.f32 %v680_v48, %v678_v49 }
 0x122   : > { %v682_v51 = vpack.c.bf16 %v681_v50, %v681_v50 }
 0x124   : > { %683 = vst [vmem:[%s1115_s5] sm:$0xf] %v682_v51 }
 0x125 PF: > { %s15_s20 = sadd.s32 1, %s994_s20   ;;  %s1116_s18 = smov %s990_s19 }
 0x126   : > { %p12_p8 = scmp.ge.s32.totalorder %s15_s20, 5   ;;  %s1117_s19 = smov %s1119_s21 }
 0x128   :  { %14 = sbr.rel (!%p12_p8) target bundleno = 2 (0x2), region = 90 }

// kernel: generator_forward.22
= control target key start
LH: loop header
LB: loop body
LE: loop exit
PB: predicated region body
PF: predicated region fallthrough
CT: control target
= control target key end

     0   :  { %s947_s15 = smov 0   ;;  %s949_s16 = smov 0   ;;  %s1025_s0 = inlined_call_operand.vmem [shape: bf16[8,1152], index: 0, kind: input, shape index: {}]   ;;  %s1026_s1 = inlined_call_operand.vmem [shape: bf16[1152,128], index: 1, kind: input, shape index: {}]   ;;  %s1027_s2 = inlined_call_operand.vmem [shape: f32[1,128], index: 2, kind: input, shape index: {}]   ;;  %s1028_s3 = inlined_call_operand.vmem [shape: bf16[8,128], index: 3, kind: input, shape index: {}]   ;;  %s1029_s4 = inlined_call_operand.vmem [shape: bf16[8,128], index: 4, kind: output, shape index: {}]  }
   0x1   :  { %s951_s17 = smov 0  }
   0x2 LB: > { %s26_s18 = sadd.s32 1, %s913_s16  ;;  %p754_p0 = scmp.ge.s32.totalorder %s917_s17, 1  ;;  %s917_s17 = sphi %s951_s17, %s14_s17   ;;  %s913_s16 = sphi %s949_s16, %s1031_s16   ;;  %s909_s15 = sphi %s947_s15, %s1030_s15  }
   0x3   : > { %p27_p1 = scmp.ge.s32.totalorder %s26_s18, 3  ;;  %p228_p2 = scmp.lt.s32.totalorder %s917_s17, 4 }
   0x5   : > { %s1033_s18 = smov (%p27_p1, %s26_s18), 0  ;;  %p229_p3 = pnand %p754_p0, %p228_p2 }
   0x6   : > { %s278_s19 = smul.u32 (!%p229_p3), 3, %s909_s15  ;;  %p757_p6 = scmp.ne.s32.totalorder (!%p229_p3), %s909_s15, 0 }
   0x7   : > { %232 = sbr.rel (%p229_p3) target bundleno = 291 (0x123), region = 36 }
   0x8   : > { %s288_s20 = smul.u32 (!%p229_p3), 48, %s909_s15  ;;  %p281_p4 = scmp.lt.s32.totalorder (!%p229_p3), %s278_s19, 8 }
   0xa   : > { %p289_p5 = scmp.lt.s32.totalorder (!%p229_p3), %s288_s20, 143 }
   0xe   : > { %s1035_s19 = smov (!%p281_p4, %s278_s19), 8  ;;  %s1037_s20 = smov (!%p289_p5, %s288_s20), 143 }
   0xf   : > { %s755_s21 = sshll.u32 %s1035_s19, 2  ;;  %s756_s25 = sshll.u32 %s1037_s20, 2  ;;  %v919_v0 = vmov (!%p757_p6), 0.0  }
  0x10   : > { %s972_s24 = scalar_lea.vmem %s1025_s0, %s755_s21  ;;  %s977_s28 = scalar_lea.vmem %s1026_s1, %s756_s25  ;;  %319 = vst [vmem:[#allocation2] sm:$0xff] (!%p757_p6), %v919_v0 }
  0x11   : > { %318 = sbr.rel (%p757_p6) target bundleno = 24 (0x18), region = 40 }
  0x18 PF: > { %v868_v1 = vld [vmem:[%s977_s28 + $0x40] sm:$0xff]   ;;  %v920_v2 = vmov 0.0   ;;  %vm921_vm0 = vmmov 0   ;;  %v871_v5 = vld [vmem:[%s977_s28 + $0x48] sm:$0xff]   ;;  %v874_v8 = vld [vmem:[%s977_s28 + $0x50] sm:$0xff]   ;;  %p785_p7 = scmp.ne.s32.totalorder %s909_s15, 2 }
  0x19   : > { %821 = vmatprep.subr.bf16.mxu1 %v920_v2  ;;  %v869_v3 = vld [vmem:[%s977_s28] sm:$0xff]   ;;  %790 = vmatprep.subr.bf16.mxu0 %v868_v1  ;;  %v872_v6 = vld [vmem:[%s977_s28 + $0x8] sm:$0xff]   ;;  %v875_v9 = vld [vmem:[%s977_s28 + $0x10] sm:$0xff]  }
  0x1a   : > { %v870_v4 = vld [vmem:[%s977_s28 + $0x80] sm:$0xff]   ;;  %837 = vmatprep.mubr.msk.bf16.mxu1 %vm921_vm0, %v920_v2  ;;  %791 = vmatpush3.bf16.msra.mxu0 %v869_v3  ;;  %v873_v7 = vld [vmem:[%s977_s28 + $0x88] sm:$0xff]   ;;  %v876_v10 = vld [vmem:[%s977_s28 + $0x90] sm:$0xff]  }
  0x1b   : > { %822 = vmatpush3.bf16.msra.mxu1 %v870_v4  ;;  %792 = vmatprep.subr.bf16.mxu0 %v871_v5  ;;  %v877_v11 = vld [vmem:[%s977_s28 + $0x58] sm:$0xff]   ;;  %v880_v14 = vld [vmem:[%s977_s28 + $0x60] sm:$0xff]   ;;  %v883_v17 = vld [vmem:[%s977_s28 + $0x68] sm:$0xff]  }
  0x1c   : > { %823 = vmatprep.subr.bf16.mxu1 %v920_v2  ;;  %v878_v12 = vld [vmem:[%s977_s28 + $0x18] sm:$0xff]   ;;  %v881_v15 = vld [vmem:[%s977_s28 + $0x20] sm:$0xff]   ;;  %v884_v18 = vld [vmem:[%s977_s28 + $0x28] sm:$0xff]  }
  0x1d   : > { %v879_v13 = vld [vmem:[%s977_s28 + $0x98] sm:$0xff]   ;;  %v882_v16 = vld [vmem:[%s977_s28 + $0xa0] sm:$0xff]   ;;  %v885_v19 = vld [vmem:[%s977_s28 + $0xa8] sm:$0xff]  }
  0x1e   : > { %793 = vmatpush3.bf16.msra.mxu0 %v872_v6  ;;  %v886_v20 = vld [vmem:[%s977_s28 + $0x70] sm:$0xff]   ;;  %v889_v23 = vld [vmem:[%s977_s28 + $0x78] sm:$0xff]   ;;  %v321_v24 = vld [vmem:[%s972_s24] sm:$0xff] }
  0x1f   : > { %824 = vmatpush3.bf16.msra.mxu1 %v873_v7  ;;  %794 = vmatprep.subr.bf16.mxu0 %v874_v8  ;;  %v887_v21 = vld [vmem:[%s977_s28 + $0x30] sm:$0xff]   ;;  %v759_v25 = vcombine.high %v321_v24, %v321_v24  ;;  %v890_v26 = vld [vmem:[%s977_s28 + $0x38] sm:$0xff]   ;;  %v758_v28 = vcombine.low %v321_v24, %v321_v24  ;;  %v894_v29 = vld [vmem:[%s972_s24 + $0x8] ss:$0 sps:$4 sm:$0xff]  }
  0x20   : > { %825 = vmatprep.subr.bf16.mxu1 %v920_v2  ;;  %v888_v22 = vld [vmem:[%s977_s28 + $0xb0] sm:$0xff]   ;;  %v891_v27 = vld [vmem:[%s977_s28 + $0xb8] sm:$0xff]   ;;  %v320_v36 = vld [vmem:[#allocation2] sm:$0xff] }
  0x21   : > { %558 = vmatprep.mubr.bf16.mxu0 %v759_v25  ;;  %v786_v43 = vld [vmem:[%s1027_s2] ss:$0 sm:$0xff] (!%p785_p7) }
  0x22   : > { %795 = vmatpush3.bf16.msra.mxu0 %v875_v9  ;;  %v621_v44 = vld [vmem:[%s1028_s3] sm:$0xf] (!%p785_p7) }
  0x23   : > { %826 = vmatpush3.bf16.msra.mxu1 %v876_v10  ;;  %796 = vmatprep.subr.bf16.mxu0 %v877_v11  ;;  %v622_v46 = vunpack.c.l.bf16 (!%p785_p7), %v621_v44 }
  0x24   : > { %827 = vmatprep.subr.bf16.mxu1 %v920_v2 }
  0x26   : > { %797 = vmatpush3.bf16.msra.mxu0 %v878_v12 }
  0x27   : > { %828 = vmatpush3.bf16.msra.mxu1 %v879_v13  ;;  %798 = vmatprep.subr.bf16.mxu0 %v880_v14 }
  0x28   : > { %829 = vmatprep.subr.bf16.mxu1 %v920_v2 }
  0x2a   : > { %799 = vmatpush3.bf16.msra.mxu0 %v881_v15 }
  0x2b   : > { %830 = vmatpush3.bf16.msra.mxu1 %v882_v16  ;;  %800 = vmatprep.subr.bf16.mxu0 %v883_v17 }
  0x2c   : > { %831 = vmatprep.subr.bf16.mxu1 %v920_v2 }
  0x2e   : > { %801 = vmatpush3.bf16.msra.mxu0 %v884_v18 }
  0x2f   : > { %832 = vmatpush3.bf16.msra.mxu1 %v885_v19  ;;  %802 = vmatprep.subr.bf16.mxu0 %v886_v20 }
  0x30   : > { %833 = vmatprep.subr.bf16.mxu1 %v920_v2 }
  0x32   : > { %803 = vmatpush3.bf16.msra.mxu0 %v887_v21 }
  0x33   : > { %834 = vmatpush3.bf16.msra.mxu1 %v888_v22  ;;  %804 = vmatprep.subr.bf16.mxu0 %v889_v23 }
  0x34   : > { %835 = vmatprep.subr.bf16.mxu1 %v920_v2 }
  0x36   : > { %805 = vmatpush3.bf16.msra.mxu0 %v890_v26 }
  0x37   : > { %836 = vmatpush3.bf16.msra.mxu1 %v891_v27 }
  0x39   : > { %559 = vmatmul.mubr.bf16.vlgmr.msra.gmra.mrb[0].mxu0 %v758_v28 }
  0x3a   : > { %838 = vmatmul.mubr.bf16.vlgmr.msra.gmra.mrb[0].mxu1 %v894_v29 }
 0x10c   : > { %v806_v30 = vpop.f32.mrb[0].mxu0 }
 0x10d   : > { %v600_v31 = vpop.f32.mrb[0].mxu1  ;;  %v807_v32 = vpop.f32.mrb[1].mxu0 }
 0x10e   : > { %v808_v33 = vadd.f32 %v807_v32, %v806_v30  ;;  %v839_v34 = vpop.f32.mrb[1].mxu1  ;;  %v809_v35 = vpop.f32.mrb[2].mxu0  ;;  %611 = sbr.rel (%p785_p7) target bundleno = 291 (0x123), region = 44 }
 0x10f   : > { %v603_v37 = vpop.f32.mrb[2].mxu1  ;;  %v810_v38 = vpop.f32.mrb[3].mxu0 }
 0x110   : > { %v601_v39 = vadd.f32 %v808_v33, %v600_v31  ;;  %v840_v40 = vpop.f32.mrb[3].mxu1 }
 0x112   : > { %v606_v41 = vadd.f32 %v601_v39, %v320_v36 }
 0x114   : > { %607 = vst [vmem:[#allocation2] sm:$0xff] %v606_v41 }
 0x11b   : > { %v612_v42 = vld [vmem:[#allocation2] sm:$0xff] }
 0x11c   : > { %v620_v45 = vadd.f32 %v786_v43, %v612_v42 }
 0x11e   : > { %v623_v47 = vadd.f32 %v622_v46, %v620_v45 }
 0x120   : > { %v624_v48 = vpack.c.bf16 %v623_v47, %v623_v47 }
 0x122   : > { %625 = vst [vmem:[%s1029_s4] sm:$0xf] %v624_v48 }
 0x123 PF: > { %s14_s17 = sadd.s32 1, %s917_s17   ;;  %s1030_s15 = smov %s913_s16 }
 0x124   : > { %p11_p8 = scmp.ge.s32.totalorder %s14_s17, 5   ;;  %s1031_s16 = smov %s1033_s18 }
 0x126   :  { %13 = sbr.rel (!%p11_p8) target bundleno = 2 (0x2), region = 83 }

// kernel: generator_forward.26
= control target key start
LH: loop header
LB: loop body
LE: loop exit
PB: predicated region body
PF: predicated region fallthrough
CT: control target
= control target key end

     0   :  { %v1287_v36 = vmov 0.0   ;;  %vm1288_vm0 = vmmov 0   ;;  %s1603_s3 = inlined_call_operand.vmem [shape: bf16[640,128], index: 3, kind: input, shape index: {}]   ;;  %s1604_s1 = inlined_call_operand.vmem [shape: bf16[8,640], index: 1, kind: input, shape index: {}]   ;;  %s1605_s2 = inlined_call_operand.vmem [shape: bf16[640,128], index: 2, kind: input, shape index: {}]   ;;  %s1606_s0 = inlined_call_operand.vmem [shape: bf16[8,640], index: 0, kind: input, shape index: {}]   ;;  %s1607_s4 = inlined_call_operand.vmem [shape: f32[1,128], index: 4, kind: input, shape index: {}]   ;;  %s1608_s5 = inlined_call_operand.vmem [shape: bf16[8,128], index: 5, kind: output, shape index: {}]  }
   0x1   :  { %v1197_v0 = vld [vmem:[%s1603_s3 + $0x40] sm:$0xff]   ;;  %v1201_v4 = vld [vmem:[%s1603_s3 + $0x48] sm:$0xff]   ;;  %v1205_v8 = vld [vmem:[%s1603_s3 + $0x50] sm:$0xff]  }
   0x2   :  { %v1198_v1 = vld [vmem:[%s1603_s3 + $0xc0] sm:$0xff]   ;;  %1049 = vmatprep.subr.bf16.mxu0 %v1197_v0  ;;  %v1202_v5 = vld [vmem:[%s1603_s3 + $0xc8] sm:$0xff]   ;;  %v1206_v9 = vld [vmem:[%s1603_s3 + $0xd0] sm:$0xff]  }
   0x3   :  { %v1199_v2 = vld [vmem:[%s1603_s3] sm:$0xff]   ;;  %1071 = vmatprep.subr.bf16.mxu1 %v1198_v1  ;;  %v1203_v6 = vld [vmem:[%s1603_s3 + $0x8] sm:$0xff]   ;;  %v1207_v10 = vld [vmem:[%s1603_s3 + $0x10] sm:$0xff]  }
   0x4   :  { %v1200_v3 = vld [vmem:[%s1603_s3 + $0x80] sm:$0xff]   ;;  %1050 = vmatpush3.bf16.msra.mxu0 %v1199_v2  ;;  %v1204_v7 = vld [vmem:[%s1603_s3 + $0x88] sm:$0xff]   ;;  %v1208_v11 = vld [vmem:[%s1603_s3 + $0x90] sm:$0xff]  }
   0x5   :  { %1072 = vmatpush3.bf16.msra.mxu1 %v1200_v3  ;;  %1051 = vmatprep.subr.bf16.mxu0 %v1201_v4  ;;  %v1209_v12 = vld [vmem:[%s1603_s3 + $0x58] sm:$0xff]   ;;  %v1213_v16 = vld [vmem:[%s1603_s3 + $0x60] sm:$0xff]   ;;  %v1217_v20 = vld [vmem:[%s1603_s3 + $0x68] sm:$0xff]  }
   0x6   :  { %1073 = vmatprep.subr.bf16.mxu1 %v1202_v5  ;;  %v1210_v13 = vld [vmem:[%s1603_s3 + $0xd8] sm:$0xff]   ;;  %v1214_v17 = vld [vmem:[%s1603_s3 + $0xe0] sm:$0xff]   ;;  %v1218_v21 = vld [vmem:[%s1603_s3 + $0xe8] sm:$0xff]  }
   0x7   :  { %v1211_v14 = vld [vmem:[%s1603_s3 + $0x18] sm:$0xff]   ;;  %v1215_v18 = vld [vmem:[%s1603_s3 + $0x20] sm:$0xff]   ;;  %v1219_v22 = vld [vmem:[%s1603_s3 + $0x28] sm:$0xff]  }
   0x8   :  { %1052 = vmatpush3.bf16.msra.mxu0 %v1203_v6  ;;  %v1212_v15 = vld [vmem:[%s1603_s3 + $0x98] sm:$0xff]   ;;  %v1216_v19 = vld [vmem:[%s1603_s3 + $0xa0] sm:$0xff]   ;;  %v1220_v23 = vld [vmem:[%s1603_s3 + $0xa8] sm:$0xff]  }
   0x9   :  { %1074 = vmatpush3.bf16.msra.mxu1 %v1204_v7  ;;  %1053 = vmatprep.subr.bf16.mxu0 %v1205_v8  ;;  %v1221_v24 = vld [vmem:[%s1603_s3 + $0x70] sm:$0xff]   ;;  %v1225_v28 = vld [vmem:[%s1603_s3 + $0x78] sm:$0xff]   ;;  %v104_v32 = vld [vmem:[%s1604_s1] sm:$0xff] }
   0xa   :  { %1075 = vmatprep.subr.bf16.mxu1 %v1206_v9  ;;  %v1222_v25 = vld [vmem:[%s1603_s3 + $0xf0] sm:$0xff]   ;;  %v1226_v29 = vld [vmem:[%s1603_s3 + $0xf8] sm:$0xff]   ;;  %v958_v33 = vcombine.low %v104_v32, %v104_v32  ;;  %v959_v34 = vcombine.high %v104_v32, %v104_v32  ;;  %v105_v35 = vld [vmem:[%s1604_s1 + $0x8] sm:$0xff] }
   0xb   :  { %v1223_v26 = vld [vmem:[%s1603_s3 + $0x30] sm:$0xff]   ;;  %v1227_v30 = vld [vmem:[%s1603_s3 + $0x38] sm:$0xff]   ;;  %v960_v37 = vcombine.low %v105_v35, %v105_v35  ;;  %v961_v38 = vcombine.high %v105_v35, %v105_v35  ;;  %v1234_v39 = vld [vmem:[%s1605_s2 + $0x40] sm:$0xff]  }
   0xc   :  { %1054 = vmatpush3.bf16.msra.mxu0 %v1207_v10  ;;  %v1224_v27 = vld [vmem:[%s1603_s3 + $0xb0] sm:$0xff]   ;;  %v1228_v31 = vld [vmem:[%s1603_s3 + $0xb8] sm:$0xff]   ;;  %477 = vmatprep.mubr.bf16.mxu0 %v959_v34  ;;  %v1235_v40 = vld [vmem:[%s1603_s3 + $0x100] sm:$0xff]  }
   0xd   :  { %1076 = vmatpush3.bf16.msra.mxu1 %v1208_v11  ;;  %1055 = vmatprep.subr.bf16.mxu0 %v1209_v12  ;;  %v1236_v41 = vld [vmem:[%s1605_s2] sm:$0xff]   ;;  %v1237_v42 = vld [vmem:[%s1605_s2 + $0x48] sm:$0xff]   ;;  %v1240_v45 = vld [vmem:[%s1605_s2 + $0x50] sm:$0xff]  }
   0xe   :  { %1077 = vmatprep.subr.bf16.mxu1 %v1210_v13  ;;  %517 = vmatprep.mubr.bf16.mxu1 %v961_v38  ;;  %v1238_v43 = vld [vmem:[%s1603_s3 + $0x108] sm:$0xff]   ;;  %v1241_v46 = vld [vmem:[%s1603_s3 + $0x110] sm:$0xff]   ;;  %v1243_v48 = vld [vmem:[%s1605_s2 + $0x58] sm:$0xff]  }
   0xf   :  { %v1239_v44 = vld [vmem:[%s1605_s2 + $0x8] sm:$0xff]   ;;  %v1242_v47 = vld [vmem:[%s1605_s2 + $0x10] sm:$0xff]   ;;  %v1244_v49 = vld [vmem:[%s1603_s3 + $0x118] sm:$0xff]  }
  0x10   :  { %1056 = vmatpush3.bf16.msra.mxu0 %v1211_v14  ;;  %v1245_v50 = vld [vmem:[%s1605_s2 + $0x18] sm:$0xff]   ;;  %v1246_v51 = vld [vmem:[%s1605_s2 + $0x60] sm:$0xff]   ;;  %v1249_v54 = vld [vmem:[%s1605_s2 + $0x68] sm:$0xff]  }
  0x11   :  { %1078 = vmatpush3.bf16.msra.mxu1 %v1212_v15  ;;  %1057 = vmatprep.subr.bf16.mxu0 %v1213_v16  ;;  %v1247_v52 = vld [vmem:[%s1603_s3 + $0x120] sm:$0xff]   ;;  %v1250_v55 = vld [vmem:[%s1603_s3 + $0x128] sm:$0xff]   ;;  %v1252_v57 = vld [vmem:[%s1605_s2 + $0x70] sm:$0xff]  }
  0x12   :  { %1079 = vmatprep.subr.bf16.mxu1 %v1214_v17  ;;  %v1248_v53 = vld [vmem:[%s1605_s2 + $0x20] sm:$0xff]   ;;  %v1251_v56 = vld [vmem:[%s1605_s2 + $0x28] sm:$0xff]   ;;  %v1253_v58 = vld [vmem:[%s1603_s3 + $0x130] sm:$0xff]  }
  0x13   :  { %v21_v59 = vld [vmem:[%s1606_s0] sm:$0xff]  ;;  %v1254_v60 = vld [vmem:[%s1605_s2 + $0x30] sm:$0xff]   ;;  %v1255_v62 = vld [vmem:[%s1605_s2 + $0x78] sm:$0xff]  }
  0x14   :  { %1058 = vmatpush3.bf16.msra.mxu0 %v1215_v18  ;;  %v1004_v61 = vcombine.high %v21_v59, %v21_v59  ;;  %v1256_v63 = vld [vmem:[%s1603_s3 + $0x138] sm:$0xff]   ;;  %v1260_v1 = vld [vmem:[%s1605_s2 + $0xc0] sm:$0xff]   ;;  %v1231_v2 = vld [vmem:[%s1604_s1 + $0x10] ss:$0 sps:$4 sm:$0xff]   ;;  %v1003_v3 = vcombine.low %v21_v59, %v21_v59 }
  0x15   :  { %1080 = vmatpush3.bf16.msra.mxu1 %v1216_v19  ;;  %1059 = vmatprep.subr.bf16.mxu0 %v1217_v20  ;;  %v1257_v0 = vld [vmem:[%s1605_s2 + $0x38] sm:$0xff]   ;;  %v1261_v4 = vld [vmem:[%s1605_s2 + $0x80] sm:$0xff]   ;;  %v1263_v6 = vld [vmem:[%s1605_s2 + $0xc8] sm:$0xff]  }
  0x16   :  { %1081 = vmatprep.subr.bf16.mxu1 %v1218_v21  ;;  %v1262_v5 = vld [vmem:[%s1605_s2 + $0x100] sm:$0xff]   ;;  %v1264_v7 = vld [vmem:[%s1605_s2 + $0x88] sm:$0xff]   ;;  %v1266_v9 = vld [vmem:[%s1605_s2 + $0xd0] sm:$0xff]  }
  0x17   :  { %v1265_v8 = vld [vmem:[%s1605_s2 + $0x108] sm:$0xff]   ;;  %v1267_v10 = vld [vmem:[%s1605_s2 + $0x90] sm:$0xff]   ;;  %v1269_v12 = vld [vmem:[%s1605_s2 + $0xd8] sm:$0xff]  }
  0x18   :  { %1060 = vmatpush3.bf16.msra.mxu0 %v1219_v22  ;;  %v1268_v11 = vld [vmem:[%s1605_s2 + $0x110] sm:$0xff]   ;;  %v1270_v13 = vld [vmem:[%s1605_s2 + $0x98] sm:$0xff]   ;;  %v1272_v15 = vld [vmem:[%s1605_s2 + $0xe0] sm:$0xff]  }
  0x19   :  { %1082 = vmatpush3.bf16.msra.mxu1 %v1220_v23  ;;  %1061 = vmatprep.subr.bf16.mxu0 %v1221_v24  ;;  %v1271_v14 = vld [vmem:[%s1605_s2 + $0x118] sm:$0xff]   ;;  %v22_v16 = vld [vmem:[%s1606_s0 + $0x8] sm:$0xff]  ;;  %v1273_v18 = vld [vmem:[%s1605_s2 + $0xa0] sm:$0xff]  }
  0x1a   :  { %1083 = vmatprep.subr.bf16.mxu1 %v1222_v25  ;;  %v1006_v17 = vcombine.high %v22_v16, %v22_v16  ;;  %v1274_v19 = vld [vmem:[%s1605_s2 + $0x120] sm:$0xff]   ;;  %v1275_v20 = vld [vmem:[%s1605_s2 + $0xe8] sm:$0xff]   ;;  %v1278_v23 = vld [vmem:[%s1605_s2 + $0xf0] sm:$0xff]  }
  0x1b   :  { %v1276_v21 = vld [vmem:[%s1605_s2 + $0xa8] sm:$0xff]   ;;  %v1279_v24 = vld [vmem:[%s1605_s2 + $0xb0] sm:$0xff]  }
  0x1c   :  { %1062 = vmatpush3.bf16.msra.mxu0 %v1223_v26  ;;  %v1277_v22 = vld [vmem:[%s1605_s2 + $0x128] sm:$0xff]   ;;  %v1280_v25 = vld [vmem:[%s1605_s2 + $0x130] sm:$0xff]   ;;  %v1281_v26 = vld [vmem:[%s1605_s2 + $0xf8] sm:$0xff]  }
  0x1d   :  { %1084 = vmatpush3.bf16.msra.mxu1 %v1224_v27  ;;  %1063 = vmatprep.subr.bf16.mxu0 %v1225_v28  ;;  %v1282_v27 = vld [vmem:[%s1605_s2 + $0xb8] sm:$0xff]  }
  0x1e   :  { %1085 = vmatprep.subr.bf16.mxu1 %v1226_v29  ;;  %v1285_v28 = vld [vmem:[%s1605_s2 + $0x138] sm:$0xff]   ;;  %v1005_v29 = vcombine.low %v22_v16, %v22_v16 }
  0x20   :  { %1064 = vmatpush3.bf16.msra.mxu0 %v1227_v30  ;;  %v1286_v30 = vld [vmem:[%s1606_s0 + $0x10] ss:$0 sps:$4 sm:$0xff]  }
  0x21   :  { %1086 = vmatpush3.bf16.msra.mxu1 %v1228_v31  ;;  %1155 = vmatprep.subr.bf16.mxu0 %v1287_v36 }
  0x22   :  { %1102 = vmatprep.subr.bf16.mxu1 %v1234_v39 }
  0x23   :  { %478 = vmatmul.mubr.bf16.vlgmr.msra.gmra.mrb[0].mxu0 %v958_v33 }
  0x24   :  { %518 = vmatmul.mubr.bf16.vlgmr.msra.gmra.mrb[0].mxu1 %v960_v37  ;;  %1156 = vmatpush3.bf16.msra.mxu0 %v1235_v40 }
  0x25   :  { %1103 = vmatpush3.bf16.msra.mxu1 %v1236_v41  ;;  %1157 = vmatprep.subr.bf16.mxu0 %v1287_v36 }
  0x26   :  { %1104 = vmatprep.subr.bf16.mxu1 %v1237_v42  ;;  %1171 = vmatprep.mubr.msk.bf16.mxu0 %vm1288_vm0, %v1287_v36 }
  0x27   :  { %855 = vmatprep.mubr.bf16.mxu1 %v1004_v61 }
  0x28   :  { %1158 = vmatpush3.bf16.msra.mxu0 %v1238_v43 }
  0x29   :  { %1105 = vmatpush3.bf16.msra.mxu1 %v1239_v44  ;;  %1159 = vmatprep.subr.bf16.mxu0 %v1287_v36 }
  0x2a   :  { %1106 = vmatprep.subr.bf16.mxu1 %v1240_v45 }
  0x2c   :  { %1160 = vmatpush3.bf16.msra.mxu0 %v1241_v46 }
  0x2d   :  { %1107 = vmatpush3.bf16.msra.mxu1 %v1242_v47  ;;  %1161 = vmatprep.subr.bf16.mxu0 %v1287_v36 }
  0x2e   :  { %1108 = vmatprep.subr.bf16.mxu1 %v1243_v48 }
  0x30   :  { %1162 = vmatpush3.bf16.msra.mxu0 %v1244_v49 }
  0x31   :  { %1109 = vmatpush3.bf16.msra.mxu1 %v1245_v50  ;;  %1163 = vmatprep.subr.bf16.mxu0 %v1287_v36 }
  0x32   :  { %1110 = vmatprep.subr.bf16.mxu1 %v1246_v51 }
  0x34   :  { %1164 = vmatpush3.bf16.msra.mxu0 %v1247_v52 }
  0x35   :  { %1111 = vmatpush3.bf16.msra.mxu1 %v1248_v53  ;;  %1165 = vmatprep.subr.bf16.mxu0 %v1287_v36 }
  0x36   :  { %1112 = vmatprep.subr.bf16.mxu1 %v1249_v54 }
  0x38   :  { %1166 = vmatpush3.bf16.msra.mxu0 %v1250_v55 }
  0x39   :  { %1113 = vmatpush3.bf16.msra.mxu1 %v1251_v56  ;;  %1167 = vmatprep.subr.bf16.mxu0 %v1287_v36 }
  0x3a   :  { %1114 = vmatprep.subr.bf16.mxu1 %v1252_v57 }
  0x3c   :  { %1168 = vmatpush3.bf16.msra.mxu0 %v1253_v58 }
  0x3d   :  { %1115 = vmatpush3.bf16.msra.mxu1 %v1254_v60  ;;  %1169 = vmatprep.subr.bf16.mxu0 %v1287_v36 }
  0x3e   :  { %1116 = vmatprep.subr.bf16.mxu1 %v1255_v62 }
  0x40   :  { %1170 = vmatpush3.bf16.msra.mxu0 %v1256_v63  ;;  %v1048_v63 = vld [vmem:[%s1607_s4] ss:$0 sm:$0xff] }
  0x41   :  { %1117 = vmatpush3.bf16.msra.mxu1 %v1257_v0  ;;  %1124 = vmatprep.subr.bf16.mxu0 %v1260_v1 }
  0x42   :  { %1175 = vmatprep.subr.bf16.mxu1 %v1287_v36 }
  0x43   :  { %1172 = vmatmul.mubr.bf16.vlgmr.msra.gmra.mrb[4].mxu0 %v1231_v2 }
  0x44   :  { %856 = vmatmul.mubr.bf16.vlgmr.msra.gmra.mrb[4].mxu1 %v1003_v3  ;;  %1125 = vmatpush3.bf16.msra.mxu0 %v1261_v4 }
  0x45   :  { %1176 = vmatpush3.bf16.msra.mxu1 %v1262_v5  ;;  %1126 = vmatprep.subr.bf16.mxu0 %v1263_v6 }
  0x46   :  { %1177 = vmatprep.subr.bf16.mxu1 %v1287_v36  ;;  %1191 = vmatprep.mubr.msk.bf16.mxu1 %vm1288_vm0, %v1287_v36 }
  0x47   :  { %895 = vmatprep.mubr.bf16.mxu0 %v1006_v17 }
  0x48   :  { %1127 = vmatpush3.bf16.msra.mxu0 %v1264_v7 }
  0x49   :  { %1178 = vmatpush3.bf16.msra.mxu1 %v1265_v8  ;;  %1128 = vmatprep.subr.bf16.mxu0 %v1266_v9 }
  0x4a   :  { %1179 = vmatprep.subr.bf16.mxu1 %v1287_v36 }
  0x4c   :  { %1129 = vmatpush3.bf16.msra.mxu0 %v1267_v10 }
  0x4d   :  { %1180 = vmatpush3.bf16.msra.mxu1 %v1268_v11  ;;  %1130 = vmatprep.subr.bf16.mxu0 %v1269_v12 }
  0x4e   :  { %1181 = vmatprep.subr.bf16.mxu1 %v1287_v36 }
  0x50   :  { %1131 = vmatpush3.bf16.msra.mxu0 %v1270_v13 }
  0x51   :  { %1182 = vmatpush3.bf16.msra.mxu1 %v1271_v14  ;;  %1132 = vmatprep.subr.bf16.mxu0 %v1272_v15 }
  0x52   :  { %1183 = vmatprep.subr.bf16.mxu1 %v1287_v36 }
  0x54   :  { %1133 = vmatpush3.bf16.msra.mxu0 %v1273_v18 }
  0x55   :  { %1184 = vmatpush3.bf16.msra.mxu1 %v1274_v19  ;;  %1134 = vmatprep.subr.bf16.mxu0 %v1275_v20 }
  0x56   :  { %1185 = vmatprep.subr.bf16.mxu1 %v1287_v36 }
  0x58   :  { %1135 = vmatpush3.bf16.msra.mxu0 %v1276_v21 }
  0x59   :  { %1186 = vmatpush3.bf16.msra.mxu1 %v1277_v22  ;;  %1136 = vmatprep.subr.bf16.mxu0 %v1278_v23 }
  0x5a   :  { %1187 = vmatprep.subr.bf16.mxu1 %v1287_v36 }
  0x5c   :  { %1137 = vmatpush3.bf16.msra.mxu0 %v1279_v24 }
  0x5d   :  { %1188 = vmatpush3.bf16.msra.mxu1 %v1280_v25  ;;  %1138 = vmatprep.subr.bf16.mxu0 %v1281_v26 }
  0x5e   :  { %1189 = vmatprep.subr.bf16.mxu1 %v1287_v36 }
  0x60   :  { %1139 = vmatpush3.bf16.msra.mxu0 %v1282_v27 }
  0x61   :  { %1190 = vmatpush3.bf16.msra.mxu1 %v1285_v28 }
  0x63   :  { %896 = vmatmul.mubr.bf16.vlgmr.msra.gmra.mrb[8].mxu0 %v1005_v29 }
  0x64   :  { %1192 = vmatmul.mubr.bf16.vlgmr.msra.gmra.mrb[8].mxu1 %v1286_v30 }
  0xf6   :  { %v1065_v31 = vpop.f32.mrb[0].mxu0 }
  0xf7   :  { %v1087_v32 = vpop.f32.mrb[0].mxu1  ;;  %v1066_v33 = vpop.f32.mrb[1].mxu0 }
  0xf8   :  { %v1067_v34 = vadd.f32 %v1066_v33, %v1065_v31  ;;  %v1088_v35 = vpop.f32.mrb[1].mxu1  ;;  %v1068_v37 = vpop.f32.mrb[2].mxu0 }
  0xf9   :  { %v1089_v38 = vadd.f32 %v1088_v35, %v1087_v32  ;;  %v1069_v39 = vpop.f32.mrb[3].mxu0  ;;  %v1090_v40 = vpop.f32.mrb[2].mxu1 }
  0xfa   :  { %v1091_v41 = vpop.f32.mrb[3].mxu1 }
  0xfb   :  { %v520_v36 = vadd.f32 %v1089_v38, %v1067_v34 }
 0x116   :  { %v559_v42 = vpop.f32.mrb[4].mxu0 }
 0x117   :  { %v1118_v43 = vpop.f32.mrb[4].mxu1  ;;  %v560_v44 = vadd.f32 %v559_v42, %v520_v36  ;;  %v1173_v45 = vpop.f32.mrb[5].mxu0 }
 0x118   :  { %v1119_v46 = vpop.f32.mrb[5].mxu1  ;;  %v562_v48 = vpop.f32.mrb[6].mxu0 }
 0x119   :  { %v1120_v47 = vadd.f32 %v1119_v46, %v1118_v43  ;;  %v1121_v49 = vpop.f32.mrb[6].mxu1  ;;  %v1174_v50 = vpop.f32.mrb[7].mxu0 }
 0x11a   :  { %v1122_v51 = vpop.f32.mrb[7].mxu1 }
 0x11b   :  { %v858_v52 = vadd.f32 %v1120_v47, %v560_v44 }
 0x136   :  { %v1140_v53 = vpop.f32.mrb[8].mxu0 }
 0x137   :  { %v937_v54 = vpop.f32.mrb[8].mxu1  ;;  %v1141_v55 = vpop.f32.mrb[9].mxu0 }
 0x138   :  { %v1193_v56 = vpop.f32.mrb[9].mxu1  ;;  %v1142_v57 = vadd.f32 %v1141_v55, %v1140_v53  ;;  %v1143_v58 = vpop.f32.mrb[10].mxu0 }
 0x139   :  { %v940_v59 = vpop.f32.mrb[10].mxu1  ;;  %v1144_v60 = vpop.f32.mrb[11].mxu0 }
 0x13a   :  { %v1194_v61 = vpop.f32.mrb[11].mxu1  ;;  %v898_v62 = vadd.f32 %v1142_v57, %v858_v52 }
 0x13c   :  { %v938_v0 = vadd.f32 %v937_v54, %v898_v62 }
 0x13e   :  { %v950_v1 = vadd.f32 %v1048_v63, %v938_v0 }
 0x140   :  { %v951_v2 = vmax.f32 %v950_v1, 0.0 }
 0x142   :  { %v952_v3 = vpack.c.bf16 %v951_v2, %v951_v2 }
 0x144   :  { %953 = vst [vmem:[%s1608_s5] sm:$0xf] %v952_v3 }

// kernel: generator_forward.28
= control target key start
LH: loop header
LB: loop body
LE: loop exit
PB: predicated region body
PF: predicated region fallthrough
CT: control target
= control target key end

     0   :  { %s643_s3 = inlined_call_operand.vmem [shape: bf16[256,128], index: 3, kind: input, shape index: {}]   ;;  %s644_s2 = inlined_call_operand.vmem [shape: bf16[256,128], index: 2, kind: input, shape index: {}]   ;;  %s645_s1 = inlined_call_operand.vmem [shape: bf16[8,256], index: 1, kind: input, shape index: {}]   ;;  %s646_s0 = inlined_call_operand.vmem [shape: bf16[8,256], index: 0, kind: input, shape index: {}]   ;;  %s647_s4 = inlined_call_operand.vmem [shape: f32[1,128], index: 4, kind: input, shape index: {}]   ;;  %s648_s5 = inlined_call_operand.vmem [shape: bf16[8,128], index: 5, kind: output, shape index: {}]  }
   0x1   :  { %v469_v0 = vld [vmem:[%s643_s3 + $0x40] sm:$0xff]   ;;  %v473_v4 = vld [vmem:[%s643_s3 + $0x48] sm:$0xff]   ;;  %v477_v8 = vld [vmem:[%s643_s3 + $0x50] sm:$0xff]  }
   0x2   :  { %v470_v1 = vld [vmem:[%s644_s2 + $0x40] sm:$0xff]   ;;  %425 = vmatprep.subr.bf16.mxu0 %v469_v0  ;;  %v474_v5 = vld [vmem:[%s644_s2 + $0x48] sm:$0xff]   ;;  %v478_v9 = vld [vmem:[%s644_s2 + $0x50] sm:$0xff]  }
   0x3   :  { %v471_v2 = vld [vmem:[%s643_s3] sm:$0xff]   ;;  %447 = vmatprep.subr.bf16.mxu1 %v470_v1  ;;  %v475_v6 = vld [vmem:[%s643_s3 + $0x8] sm:$0xff]   ;;  %v479_v10 = vld [vmem:[%s643_s3 + $0x10] sm:$0xff]  }
   0x4   :  { %v472_v3 = vld [vmem:[%s644_s2] sm:$0xff]   ;;  %426 = vmatpush3.bf16.msra.mxu0 %v471_v2  ;;  %v476_v7 = vld [vmem:[%s644_s2 + $0x8] sm:$0xff]   ;;  %v480_v11 = vld [vmem:[%s644_s2 + $0x10] sm:$0xff]  }
   0x5   :  { %448 = vmatpush3.bf16.msra.mxu1 %v472_v3  ;;  %427 = vmatprep.subr.bf16.mxu0 %v473_v4  ;;  %v481_v12 = vld [vmem:[%s643_s3 + $0x58] sm:$0xff]   ;;  %v485_v16 = vld [vmem:[%s643_s3 + $0x60] sm:$0xff]   ;;  %v489_v20 = vld [vmem:[%s643_s3 + $0x68] sm:$0xff]  }
   0x6   :  { %449 = vmatprep.subr.bf16.mxu1 %v474_v5  ;;  %v482_v13 = vld [vmem:[%s644_s2 + $0x58] sm:$0xff]   ;;  %v486_v17 = vld [vmem:[%s644_s2 + $0x60] sm:$0xff]   ;;  %v490_v21 = vld [vmem:[%s644_s2 + $0x68] sm:$0xff]  }
   0x7   :  { %v483_v14 = vld [vmem:[%s643_s3 + $0x18] sm:$0xff]   ;;  %v487_v18 = vld [vmem:[%s643_s3 + $0x20] sm:$0xff]   ;;  %v491_v22 = vld [vmem:[%s643_s3 + $0x28] sm:$0xff]  }
   0x8   :  { %428 = vmatpush3.bf16.msra.mxu0 %v475_v6  ;;  %v484_v15 = vld [vmem:[%s644_s2 + $0x18] sm:$0xff]   ;;  %v488_v19 = vld [vmem:[%s644_s2 + $0x20] sm:$0xff]   ;;  %v492_v23 = vld [vmem:[%s644_s2 + $0x28] sm:$0xff]  }
   0x9   :  { %450 = vmatpush3.bf16.msra.mxu1 %v476_v7  ;;  %429 = vmatprep.subr.bf16.mxu0 %v477_v8  ;;  %v493_v24 = vld [vmem:[%s643_s3 + $0x70] sm:$0xff]   ;;  %v497_v28 = vld [vmem:[%s643_s3 + $0x78] sm:$0xff]   ;;  %v54_v32 = vld [vmem:[%s645_s1] sm:$0xff] }
   0xa   :  { %451 = vmatprep.subr.bf16.mxu1 %v478_v9  ;;  %v494_v25 = vld [vmem:[%s644_s2 + $0x70] sm:$0xff]   ;;  %v498_v29 = vld [vmem:[%s644_s2 + $0x78] sm:$0xff]   ;;  %v21_v33 = vld [vmem:[%s646_s0] sm:$0xff]  ;;  %v388_v34 = vcombine.low %v54_v32, %v54_v32  ;;  %v389_v35 = vcombine.high %v54_v32, %v54_v32 }
   0xb   :  { %v495_v26 = vld [vmem:[%s643_s3 + $0x30] sm:$0xff]   ;;  %v499_v30 = vld [vmem:[%s643_s3 + $0x38] sm:$0xff]   ;;  %v406_v36 = vcombine.low %v21_v33, %v21_v33  ;;  %v407_v37 = vcombine.high %v21_v33, %v21_v33  ;;  %v424_v46 = vld [vmem:[%s647_s4] ss:$0 sm:$0xff] }
   0xc   :  { %430 = vmatpush3.bf16.msra.mxu0 %v479_v10  ;;  %v496_v27 = vld [vmem:[%s644_s2 + $0x30] sm:$0xff]   ;;  %v500_v31 = vld [vmem:[%s644_s2 + $0x38] sm:$0xff]   ;;  %222 = vmatprep.mubr.bf16.mxu0 %v389_v35 }
   0xd   :  { %452 = vmatpush3.bf16.msra.mxu1 %v480_v11  ;;  %431 = vmatprep.subr.bf16.mxu0 %v481_v12 }
   0xe   :  { %453 = vmatprep.subr.bf16.mxu1 %v482_v13  ;;  %365 = vmatprep.mubr.bf16.mxu1 %v407_v37 }
  0x10   :  { %432 = vmatpush3.bf16.msra.mxu0 %v483_v14 }
  0x11   :  { %454 = vmatpush3.bf16.msra.mxu1 %v484_v15  ;;  %433 = vmatprep.subr.bf16.mxu0 %v485_v16 }
  0x12   :  { %455 = vmatprep.subr.bf16.mxu1 %v486_v17 }
  0x14   :  { %434 = vmatpush3.bf16.msra.mxu0 %v487_v18 }
  0x15   :  { %456 = vmatpush3.bf16.msra.mxu1 %v488_v19  ;;  %435 = vmatprep.subr.bf16.mxu0 %v489_v20 }
  0x16   :  { %457 = vmatprep.subr.bf16.mxu1 %v490_v21 }
  0x18   :  { %436 = vmatpush3.bf16.msra.mxu0 %v491_v22 }
  0x19   :  { %458 = vmatpush3.bf16.msra.mxu1 %v492_v23  ;;  %437 = vmatprep.subr.bf16.mxu0 %v493_v24 }
  0x1a   :  { %459 = vmatprep.subr.bf16.mxu1 %v494_v25 }
  0x1c   :  { %438 = vmatpush3.bf16.msra.mxu0 %v495_v26 }
  0x1d   :  { %460 = vmatpush3.bf16.msra.mxu1 %v496_v27  ;;  %439 = vmatprep.subr.bf16.mxu0 %v497_v28 }
  0x1e   :  { %461 = vmatprep.subr.bf16.mxu1 %v498_v29 }
  0x20   :  { %440 = vmatpush3.bf16.msra.mxu0 %v499_v30 }
  0x21   :  { %462 = vmatpush3.bf16.msra.mxu1 %v500_v31 }
  0x23   :  { %223 = vmatmul.mubr.bf16.vlgmr.msra.gmra.mrb[0].mxu0 %v388_v34 }
  0x24   :  { %366 = vmatmul.mubr.bf16.vlgmr.msra.gmra.mrb[0].mxu1 %v406_v36 }
  0xf6   :  { %v441_v38 = vpop.f32.mrb[0].mxu0 }
  0xf7   :  { %v463_v39 = vpop.f32.mrb[0].mxu1  ;;  %v442_v40 = vpop.f32.mrb[1].mxu0 }
  0xf8   :  { %v464_v41 = vpop.f32.mrb[1].mxu1  ;;  %v443_v42 = vadd.f32 %v442_v40, %v441_v38  ;;  %v444_v44 = vpop.f32.mrb[2].mxu0 }
  0xf9   :  { %v465_v43 = vadd.f32 %v464_v41, %v463_v39  ;;  %v466_v45 = vpop.f32.mrb[2].mxu1  ;;  %v445_v47 = vpop.f32.mrb[3].mxu0 }
  0xfa   :  { %v467_v48 = vpop.f32.mrb[3].mxu1 }
  0xfb   :  { %v368_v49 = vadd.f32 %v465_v43, %v443_v42 }
  0xfd   :  { %v380_v50 = vadd.f32 %v424_v46, %v368_v49 }
  0xff   :  { %v381_v51 = vmax.f32 %v380_v50, 0.0 }
 0x101   :  { %v382_v52 = vpack.c.bf16 %v381_v51, %v381_v51 }
 0x103   :  { %383 = vst [vmem:[%s648_s5] sm:$0xf] %v382_v52 }

// kernel: generator_forward.27
= control target key start
LH: loop header
LB: loop body
LE: loop exit
PB: predicated region body
PF: predicated region fallthrough
CT: control target
= control target key end

     0   :  { %v819_v1 = vmov 0.0   ;;  %vm820_vm0 = vmmov 0   ;;  %s1033_s3 = inlined_call_operand.vmem [shape: bf16[384,128], index: 3, kind: input, shape index: {}]   ;;  %s1034_s1 = inlined_call_operand.vmem [shape: bf16[8,384], index: 1, kind: input, shape index: {}]   ;;  %s1035_s2 = inlined_call_operand.vmem [shape: bf16[384,128], index: 2, kind: input, shape index: {}]   ;;  %s1036_s0 = inlined_call_operand.vmem [shape: bf16[8,384], index: 0, kind: input, shape index: {}]   ;;  %s1037_s4 = inlined_call_operand.vmem [shape: f32[1,128], index: 4, kind: input, shape index: {}]   ;;  %s1038_s5 = inlined_call_operand.vmem [shape: bf16[8,128], index: 5, kind: output, shape index: {}]  }
   0x1   :  { %v765_v0 = vld [vmem:[%s1033_s3 + $0x40] sm:$0xff]   ;;  %723 = vmatprep.subr.bf16.mxu1 %v819_v1  ;;  %739 = vmatprep.mubr.msk.bf16.mxu1 %vm820_vm0, %v819_v1  ;;  %v768_v4 = vld [vmem:[%s1033_s3 + $0x48] sm:$0xff]   ;;  %v771_v7 = vld [vmem:[%s1033_s3 + $0x50] sm:$0xff]  }
   0x2   :  { %v766_v2 = vld [vmem:[%s1033_s3] sm:$0xff]   ;;  %661 = vmatprep.subr.bf16.mxu0 %v765_v0  ;;  %v769_v5 = vld [vmem:[%s1033_s3 + $0x8] sm:$0xff]   ;;  %v772_v8 = vld [vmem:[%s1033_s3 + $0x10] sm:$0xff]  }
   0x3   :  { %v767_v3 = vld [vmem:[%s1033_s3 + $0x80] sm:$0xff]   ;;  %662 = vmatpush3.bf16.msra.mxu0 %v766_v2  ;;  %v770_v6 = vld [vmem:[%s1033_s3 + $0x88] sm:$0xff]   ;;  %v773_v9 = vld [vmem:[%s1033_s3 + $0x90] sm:$0xff]  }
   0x4   :  { %724 = vmatpush3.bf16.msra.mxu1 %v767_v3  ;;  %663 = vmatprep.subr.bf16.mxu0 %v768_v4  ;;  %v774_v10 = vld [vmem:[%s1033_s3 + $0x58] sm:$0xff]   ;;  %v777_v13 = vld [vmem:[%s1033_s3 + $0x60] sm:$0xff]   ;;  %v780_v16 = vld [vmem:[%s1033_s3 + $0x68] sm:$0xff]  }
   0x5   :  { %725 = vmatprep.subr.bf16.mxu1 %v819_v1  ;;  %v775_v11 = vld [vmem:[%s1033_s3 + $0x18] sm:$0xff]   ;;  %v778_v14 = vld [vmem:[%s1033_s3 + $0x20] sm:$0xff]   ;;  %v781_v17 = vld [vmem:[%s1033_s3 + $0x28] sm:$0xff]  }
   0x6   :  { %v776_v12 = vld [vmem:[%s1033_s3 + $0x98] sm:$0xff]   ;;  %v779_v15 = vld [vmem:[%s1033_s3 + $0xa0] sm:$0xff]   ;;  %v782_v18 = vld [vmem:[%s1033_s3 + $0xa8] sm:$0xff]  }
   0x7   :  { %664 = vmatpush3.bf16.msra.mxu0 %v769_v5  ;;  %v783_v19 = vld [vmem:[%s1033_s3 + $0x70] sm:$0xff]   ;;  %v71_v22 = vld [vmem:[%s1034_s1] sm:$0xff]  ;;  %v786_v23 = vld [vmem:[%s1033_s3 + $0x78] sm:$0xff]  }
   0x8   :  { %726 = vmatpush3.bf16.msra.mxu1 %v770_v6  ;;  %665 = vmatprep.subr.bf16.mxu0 %v771_v7  ;;  %v784_v20 = vld [vmem:[%s1033_s3 + $0x30] sm:$0xff]   ;;  %v607_v24 = vcombine.high %v71_v22, %v71_v22  ;;  %v787_v25 = vld [vmem:[%s1033_s3 + $0x38] sm:$0xff]   ;;  %v792_v27 = vld [vmem:[%s1035_s2 + $0x40] sm:$0xff]   ;;  %v606_v29 = vcombine.low %v71_v22, %v71_v22 }
   0x9   :  { %727 = vmatprep.subr.bf16.mxu1 %v819_v1  ;;  %v785_v21 = vld [vmem:[%s1033_s3 + $0xb0] sm:$0xff]   ;;  %v791_v26 = vld [vmem:[%s1033_s3 + $0xb8] sm:$0xff]   ;;  %v790_v28 = vld [vmem:[%s1034_s1 + $0x8] ss:$0 sps:$4 sm:$0xff]  }
   0xa   :  { %308 = vmatprep.mubr.bf16.mxu0 %v607_v24  ;;  %v793_v30 = vld [vmem:[%s1035_s2] sm:$0xff]   ;;  %v795_v32 = vld [vmem:[%s1035_s2 + $0x48] sm:$0xff]   ;;  %v798_v35 = vld [vmem:[%s1035_s2 + $0x50] sm:$0xff]  }
   0xb   :  { %666 = vmatpush3.bf16.msra.mxu0 %v772_v8  ;;  %v794_v31 = vld [vmem:[%s1035_s2 + $0x80] sm:$0xff]   ;;  %v796_v33 = vld [vmem:[%s1035_s2 + $0x8] sm:$0xff]   ;;  %v799_v36 = vld [vmem:[%s1035_s2 + $0x10] sm:$0xff]  }
   0xc   :  { %728 = vmatpush3.bf16.msra.mxu1 %v773_v9  ;;  %667 = vmatprep.subr.bf16.mxu0 %v774_v10  ;;  %v797_v34 = vld [vmem:[%s1035_s2 + $0x88] sm:$0xff]   ;;  %v800_v37 = vld [vmem:[%s1035_s2 + $0x90] sm:$0xff]   ;;  %v801_v38 = vld [vmem:[%s1035_s2 + $0x58] sm:$0xff]  }
   0xd   :  { %729 = vmatprep.subr.bf16.mxu1 %v819_v1  ;;  %v802_v39 = vld [vmem:[%s1035_s2 + $0x18] sm:$0xff]   ;;  %v804_v41 = vld [vmem:[%s1035_s2 + $0x60] sm:$0xff]   ;;  %v807_v44 = vld [vmem:[%s1035_s2 + $0x68] sm:$0xff]  }
   0xe   :  { %v803_v40 = vld [vmem:[%s1035_s2 + $0x98] sm:$0xff]   ;;  %v805_v42 = vld [vmem:[%s1035_s2 + $0x20] sm:$0xff]   ;;  %v808_v47 = vld [vmem:[%s1035_s2 + $0x28] sm:$0xff]  }
   0xf   :  { %668 = vmatpush3.bf16.msra.mxu0 %v775_v11  ;;  %v806_v43 = vld [vmem:[%s1035_s2 + $0xa0] sm:$0xff]   ;;  %v809_v48 = vld [vmem:[%s1035_s2 + $0xa8] sm:$0xff]   ;;  %v810_v49 = vld [vmem:[%s1035_s2 + $0x70] sm:$0xff]  }
  0x10   :  { %730 = vmatpush3.bf16.msra.mxu1 %v776_v12  ;;  %669 = vmatprep.subr.bf16.mxu0 %v777_v13  ;;  %v21_v45 = vld [vmem:[%s1036_s0] sm:$0xff]  ;;  %v811_v50 = vld [vmem:[%s1035_s2 + $0x30] sm:$0xff]   ;;  %v813_v52 = vld [vmem:[%s1035_s2 + $0x78] sm:$0xff]  }
  0x11   :  { %731 = vmatprep.subr.bf16.mxu1 %v819_v1  ;;  %v634_v46 = vcombine.high %v21_v45, %v21_v45  ;;  %v812_v51 = vld [vmem:[%s1035_s2 + $0xb0] sm:$0xff]   ;;  %v814_v53 = vld [vmem:[%s1035_s2 + $0x38] sm:$0xff]   ;;  %v633_v55 = vcombine.low %v21_v45, %v21_v45  ;;  %v817_v56 = vld [vmem:[%s1036_s0 + $0x8] ss:$0 sps:$4 sm:$0xff]  }
  0x12   :  { %v818_v54 = vld [vmem:[%s1035_s2 + $0xb8] sm:$0xff]   ;;  %v660_v13 = vld [vmem:[%s1037_s4] ss:$0 sm:$0xff] }
  0x13   :  { %670 = vmatpush3.bf16.msra.mxu0 %v778_v14 }
  0x14   :  { %732 = vmatpush3.bf16.msra.mxu1 %v779_v15  ;;  %671 = vmatprep.subr.bf16.mxu0 %v780_v16 }
  0x15   :  { %733 = vmatprep.subr.bf16.mxu1 %v819_v1 }
  0x17   :  { %672 = vmatpush3.bf16.msra.mxu0 %v781_v17 }
  0x18   :  { %734 = vmatpush3.bf16.msra.mxu1 %v782_v18  ;;  %673 = vmatprep.subr.bf16.mxu0 %v783_v19 }
  0x19   :  { %735 = vmatprep.subr.bf16.mxu1 %v819_v1 }
  0x1b   :  { %674 = vmatpush3.bf16.msra.mxu0 %v784_v20 }
  0x1c   :  { %736 = vmatpush3.bf16.msra.mxu1 %v785_v21  ;;  %675 = vmatprep.subr.bf16.mxu0 %v786_v23 }
  0x1d   :  { %737 = vmatprep.subr.bf16.mxu1 %v819_v1 }
  0x1f   :  { %676 = vmatpush3.bf16.msra.mxu0 %v787_v25 }
  0x20   :  { %738 = vmatpush3.bf16.msra.mxu1 %v791_v26  ;;  %692 = vmatprep.subr.bf16.mxu0 %v792_v27 }
  0x21   :  { %743 = vmatprep.subr.bf16.mxu1 %v819_v1 }
  0x22   :  { %309 = vmatmul.mubr.bf16.vlgmr.msra.gmra.mrb[0].mxu0 %v606_v29 }
  0x23   :  { %693 = vmatpush3.bf16.msra.mxu0 %v793_v30  ;;  %740 = vmatmul.mubr.bf16.vlgmr.msra.gmra.mrb[0].mxu1 %v790_v28 }
  0x24   :  { %744 = vmatpush3.bf16.msra.mxu1 %v794_v31  ;;  %694 = vmatprep.subr.bf16.mxu0 %v795_v32 }
  0x25   :  { %745 = vmatprep.subr.bf16.mxu1 %v819_v1  ;;  %759 = vmatprep.mubr.msk.bf16.mxu1 %vm820_vm0, %v819_v1 }
  0x26   :  { %543 = vmatprep.mubr.bf16.mxu0 %v634_v46 }
  0x27   :  { %695 = vmatpush3.bf16.msra.mxu0 %v796_v33 }
  0x28   :  { %746 = vmatpush3.bf16.msra.mxu1 %v797_v34  ;;  %696 = vmatprep.subr.bf16.mxu0 %v798_v35 }
  0x29   :  { %747 = vmatprep.subr.bf16.mxu1 %v819_v1 }
  0x2b   :  { %697 = vmatpush3.bf16.msra.mxu0 %v799_v36 }
  0x2c   :  { %748 = vmatpush3.bf16.msra.mxu1 %v800_v37  ;;  %698 = vmatprep.subr.bf16.mxu0 %v801_v38 }
  0x2d   :  { %749 = vmatprep.subr.bf16.mxu1 %v819_v1 }
  0x2f   :  { %699 = vmatpush3.bf16.msra.mxu0 %v802_v39 }
  0x30   :  { %750 = vmatpush3.bf16.msra.mxu1 %v803_v40  ;;  %700 = vmatprep.subr.bf16.mxu0 %v804_v41 }
  0x31   :  { %751 = vmatprep.subr.bf16.mxu1 %v819_v1 }
  0x33   :  { %701 = vmatpush3.bf16.msra.mxu0 %v805_v42 }
  0x34   :  { %752 = vmatpush3.bf16.msra.mxu1 %v806_v43  ;;  %702 = vmatprep.subr.bf16.mxu0 %v807_v44 }
  0x35   :  { %753 = vmatprep.subr.bf16.mxu1 %v819_v1 }
  0x37   :  { %703 = vmatpush3.bf16.msra.mxu0 %v808_v47 }
  0x38   :  { %754 = vmatpush3.bf16.msra.mxu1 %v809_v48  ;;  %704 = vmatprep.subr.bf16.mxu0 %v810_v49 }
  0x39   :  { %755 = vmatprep.subr.bf16.mxu1 %v819_v1 }
  0x3b   :  { %705 = vmatpush3.bf16.msra.mxu0 %v811_v50 }
  0x3c   :  { %756 = vmatpush3.bf16.msra.mxu1 %v812_v51  ;;  %706 = vmatprep.subr.bf16.mxu0 %v813_v52 }
  0x3d   :  { %757 = vmatprep.subr.bf16.mxu1 %v819_v1 }
  0x3f   :  { %707 = vmatpush3.bf16.msra.mxu0 %v814_v53 }
  0x40   :  { %758 = vmatpush3.bf16.msra.mxu1 %v818_v54 }
  0x42   :  { %544 = vmatmul.mubr.bf16.vlgmr.msra.gmra.mrb[4].mxu0 %v633_v55 }
  0x43   :  { %760 = vmatmul.mubr.bf16.vlgmr.msra.gmra.mrb[4].mxu1 %v817_v56 }
  0xf5   :  { %v677_v57 = vpop.f32.mrb[0].mxu0 }
  0xf6   :  { %v678_v58 = vpop.f32.mrb[1].mxu0  ;;  %v350_v59 = vpop.f32.mrb[0].mxu1 }
  0xf7   :  { %v679_v60 = vadd.f32 %v678_v58, %v677_v57  ;;  %v680_v61 = vpop.f32.mrb[2].mxu0  ;;  %v741_v62 = vpop.f32.mrb[1].mxu1 }
  0xf8   :  { %v681_v63 = vpop.f32.mrb[3].mxu0  ;;  %v353_v0 = vpop.f32.mrb[2].mxu1 }
  0xf9   :  { %v351_v2 = vadd.f32 %v679_v60, %v350_v59  ;;  %v742_v3 = vpop.f32.mrb[3].mxu1 }
 0x115   :  { %v708_v1 = vpop.f32.mrb[4].mxu0 }
 0x116   :  { %v709_v4 = vpop.f32.mrb[5].mxu0  ;;  %v585_v5 = vpop.f32.mrb[4].mxu1 }
 0x117   :  { %v710_v6 = vadd.f32 %v709_v4, %v708_v1  ;;  %v711_v7 = vpop.f32.mrb[6].mxu0  ;;  %v761_v8 = vpop.f32.mrb[5].mxu1 }
 0x118   :  { %v712_v9 = vpop.f32.mrb[7].mxu0  ;;  %v588_v10 = vpop.f32.mrb[6].mxu1 }
 0x119   :  { %v546_v11 = vadd.f32 %v710_v6, %v351_v2  ;;  %v762_v12 = vpop.f32.mrb[7].mxu1 }
 0x11b   :  { %v586_v14 = vadd.f32 %v585_v5, %v546_v11 }
 0x11d   :  { %v598_v15 = vadd.f32 %v660_v13, %v586_v14 }
 0x11f   :  { %v599_v16 = vmax.f32 %v598_v15, 0.0 }
 0x121   :  { %v600_v17 = vpack.c.bf16 %v599_v16, %v599_v16 }
 0x123   :  { %601 = vst [vmem:[%s1038_s5] sm:$0xf] %v600_v17 }

// kernel: generator_forward.29
= control target key start
LH: loop header
LB: loop body
LE: loop exit
PB: predicated region body
PF: predicated region fallthrough
CT: control target
= control target key end

     0   :  { %v339_v0 = vmov 0.0   ;;  %vm340_vm0 = vmmov 0   ;;  %s431_s3 = inlined_call_operand.vmem [shape: bf16[128,128], index: 3, kind: input, shape index: {}]   ;;  %s432_s2 = inlined_call_operand.vmem [shape: bf16[128,128], index: 2, kind: input, shape index: {}]   ;;  %s433_s1 = inlined_call_operand.vmem [shape: bf16[8,128], index: 1, kind: input, shape index: {}]   ;;  %s434_s0 = inlined_call_operand.vmem [shape: bf16[8,128], index: 0, kind: input, shape index: {}]   ;;  %s435_s4 = inlined_call_operand.vmem [shape: f32[1,128], index: 4, kind: input, shape index: {}]   ;;  %s436_s5 = inlined_call_operand.vmem [shape: bf16[8,128], index: 5, kind: output, shape index: {}]  }
   0x1   :  { %281 = vmatprep.subr.bf16.mxu0 %v339_v0  ;;  %301 = vmatprep.subr.bf16.mxu1 %v339_v0  ;;  %v323_v1 = vld [vmem:[%s431_s3] sm:$0xff]   ;;  %v325_v3 = vld [vmem:[%s431_s3 + $0x8] sm:$0xff]   ;;  %v327_v5 = vld [vmem:[%s431_s3 + $0x10] sm:$0xff]  }
   0x2   :  { %v324_v2 = vld [vmem:[%s432_s2] sm:$0xff]   ;;  %297 = vmatprep.mubr.msk.bf16.mxu0 %vm340_vm0, %v339_v0  ;;  %317 = vmatprep.mubr.msk.bf16.mxu1 %vm340_vm0, %v339_v0  ;;  %v326_v4 = vld [vmem:[%s432_s2 + $0x8] sm:$0xff]   ;;  %v328_v6 = vld [vmem:[%s432_s2 + $0x10] sm:$0xff]  }
   0x3   :  { %282 = vmatpush3.bf16.msra.mxu0 %v323_v1  ;;  %302 = vmatpush3.bf16.msra.mxu1 %v324_v2  ;;  %v329_v7 = vld [vmem:[%s431_s3 + $0x18] sm:$0xff]   ;;  %v331_v9 = vld [vmem:[%s431_s3 + $0x20] sm:$0xff]   ;;  %v333_v11 = vld [vmem:[%s431_s3 + $0x28] sm:$0xff]  }
   0x4   :  { %283 = vmatprep.subr.bf16.mxu0 %v339_v0  ;;  %303 = vmatprep.subr.bf16.mxu1 %v339_v0  ;;  %v330_v8 = vld [vmem:[%s432_s2 + $0x18] sm:$0xff]   ;;  %v332_v10 = vld [vmem:[%s432_s2 + $0x20] sm:$0xff]   ;;  %v334_v12 = vld [vmem:[%s432_s2 + $0x28] sm:$0xff]  }
   0x5   :  { %v335_v13 = vld [vmem:[%s431_s3 + $0x30] sm:$0xff]   ;;  %v337_v15 = vld [vmem:[%s431_s3 + $0x38] sm:$0xff]   ;;  %v38_v17 = vld [vmem:[%s433_s1] sm:$0xf] }
   0x6   :  { %v336_v14 = vld [vmem:[%s432_s2 + $0x30] sm:$0xff]   ;;  %v338_v16 = vld [vmem:[%s432_s2 + $0x38] sm:$0xff]   ;;  %v21_v18 = vld [vmem:[%s434_s0] sm:$0xf] }
   0x7   :  { %284 = vmatpush3.bf16.msra.mxu0 %v325_v3  ;;  %304 = vmatpush3.bf16.msra.mxu1 %v326_v4  ;;  %v262_v21 = vld [vmem:[%s435_s4] ss:$0 sm:$0xff] }
   0x8   :  { %285 = vmatprep.subr.bf16.mxu0 %v339_v0  ;;  %305 = vmatprep.subr.bf16.mxu1 %v339_v0 }
   0xb   :  { %286 = vmatpush3.bf16.msra.mxu0 %v327_v5  ;;  %306 = vmatpush3.bf16.msra.mxu1 %v328_v6 }
   0xc   :  { %287 = vmatprep.subr.bf16.mxu0 %v339_v0  ;;  %307 = vmatprep.subr.bf16.mxu1 %v339_v0 }
   0xf   :  { %288 = vmatpush3.bf16.msra.mxu0 %v329_v7  ;;  %308 = vmatpush3.bf16.msra.mxu1 %v330_v8 }
  0x10   :  { %289 = vmatprep.subr.bf16.mxu0 %v339_v0  ;;  %309 = vmatprep.subr.bf16.mxu1 %v339_v0 }
  0x13   :  { %290 = vmatpush3.bf16.msra.mxu0 %v331_v9  ;;  %310 = vmatpush3.bf16.msra.mxu1 %v332_v10 }
  0x14   :  { %291 = vmatprep.subr.bf16.mxu0 %v339_v0  ;;  %311 = vmatprep.subr.bf16.mxu1 %v339_v0 }
  0x17   :  { %292 = vmatpush3.bf16.msra.mxu0 %v333_v11  ;;  %312 = vmatpush3.bf16.msra.mxu1 %v334_v12 }
  0x18   :  { %293 = vmatprep.subr.bf16.mxu0 %v339_v0  ;;  %313 = vmatprep.subr.bf16.mxu1 %v339_v0 }
  0x1b   :  { %294 = vmatpush3.bf16.msra.mxu0 %v335_v13  ;;  %314 = vmatpush3.bf16.msra.mxu1 %v336_v14 }
  0x1c   :  { %295 = vmatprep.subr.bf16.mxu0 %v339_v0  ;;  %315 = vmatprep.subr.bf16.mxu1 %v339_v0 }
  0x1f   :  { %296 = vmatpush3.bf16.msra.mxu0 %v337_v15  ;;  %316 = vmatpush3.bf16.msra.mxu1 %v338_v16 }
  0x22   :  { %298 = vmatmul.mubr.bf16.vlgmr.msra.gmra.mrb[0].mxu0 %v38_v17  ;;  %318 = vmatmul.mubr.bf16.vlgmr.msra.gmra.mrb[0].mxu1 %v21_v18 }
  0xf5   :  { %v137_v19 = vpop.f32.mrb[0].mxu0  ;;  %v225_v20 = vpop.f32.mrb[0].mxu1 }
  0xf6   :  { %v299_v22 = vpop.f32.mrb[1].mxu0  ;;  %v226_v23 = vadd.f32 %v225_v20, %v137_v19  ;;  %v319_v24 = vpop.f32.mrb[1].mxu1 }
  0xf7   :  { %v140_v25 = vpop.f32.mrb[2].mxu0  ;;  %v228_v26 = vpop.f32.mrb[2].mxu1 }
  0xf8   :  { %v300_v27 = vpop.f32.mrb[3].mxu0  ;;  %v238_v28 = vadd.f32 %v262_v21, %v226_v23  ;;  %v320_v29 = vpop.f32.mrb[3].mxu1 }
  0xfa   :  { %v239_v30 = vmax.f32 %v238_v28, 0.0 }
  0xfc   :  { %v240_v31 = vpack.c.bf16 %v239_v30, %v239_v30 }
  0xfe   :  { %241 = vst [vmem:[%s436_s5] sm:$0xf] %v240_v31 }

// kernel: generator_forward.30
= control target key start
LH: loop header
LB: loop body
LE: loop exit
PB: predicated region body
PF: predicated region fallthrough
CT: control target
= control target key end

     0   :  { %v194_v0 = vmov 0.0   ;;  %vm195_vm0 = vmmov 0   ;;  %s249_s1 = inlined_call_operand.vmem [shape: bf16[128,128], index: 1, kind: input, shape index: {}]   ;;  %s250_s0 = inlined_call_operand.vmem [shape: bf16[8,128], index: 0, kind: input, shape index: {}]   ;;  %s251_s2 = inlined_call_operand.vmem [shape: f32[1,128], index: 2, kind: input, shape index: {}]   ;;  %s252_s3 = inlined_call_operand.vmem [shape: bf16[8,128], index: 3, kind: output, shape index: {}]  }
   0x1   :  { %164 = vmatprep.subr.bf16.mxu0 %v194_v0  ;;  %v186_v1 = vld [vmem:[%s249_s1] sm:$0xff]   ;;  %180 = vmatprep.mubr.msk.bf16.mxu0 %vm195_vm0, %v194_v0  ;;  %v187_v2 = vld [vmem:[%s249_s1 + $0x8] sm:$0xff]   ;;  %v188_v3 = vld [vmem:[%s249_s1 + $0x10] sm:$0xff]  }
   0x2   :  { %165 = vmatpush3.bf16.msra.mxu0 %v186_v1  ;;  %v189_v4 = vld [vmem:[%s249_s1 + $0x18] sm:$0xff]   ;;  %v190_v5 = vld [vmem:[%s249_s1 + $0x20] sm:$0xff]   ;;  %v191_v6 = vld [vmem:[%s249_s1 + $0x28] sm:$0xff]  }
   0x3   :  { %166 = vmatprep.subr.bf16.mxu0 %v194_v0  ;;  %v192_v7 = vld [vmem:[%s249_s1 + $0x30] sm:$0xff]   ;;  %v193_v8 = vld [vmem:[%s249_s1 + $0x38] sm:$0xff]   ;;  %v21_v9 = vld [vmem:[%s250_s0] sm:$0xf] }
   0x4   :  { %v154_v10 = vld [vmem:[%s251_s2] ss:$0 sm:$0xff] }
   0x6   :  { %167 = vmatpush3.bf16.msra.mxu0 %v187_v2 }
   0x7   :  { %168 = vmatprep.subr.bf16.mxu0 %v194_v0 }
   0xa   :  { %169 = vmatpush3.bf16.msra.mxu0 %v188_v3 }
   0xb   :  { %170 = vmatprep.subr.bf16.mxu0 %v194_v0 }
   0xe   :  { %171 = vmatpush3.bf16.msra.mxu0 %v189_v4 }
   0xf   :  { %172 = vmatprep.subr.bf16.mxu0 %v194_v0 }
  0x12   :  { %173 = vmatpush3.bf16.msra.mxu0 %v190_v5 }
  0x13   :  { %174 = vmatprep.subr.bf16.mxu0 %v194_v0 }
  0x16   :  { %175 = vmatpush3.bf16.msra.mxu0 %v191_v6 }
  0x17   :  { %176 = vmatprep.subr.bf16.mxu0 %v194_v0 }
  0x1a   :  { %177 = vmatpush3.bf16.msra.mxu0 %v192_v7 }
  0x1b   :  { %178 = vmatprep.subr.bf16.mxu0 %v194_v0 }
  0x1e   :  { %179 = vmatpush3.bf16.msra.mxu0 %v193_v8 }
  0x21   :  { %181 = vmatmul.mubr.bf16.vlgmr.msra.gmra.mrb[0].mxu0 %v21_v9 }
  0xf4   :  { %v120_v11 = vpop.f32.mrb[0].mxu0 }
  0xf5   :  { %v139_v12 = vadd.f32 %v154_v10, %v120_v11  ;;  %v182_v13 = vpop.f32.mrb[1].mxu0 }
  0xf6   :  { %v123_v14 = vpop.f32.mrb[2].mxu0 }
  0xf7   :  { %v140_v15 = vpack.c.bf16 %v139_v12, %v139_v12  ;;  %v183_v16 = vpop.f32.mrb[3].mxu0 }
  0xf9   :  { %141 = vst [vmem:[%s252_s3] sm:$0xf] %v140_v15 }

// kernel: generator_forward.31
= control target key start
LH: loop header
LB: loop body
LE: loop exit
PB: predicated region body
PF: predicated region fallthrough
CT: control target
= control target key end

     0   :  { %s740_s12 = smov 0   ;;  %s742_s13 = smov 0   ;;  %s831_s0 = inlined_call_operand.vmem [shape: bf16[32,256], index: 0, kind: input, shape index: {}]   ;;  %s832_s1 = inlined_call_operand.vmem [shape: bf16[256,128], index: 1, kind: input, shape index: {}]   ;;  %s833_s2 = inlined_call_operand.vmem [shape: f32[1,128], index: 2, kind: input, shape index: {}]   ;;  %s834_s3 = inlined_call_operand.vmem [shape: f32[32,128], index: 3, kind: output, shape index: {}]  }
   0x1   :  { %s744_s14 = smov 0  }
   0x2 LB: > { %s32_s15 = sadd.s32 1, %s714_s13  ;;  %p599_p0 = scmp.ge.s32.totalorder %s718_s14, 1  ;;  %s718_s14 = sphi %s744_s14, %s13_s14   ;;  %s714_s13 = sphi %s742_s13, %s836_s13   ;;  %s710_s12 = sphi %s740_s12, %s835_s12  }
   0x3   : > { %p34_p1 = scmp.ge.s32.totalorder %s32_s15, 2  ;;  %p191_p2 = scmp.lt.s32.totalorder %s718_s14, 3 }
   0x5   : > { %s838_s15 = smov (%p34_p1, %s32_s15), 0  ;;  %p192_p3 = pnand %p599_p0, %p191_p2 }
   0x6   : > { %v673_v0 = vld [vmem:[%s832_s1 + $0x40] sm:$0xff] (!%p192_p3)   ;;  %s600_s18 = sshll.u32 (!%p192_p3), %s710_s12, 1  ;;  %v675_v2 = vld [vmem:[%s832_s1 + $0x48] sm:$0xff] (!%p192_p3)   ;;  %v677_v4 = vld [vmem:[%s832_s1 + $0x50] sm:$0xff] (!%p192_p3)  }
   0x7   : > { %195 = sbr.rel (%p192_p3) target bundleno = 270 (0x10e), region = 32  ;;  %v674_v1 = vld [vmem:[%s832_s1] sm:$0xff] (!%p192_p3)   ;;  %627 = vmatprep.subr.bf16.mxu0 (!%p192_p3), %v673_v0  ;;  %v676_v3 = vld [vmem:[%s832_s1 + $0x8] sm:$0xff] (!%p192_p3)   ;;  %p236_p4 = scmp.lt.s32.totalorder (!%p192_p3), %s600_s18, 3  ;;  %v678_v5 = vld [vmem:[%s832_s1 + $0x10] sm:$0xff] (!%p192_p3)  }
   0x8   : > { %628 = vmatpush3.bf16.msra.mxu0 (!%p192_p3), %v674_v1  ;;  %v679_v6 = vld [vmem:[%s832_s1 + $0x58] sm:$0xff] (!%p192_p3)   ;;  %v681_v8 = vld [vmem:[%s832_s1 + $0x60] sm:$0xff] (!%p192_p3)   ;;  %v683_v10 = vld [vmem:[%s832_s1 + $0x68] sm:$0xff] (!%p192_p3)  }
   0x9   : > { %629 = vmatprep.subr.bf16.mxu0 (!%p192_p3), %v675_v2  ;;  %v680_v7 = vld [vmem:[%s832_s1 + $0x18] sm:$0xff] (!%p192_p3)   ;;  %v682_v9 = vld [vmem:[%s832_s1 + $0x20] sm:$0xff] (!%p192_p3)   ;;  %v684_v12 = vld [vmem:[%s832_s1 + $0x28] sm:$0xff] (!%p192_p3)  }
   0xa   : > { %v685_v13 = vld [vmem:[%s832_s1 + $0x70] sm:$0xff] (!%p192_p3)   ;;  %v687_v15 = vld [vmem:[%s832_s1 + $0x78] sm:$0xff] (!%p192_p3)   ;;  %v623_v20 = vld [vmem:[%s833_s2] ss:$0 sm:$0xff] (!%p192_p3) }
   0xb   : > { %v686_v14 = vld [vmem:[%s832_s1 + $0x30] sm:$0xff] (!%p192_p3)   ;;  %v688_v16 = vld [vmem:[%s832_s1 + $0x38] sm:$0xff] (!%p192_p3)  }
   0xc   : > { %630 = vmatpush3.bf16.msra.mxu0 (!%p192_p3), %v676_v3 }
   0xd   : > { %631 = vmatprep.subr.bf16.mxu0 (!%p192_p3), %v677_v4 }
   0xe   : > { %s840_s18 = smov (!%p236_p4, %s600_s18), 3 }
   0xf   : > { %s626_s6 = sshll.u32 %s840_s18, 3 }
  0x10   : > { %632 = vmatpush3.bf16.msra.mxu0 %v678_v5  ;;  %s243_s11 = scalar_lea.vmem %s831_s0, %s626_s6  ;;  %s265_s8 = scalar_lea.vmem %s834_s3, %s626_s6 }
  0x11   : > { %633 = vmatprep.subr.bf16.mxu0 %v679_v6  ;;  %v691_v11 = vld [vmem:[%s243_s11 + $0x4] ss:$8 sps:$4 sm:$0xff]   ;;  %v689_v17 = vld [vmem:[%s243_s11] ss:$8 sps:$4 sm:$0xff]  }
  0x12   : > { %448 = vmatprep.mubr.bf16.mxu0 %v691_v11 }
  0x14   : > { %634 = vmatpush3.bf16.msra.mxu0 %v680_v7 }
  0x15   : > { %635 = vmatprep.subr.bf16.mxu0 %v681_v8 }
  0x18   : > { %636 = vmatpush3.bf16.msra.mxu0 %v682_v9 }
  0x19   : > { %637 = vmatprep.subr.bf16.mxu0 %v683_v10 }
  0x1c   : > { %638 = vmatpush3.bf16.msra.mxu0 %v684_v12 }
  0x1d   : > { %639 = vmatprep.subr.bf16.mxu0 %v685_v13 }
  0x20   : > { %640 = vmatpush3.bf16.msra.mxu0 %v686_v14 }
  0x21   : > { %641 = vmatprep.subr.bf16.mxu0 %v687_v15 }
  0x24   : > { %642 = vmatpush3.bf16.msra.mxu0 %v688_v16 }
  0x27   : > { %449 = vmatmul.mubr.bf16.vlgmr.msra.gmra.mrb[0].mxu0 %v689_v17 }
  0xfa   : > { %v643_v18 = vpop.f32.mrb[0].mxu0 }
  0xfb   : > { %v644_v19 = vpop.f32.mrb[1].mxu0 }
  0xfc   : > { %v645_v21 = vadd.f32 %v644_v19, %v643_v18  ;;  %v646_v22 = vpop.f32.mrb[2].mxu0 }
  0xfd   : > { %v647_v23 = vpop.f32.mrb[3].mxu0 }
  0xfe   : > { %v473_v24 = vadd.f32 %v645_v21, %v623_v20  ;;  %v648_v25 = vadd.f32 %v647_v23, %v646_v22 }
 0x100   : > { %692 = vtanh.f32 %v473_v24  ;;  %v474_v26 = vadd.f32 %v648_v25, %v623_v20 }
 0x102   : > { %694 = vtanh.f32 %v474_v26 }
 0x10a   : > { %v693_v27 = vpop.eup %692 }
 0x10b   : > { %477 = vst [vmem:[%s265_s8] sm:$0xff] %v693_v27 }
 0x10c   : > { %v695_v28 = vpop.eup %694 }
 0x10d   : > { %478 = vst [vmem:[%s265_s8 + $0x8] sm:$0xff] %v695_v28 }
 0x10e PF: > { %s13_s14 = sadd.s32 1, %s718_s14   ;;  %s835_s12 = smov %s714_s13 }
 0x10f   : > { %p10_p5 = scmp.ge.s32.totalorder %s13_s14, 4   ;;  %s836_s13 = smov %s838_s15 }
 0x111   :  { %12 = sbr.rel (!%p10_p5) target bundleno = 2 (0x2), region = 76 }

</bundles_post_ra>
